<compile_context>
chip_gen: v6e
topology: v6e:2x2x1
jax: 0.10.0
libtpu: 0.0.40
codegen_flags: <defaults>
</compile_context>

<pallas_src>
import functools

import jax
import jax.numpy as jnp
from jax.experimental import pallas as pl
from jax.experimental.pallas import tpu as pltpu


def mixed_pooling_kernel(feat_ref, alpha_ref, w_ref, b_ref, out_ref):
    # feat_ref : (TN, C, HW)  bf16 (memory format only)
    # alpha_ref: (1, C)       f32  raw alpha parameter (sigmoid applied here)
    # w_ref    : (Kp, C)      f32  classifier weight, zero-padded to Kp lanes
    # b_ref    : (1, Kp)      f32  classifier bias, zero-padded
    # out_ref  : (TN, Kp)     f32  padded logits
    feat = feat_ref[...].astype(jnp.float32)            # upcast once; all math f32

    # AdaptiveMaxPool2d((1,1)) / AdaptiveAvgPool2d((1,1)) over the spatial axis,
    # which sits in the lane dimension -> XLU cross-lane reduce.
    hw = feat.shape[-1]
    mx = jnp.max(feat, axis=-1)                         # (TN, C)
    av = jnp.sum(feat, axis=-1) * (1.0 / hw)            # (TN, C), f32 accumulation

    a = jax.nn.sigmoid(alpha_ref[...])                  # (1, C), EUP; broadcasts
    pooled = av + a * (mx - av)                         # == mx*a + av*(1-a)

    # classifier: Linear(C -> K); weight kept as (Kp, C), contract on C (MXU).
    logits = jax.lax.dot_general(
        pooled, w_ref[...],
        dimension_numbers=(((1,), (1,)), ((), ())),
        preferred_element_type=jnp.float32)             # (TN, Kp)
    out_ref[...] = logits + b_ref[...]


def prepare_mixed_pooling_params(alpha, w, b, lane_pad=128):
    """One-time (model-load) parameter prep: reshape alpha, pad classifier to a
    lane-dense output width. alpha: (1,C,1,1); w: (K,C); b: (K,)."""
    C = alpha.shape[1]
    K = w.shape[0]
    Kp = ((K + lane_pad - 1) // lane_pad) * lane_pad
    alpha2d = alpha.reshape(1, C).astype(jnp.float32)
    w_pad = jnp.zeros((Kp, C), jnp.float32).at[:K, :].set(w.astype(jnp.float32))
    b_pad = jnp.zeros((1, Kp), jnp.float32).at[0, :K].set(b.astype(jnp.float32))
    return alpha2d, w_pad, b_pad


def _pick_batch_tile(n, c, hw, itemsize, budget_bytes=8 << 20):
    """Largest batch tile whose (lane/sublane padded) VMEM footprint stays under
    budget_bytes per buffer (x2 for double buffering -> well inside the 32 MiB
    default scoped VMEM, including on v7x)."""
    lane = ((hw + 127) // 128) * 128
    sub = ((c + 7) // 8) * 8
    per_sample = sub * lane * itemsize
    tn = max(1, budget_bytes // per_sample)
    if tn >= n:
        return n                      # single full-batch block
    return max(8, (tn // 8) * 8)      # keep second-to-last out dim 8-aligned


@functools.partial(jax.jit, static_argnames=("num_classes",))
def mixed_pooling_forward(feat_nchw, alpha2d, w_pad, b_pad, num_classes):
    """feat_nchw: (N, C, H, W) backbone output (ideally bf16); params from
    prepare_mixed_pooling_params. Returns (N, num_classes) f32 logits."""
    N, C, H, W = feat_nchw.shape
    HW = H * W
    Kp = w_pad.shape[0]

    feat = feat_nchw.reshape(N, C, HW)                   # free contiguous reshape
    TN = _pick_batch_tile(N, C, HW, jnp.dtype(feat.dtype).itemsize)

    logits_pad = pl.pallas_call(
        mixed_pooling_kernel,
        out_shape=jax.ShapeDtypeStruct((N, Kp), jnp.float32),
        grid_spec=pltpu.PrefetchScalarGridSpec(
            num_scalar_prefetch=0,
            grid=(pl.cdiv(N, TN),),
            in_specs=[
                pl.BlockSpec((TN, C, HW), lambda i: (i, 0, 0)),
                pl.BlockSpec((1, C), lambda i: (0, 0)),
                pl.BlockSpec((Kp, C), lambda i: (0, 0)),
                pl.BlockSpec((1, Kp), lambda i: (0, 0)),
            ],
            out_specs=pl.BlockSpec((TN, Kp), lambda i: (i, 0)),
        ),
        compiler_params=pltpu.CompilerParams(
            dimension_semantics=("parallel",)),
    )(feat, alpha2d, w_pad, b_pad)
    return logits_pad[:, :num_classes]


def reference_forward(feat_nchw, alpha, w, b):
    """Pure-JAX reference mirroring the PyTorch forward."""
    feat = feat_nchw.astype(jnp.float32)
    a = jax.nn.sigmoid(alpha)                               # (1, C, 1, 1)
    mx = jnp.max(feat, axis=(2, 3), keepdims=True)          # AdaptiveMaxPool2d
    av = jnp.mean(feat, axis=(2, 3), keepdims=True)         # AdaptiveAvgPool2d
    pooled = mx * a + av * (-a + 1.0)                       # (N, C, 1, 1)
    pooled = pooled[:, :, 0, 0]                             # squeeze(-1).squeeze(-1)
    return jnp.dot(pooled, w.T, precision=jax.lax.Precision.HIGHEST) + b


if __name__ == "__main__":
    # Shapes consistent with the module for a resnet18-style backbone:
    # batch=2, num_features=512, 7x7 final feature map, num_classes=10.
    N, C, H, W, K = 2, 512, 7, 7, 10

    key = jax.random.PRNGKey(0)
    k_feat, k_w, k_b = jax.random.split(key, 3)

    # Synthetic backbone output (stands in for feature_extractor_2 output).
    # Stored in bf16: halves HBM traffic for the memory-bound feature read.
    feat = jax.random.normal(k_feat, (N, C, H, W), dtype=jnp.float32)
    feat_bf16 = feat.astype(jnp.bfloat16)

    # Parameters per the module's __init__: alpha = zeros([1,C,1,1]); Linear(C,K).
    alpha = jnp.zeros((1, C, 1, 1), dtype=jnp.float32)
    w = jax.random.normal(k_w, (K, C), dtype=jnp.float32) * 0.02
    b = jax.random.normal(k_b, (K,), dtype=jnp.float32) * 0.02

    # One-time parameter prep (hoisted out of the per-call forward path).
    alpha2d, w_pad, b_pad = prepare_mixed_pooling_params(alpha, w, b)

    logits = mixed_pooling_forward(feat_bf16, alpha2d, w_pad, b_pad, K)
    logits = jax.block_until_ready(logits)
    assert logits.shape == (N, K)

    # Validate against the reference computed on the same bf16-stored features
    # (bf16 storage is the deliberate memory-format choice; all kernel math is f32).
    ref = reference_forward(feat_bf16, alpha, w, b)
    assert jnp.allclose(logits, ref, atol=1e-3, rtol=1e-3), "mismatch vs reference"

    print("KERNEL_OK")
</pallas_src>

<mosaic_0001>
module attributes {stable_mosaic.version = 11 : i64} {
  func.func @mixed_pooling_kernel(%arg0: i32, %arg1: memref<2x512x49xbf16, #tpu.memory_space<vmem>>, %arg2: memref<1x512xf32, #tpu.memory_space<vmem>>, %arg3: memref<128x512xf32, #tpu.memory_space<vmem>>, %arg4: memref<1x128xf32, #tpu.memory_space<vmem>>, %arg5: memref<2x128xf32, #tpu.memory_space<vmem>>) attributes {dimension_semantics = [#tpu.dimension_semantics<parallel>], iteration_bounds = array<i64: 1>, scalar_prefetch = 0 : i64, scratch_operands = 0 : i64, tpu.core_type = #tpu.core_type<tc>, window_params = [{transform_indices = @transform_0, window_bounds = array<i64: 2, 512, 49>}, {pipeline_mode = #tpu.pipeline_mode<synchronous>, transform_indices = @transform_1, window_bounds = array<i64: 1, 512>}, {pipeline_mode = #tpu.pipeline_mode<synchronous>, transform_indices = @transform_2, window_bounds = array<i64: 128, 512>}, {pipeline_mode = #tpu.pipeline_mode<synchronous>, transform_indices = @transform_3, window_bounds = array<i64: 1, 128>}, {transform_indices = @transform_4, window_bounds = array<i64: 2, 128>}]} {
    %c0 = arith.constant 0 : index
    %c0_0 = arith.constant 0 : index
    %c0_1 = arith.constant 0 : index
    %0 = vector.load %arg1[%c0, %c0_0, %c0_1] : memref<2x512x49xbf16, #tpu.memory_space<vmem>>, vector<2x512x49xbf16>
    %1 = arith.extf %0 : vector<2x512x49xbf16> to vector<2x512x49xf32>
    %cst = arith.constant dense<0xFF800000> : vector<2x512xf32>
    %2 = vector.multi_reduction <maximumf>, %1, %cst [2] : vector<2x512x49xf32> to vector<2x512xf32>
    %cst_2 = arith.constant dense<0.000000e+00> : vector<2x512xf32>
    %3 = vector.multi_reduction <add>, %1, %cst_2 [2] : vector<2x512x49xf32> to vector<2x512xf32>
    %cst_3 = arith.constant 0.0204081628 : f32
    %4 = vector.broadcast %cst_3 : f32 to vector<2x512xf32>
    %5 = arith.mulf %3, %4 : vector<2x512xf32>
    %c0_4 = arith.constant 0 : index
    %c0_5 = arith.constant 0 : index
    %6 = vector.load %arg2[%c0_4, %c0_5] : memref<1x512xf32, #tpu.memory_space<vmem>>, vector<1x512xf32>
    %7 = arith.negf %6 : vector<1x512xf32>
    %8 = math.exp %7 : vector<1x512xf32>
    %cst_6 = arith.constant 1.000000e+00 : f32
    %9 = vector.broadcast %cst_6 : f32 to vector<1x512xf32>
    %10 = arith.addf %9, %8 : vector<1x512xf32>
    %11 = arith.divf %9, %10 : vector<1x512xf32>
    %12 = arith.subf %2, %5 : vector<2x512xf32>
    %13 = vector.broadcast %11 : vector<1x512xf32> to vector<2x512xf32>
    %14 = arith.mulf %13, %12 : vector<2x512xf32>
    %15 = arith.addf %5, %14 : vector<2x512xf32>
    %c0_7 = arith.constant 0 : index
    %c0_8 = arith.constant 0 : index
    %16 = vector.load %arg3[%c0_7, %c0_8] : memref<128x512xf32, #tpu.memory_space<vmem>>, vector<128x512xf32>
    %cst_9 = arith.constant dense<0.000000e+00> : vector<2x128xf32>
    %17 = tpu.matmul %15, %16, %cst_9 {dimension_numbers = #tpu.dot_dimension_numbers<[1], [1], [0], [0], [0, 0, 1, 0], [], []>} : vector<2x512xf32>, vector<128x512xf32>, vector<2x128xf32> -> vector<2x128xf32>
    %c0_10 = arith.constant 0 : index
    %c0_11 = arith.constant 0 : index
    %18 = vector.load %arg4[%c0_10, %c0_11] : memref<1x128xf32, #tpu.memory_space<vmem>>, vector<1x128xf32>
    %19 = vector.broadcast %18 : vector<1x128xf32> to vector<2x128xf32>
    %20 = arith.addf %17, %19 : vector<2x128xf32>
    %c0_12 = arith.constant 0 : index
    %c0_13 = arith.constant 0 : index
    %21 = vector.load %arg5[%c0_12, %c0_13] : memref<2x128xf32, #tpu.memory_space<vmem>>, vector<2x128xf32>
    tpu.vector_store %arg5[%c0_12, %c0_13], %20 {strides = array<i32>} : memref<2x128xf32, #tpu.memory_space<vmem>>, vector<2x128xf32>,
    return
  }
  func.func @transform_0(%arg0: i32) -> (i32, i32, i32) {
    %c0_i32 = arith.constant 0 : i32
    %c0_i32_0 = arith.constant 0 : i32
    %c0_i32_1 = arith.constant 0 : i32
    return %arg0, %c0_i32, %c0_i32_0 : i32, i32, i32
  }
  func.func @transform_1(%arg0: i32) -> (i32, i32) {
    %c0_i32 = arith.constant 0 : i32
    %c0_i32_0 = arith.constant 0 : i32
    %c0_i32_1 = arith.constant 0 : i32
    return %c0_i32, %c0_i32_0 : i32, i32
  }
  func.func @transform_2(%arg0: i32) -> (i32, i32) {
    %c0_i32 = arith.constant 0 : i32
    %c0_i32_0 = arith.constant 0 : i32
    %c0_i32_1 = arith.constant 0 : i32
    return %c0_i32, %c0_i32_0 : i32, i32
  }
  func.func @transform_3(%arg0: i32) -> (i32, i32) {
    %c0_i32 = arith.constant 0 : i32
    %c0_i32_0 = arith.constant 0 : i32
    %c0_i32_1 = arith.constant 0 : i32
    return %c0_i32, %c0_i32_0 : i32, i32
  }
  func.func @transform_4(%arg0: i32) -> (i32, i32) {
    %c0_i32 = arith.constant 0 : i32
    %c0_i32_0 = arith.constant 0 : i32
    return %arg0, %c0_i32 : i32, i32
  }
}

</mosaic_0001>

<bundles_post_ra>
// kernel: mixed_pooling_forward.1
= control target key start
LH: loop header
LB: loop body
LE: loop exit
PB: predicated region body
PF: predicated region fallthrough
CT: control target
= control target key end

     0   :  { %vm274_vm0 = vcmask 400384   ;;  %s8568_s0 = inlined_call_operand.vmem [shape: bf16[2,512,49], index: 0, kind: input, shape index: {}]   ;;  %s8569_s1 = inlined_call_operand.vmem [shape: f32[1,512], index: 1, kind: input, shape index: {}]   ;;  %s8570_s2 = inlined_call_operand.vmem [shape: f32[128,512], index: 2, kind: input, shape index: {}]   ;;  %s8571_s3 = inlined_call_operand.vmem [shape: f32[1,128], index: 3, kind: input, shape index: {}]   ;;  %s8572_s4 = inlined_call_operand.hbm [shape: f32[2,128], index: 4, kind: output, shape index: {}]  }
   0x1   :  { %v5007_v0 = vld [vmem:[%s8568_s0 + $0x8] sm:$0xff]   ;;  %v5012_v1 = vld [vmem:[%s8568_s0] sm:$0xff]   ;;  %v5021_v6 = vld [vmem:[%s8568_s0 + $0x10] sm:$0xff]  }
   0x2   :  { %v8649_v2 = vunpack.c.l.bf16 %v5007_v0  ;;  %v8651_v3 = vunpack.c.l.bf16 %v5012_v1  ;;  %v8650_v4 = vunpack.c.h.bf16 %v5007_v0  ;;  %v8654_v5 = vunpack.c.h.bf16 %v5012_v1  ;;  %v5040_v13 = vld [vmem:[%s8568_s0 + $0x18] sm:$0xff]   ;;  %v5053_v18 = vld [vmem:[%s8568_s0 + $0x20] sm:$0xff]   ;;  %v5066_v23 = vld [vmem:[%s8568_s0 + $0x28] sm:$0xff]  }
   0x3   :  { %v8646_v11 = vunpack.c.h.bf16 %v5021_v6  ;;  %v8645_v12 = vunpack.c.l.bf16 %v5021_v6  ;;  %v8644_v16 = vunpack.c.h.bf16 %v5040_v13  ;;  %v8641_v17 = vunpack.c.l.bf16 %v5040_v13 }
   0x4   :  { %v281_v7 = vsel %vm274_vm0, %v8649_v2, -inf  ;;  %v275_v8 = vsel %vm274_vm0, %v8651_v3, -inf  ;;  %v284_v9 = vsel %vm274_vm0, %v8650_v4, -inf  ;;  %v278_v10 = vsel %vm274_vm0, %v8654_v5, -inf }
   0x5   :  { %282 = vmax.xlane.f32.xlu1 %v281_v7  ;;  %276 = vmax.xlane.f32.xlu0 %v275_v8  ;;  %v290_v14 = vsel %vm274_vm0, %v8646_v11, -inf  ;;  %v287_v15 = vsel %vm274_vm0, %v8645_v12, -inf  ;;  %v296_v19 = vsel %vm274_vm0, %v8644_v16, -inf  ;;  %v293_v20 = vsel %vm274_vm0, %v8641_v17, -inf }
   0x6   :  { %v8640_v21 = vunpack.c.h.bf16 %v5053_v18  ;;  %v8639_v22 = vunpack.c.l.bf16 %v5053_v18 }
   0x9   :  { %285 = vmax.xlane.f32.xlu1 %v284_v9  ;;  %279 = vmax.xlane.f32.xlu0 %v278_v10 }
   0xd   :  { %291 = vmax.xlane.f32.xlu1 %v290_v14  ;;  %288 = vmax.xlane.f32.xlu0 %v287_v15 }
   0xe   :  { %9 = vsyncpa [#allocation3], 0  ;;  %v302_v24 = vsel %vm274_vm0, %v8640_v21, -inf  ;;  %v299_v25 = vsel %vm274_vm0, %v8639_v22, -inf  ;;  %v8636_v26 = vunpack.c.h.bf16 %v5066_v23  ;;  %v8635_v27 = vunpack.c.l.bf16 %v5066_v23  ;;  %v5079_v28 = vld [vmem:[%s8568_s0 + $0x30] sm:$0xff]   ;;  %v5092_v33 = vld [vmem:[%s8568_s0 + $0x38] sm:$0xff]  }
   0xf   :  { %v8634_v31 = vunpack.c.h.bf16 %v5079_v28  ;;  %v8631_v32 = vunpack.c.l.bf16 %v5079_v28  ;;  %v8630_v36 = vunpack.c.h.bf16 %v5092_v33  ;;  %v8629_v37 = vunpack.c.l.bf16 %v5092_v33  ;;  %v5105_v38 = vld [vmem:[%s8568_s0 + $0x40] sm:$0xff]   ;;  %v5118_v43 = vld [vmem:[%s8568_s0 + $0x48] sm:$0xff]   ;;  %v5131_v48 = vld [vmem:[%s8568_s0 + $0x50] sm:$0xff]   ;;  %s4978_s30 = smov [#allocation2]  }
  0x10   :  { %v308_v29 = vsel %vm274_vm0, %v8636_v26, -inf  ;;  %v305_v30 = vsel %vm274_vm0, %v8635_v27, -inf  ;;  %v8626_v41 = vunpack.c.h.bf16 %v5105_v38  ;;  %v8625_v42 = vunpack.c.l.bf16 %v5105_v38  ;;  %v5144_v53 = vld [vmem:[%s8568_s0 + $0x58] sm:$0xff]   ;;  %v5157_v58 = vld [vmem:[%s8568_s0 + $0x60] sm:$0xff]   ;;  %v5170_v63 = vld [vmem:[%s8568_s0 + $0x68] sm:$0xff]   ;;  %s4298_s5 = sshll.u32 %s4978_s30, 4  ;;  %s4299_s5 = int_to_ptr.vmem [resolvable:$true] %s4298_s5 }
  0x11   :  { %297 = vmax.xlane.f32.xlu1 %v296_v19  ;;  %294 = vmax.xlane.f32.xlu0 %v293_v20  ;;  %v314_v34 = vsel %vm274_vm0, %v8634_v31, -inf  ;;  %v311_v35 = vsel %vm274_vm0, %v8631_v32, -inf  ;;  %v320_v39 = vsel %vm274_vm0, %v8630_v36, -inf  ;;  %v317_v40 = vsel %vm274_vm0, %v8629_v37, -inf  ;;  %v5183_v14 = vld [vmem:[%s8568_s0 + $0x70] sm:$0xff]   ;;  %s4955_s6 = scalar_lea.vmem %s4299_s5, 32  ;;  %p4960_p1 = scmp.lt.s32.totalorder %s4299_s5, %s4299_s5 }
  0x12   :  { %v326_v44 = vsel %vm274_vm0, %v8626_v41, -inf  ;;  %v323_v45 = vsel %vm274_vm0, %v8625_v42, -inf  ;;  %v8624_v46 = vunpack.c.h.bf16 %v5118_v43  ;;  %v8621_v47 = vunpack.c.l.bf16 %v5118_v43  ;;  %p4956_p0 = scmp.ne.s32.totalorder %s4299_s5, %s4955_s6  ;;  %p4961_p2 = scmp.lt.s32.totalorder %s4955_s6, %s4955_s6 }
  0x13   :  { %v8618_v51 = vunpack.c.h.bf16 %v5131_v48  ;;  %v8615_v52 = vunpack.c.l.bf16 %v5131_v48  ;;  %v8612_v56 = vunpack.c.h.bf16 %v5144_v53  ;;  %v8609_v57 = vunpack.c.l.bf16 %v5144_v53 }
  0x14   :  { %v332_v49 = vsel %vm274_vm0, %v8624_v46, -inf  ;;  %v329_v50 = vsel %vm274_vm0, %v8621_v47, -inf  ;;  %v8606_v61 = vunpack.c.h.bf16 %v5157_v58  ;;  %v8603_v62 = vunpack.c.l.bf16 %v5157_v58  ;;  %v5469_v47 = vld [vmem:[%s8568_s0 + $0x120] sm:$0xff]   ;;  %p4962_p3 = por %p4961_p2, %p4960_p1 }
  0x15   :  { %303 = vmax.xlane.f32.xlu1 %v302_v24  ;;  %300 = vmax.xlane.f32.xlu0 %v299_v25  ;;  %v338_v54 = vsel %vm274_vm0, %v8618_v51, -inf  ;;  %v335_v55 = vsel %vm274_vm0, %v8615_v52, -inf  ;;  %v344_v59 = vsel %vm274_vm0, %v8612_v56, -inf  ;;  %v341_v60 = vsel %vm274_vm0, %v8609_v57, -inf  ;;  %v5196_v25 = vld [vmem:[%s8568_s0 + $0x78] sm:$0xff]   ;;  %v5417_v57 = vld [vmem:[%s8568_s0 + $0x100] sm:$0xff]  }
  0x16   :  { %v350_v7 = vsel %vm274_vm0, %v8606_v61, -inf  ;;  %v347_v8 = vsel %vm274_vm0, %v8603_v62, -inf  ;;  %v8600_v9 = vunpack.c.h.bf16 %v5170_v63  ;;  %v8597_v10 = vunpack.c.l.bf16 %v5170_v63  ;;  %v5391_v62 = vld [vmem:[%s8568_s0 + $0xf0] sm:$0xff]   ;;  %v5404_v61 = vld [vmem:[%s8568_s0 + $0xf8] sm:$0xff]   ;;  %v5430_v56 = vld [vmem:[%s8568_s0 + $0x108] sm:$0xff]   ;;  %p4963_p4 = pnand %p4962_p3, %p4956_p0 }
  0x17   :  { %v8594_v20 = vunpack.c.h.bf16 %v5183_v14  ;;  %v8591_v24 = vunpack.c.l.bf16 %v5183_v14  ;;  %v5443_v52 = vld [vmem:[%s8568_s0 + $0x110] sm:$0xff]   ;;  %v5456_v51 = vld [vmem:[%s8568_s0 + $0x118] sm:$0xff]   ;;  %v8632_v46 = vunpack.c.h.bf16 %v5469_v47  ;;  %v8633_v42 = vunpack.c.l.bf16 %v5469_v47 }
  0x18   :  { %v356_v15 = vsel %vm274_vm0, %v8600_v9, -inf  ;;  %v353_v19 = vsel %vm274_vm0, %v8597_v10, -inf  ;;  %v5365_v10 = vld [vmem:[%s8568_s0 + $0xe0] sm:$0xff]   ;;  %v5378_v9 = vld [vmem:[%s8568_s0 + $0xe8] sm:$0xff]   ;;  %vm1466_vm1 = vcmask 130112   ;;  %vm1473_vm2 = vcmask 195712  }
  0x19   :  { %309 = vmax.xlane.f32.xlu1 %v308_v29  ;;  %306 = vmax.xlane.f32.xlu0 %v305_v30  ;;  %v362_v29 = vsel %vm274_vm0, %v8594_v20, -inf  ;;  %v359_v30 = vsel %vm274_vm0, %v8591_v24, -inf  ;;  %v5339_v24 = vld [vmem:[%s8568_s0 + $0xd0] sm:$0xff]   ;;  %v5352_v20 = vld [vmem:[%s8568_s0 + $0xd8] sm:$0xff]   ;;  %vm1480_vm3 = vcmask 261312   ;;  %vm1487_vm4 = vcmask 326912  }
  0x1a   :  { %vm1494_vm5 = vcmask 392512   ;;  %vm1501_vm6 = vcmask 458112   ;;  %vm1508_vm7 = vcmask 523712   ;;  %vm1515_vm8 = vcmask 589312  }
  0x1b   :  { %vm1522_vm9 = vcmask 654912   ;;  %vm1529_vm10 = vcmask 720512   ;;  %vm1536_vm11 = vcmask 786112   ;;  %vm1543_vm12 = vcmask 851712  }
  0x1c   :  { %vm1550_vm13 = vcmask 917312   ;;  %vm1557_vm14 = vcmask 982912   ;;  %vm1564_vm15 = vcmask 1048512  }
  0x1d   :  { %315 = vmax.xlane.f32.xlu1 %v314_v34  ;;  %312 = vmax.xlane.f32.xlu0 %v311_v35  ;;  %v8588_v34 = vunpack.c.h.bf16 %v5196_v25  ;;  %v8585_v35 = vunpack.c.l.bf16 %v5196_v25 }
  0x21   :  { %321 = vmax.xlane.f32.xlu1 %v320_v39  ;;  %318 = vmax.xlane.f32.xlu0 %v317_v40  ;;  %v5209_v39 = vld [vmem:[%s8568_s0 + $0x80] sm:$0xff]   ;;  %v368_v40 = vsel %vm274_vm0, %v8588_v34, -inf  ;;  %v5326_v34 = vld [vmem:[%s8568_s0 + $0xc8] sm:$0xff]  }
  0x25   :  { %327 = vmax.xlane.f32.xlu1 %v326_v44  ;;  %324 = vmax.xlane.f32.xlu0 %v323_v45  ;;  %v365_v44 = vsel %vm274_vm0, %v8585_v35, -inf  ;;  %v8582_v45 = vunpack.c.h.bf16 %v5209_v39  ;;  %v5313_v35 = vld [vmem:[%s8568_s0 + $0xc0] sm:$0xff]  }
  0x29   :  { %333 = vmax.xlane.f32.xlu1 %v332_v49  ;;  %330 = vmax.xlane.f32.xlu0 %v329_v50  ;;  %v8579_v49 = vunpack.c.l.bf16 %v5209_v39  ;;  %v5222_v50 = vld [vmem:[%s8568_s0 + $0x88] sm:$0xff]  }
  0x2d   :  { %339 = vmax.xlane.f32.xlu1 %v338_v54  ;;  %336 = vmax.xlane.f32.xlu0 %v335_v55  ;;  %v374_v54 = vsel %vm274_vm0, %v8582_v45, -inf  ;;  %v371_v55 = vsel %vm274_vm0, %v8579_v49, -inf  ;;  %v5287_v49 = vld [vmem:[%s8568_s0 + $0xb0] sm:$0xff]   ;;  %v5300_v45 = vld [vmem:[%s8568_s0 + $0xb8] sm:$0xff]  }
  0x31   :  { %345 = vmax.xlane.f32.xlu1 %v344_v59  ;;  %342 = vmax.xlane.f32.xlu0 %v341_v60  ;;  %v8576_v59 = vunpack.c.h.bf16 %v5222_v50  ;;  %v8573_v60 = vunpack.c.l.bf16 %v5222_v50 }
  0x35   :  { %351 = vmax.xlane.f32.xlu1 %v350_v7  ;;  %348 = vmax.xlane.f32.xlu0 %v347_v8  ;;  %v5235_v7 = vld [vmem:[%s8568_s0 + $0x90] sm:$0xff]   ;;  %v380_v8 = vsel %vm274_vm0, %v8576_v59, -inf  ;;  %v5274_v59 = vld [vmem:[%s8568_s0 + $0xa8] sm:$0xff]  }
  0x39   :  { %357 = vmax.xlane.f32.xlu1 %v356_v15  ;;  %354 = vmax.xlane.f32.xlu0 %v353_v19  ;;  %v377_v15 = vsel %vm274_vm0, %v8573_v60, -inf  ;;  %v8575_v19 = vunpack.c.h.bf16 %v5235_v7  ;;  %v5261_v60 = vld [vmem:[%s8568_s0 + $0xa0] sm:$0xff]  }
  0x3d   :  { %363 = vmax.xlane.f32.xlu1 %v362_v29  ;;  %360 = vmax.xlane.f32.xlu0 %v359_v30  ;;  %v8574_v29 = vunpack.c.l.bf16 %v5235_v7  ;;  %v5248_v30 = vld [vmem:[%s8568_s0 + $0x98] sm:$0xff]  }
  0x41   :  { %369 = vmax.xlane.f32.xlu1 %v368_v40  ;;  %366 = vmax.xlane.f32.xlu0 %v365_v44  ;;  %v386_v40 = vsel %vm274_vm0, %v8575_v19, -inf  ;;  %v383_v44 = vsel %vm274_vm0, %v8574_v29, -inf  ;;  %v8581_v29 = vunpack.c.h.bf16 %v5261_v60  ;;  %v8580_v19 = vunpack.c.l.bf16 %v5261_v60 }
  0x45   :  { %375 = vmax.xlane.f32.xlu1 %v374_v54  ;;  %372 = vmax.xlane.f32.xlu0 %v371_v55  ;;  %v8578_v54 = vunpack.c.h.bf16 %v5248_v30  ;;  %v8577_v55 = vunpack.c.l.bf16 %v5248_v30 }
  0x49   :  { %381 = vmax.xlane.f32.xlu1 %v380_v8  ;;  %378 = vmax.xlane.f32.xlu0 %v377_v15  ;;  %v392_v8 = vsel %vm274_vm0, %v8578_v54, -inf  ;;  %v389_v15 = vsel %vm274_vm0, %v8577_v55, -inf  ;;  %v8584_v55 = vunpack.c.h.bf16 %v5274_v59  ;;  %v8583_v54 = vunpack.c.l.bf16 %v5274_v59 }
  0x4d   :  { %387 = vmax.xlane.f32.xlu1 %v386_v40  ;;  %384 = vmax.xlane.f32.xlu0 %v383_v44  ;;  %v398_v40 = vsel %vm274_vm0, %v8581_v29, -inf  ;;  %v395_v44 = vsel %vm274_vm0, %v8580_v19, -inf  ;;  %v8587_v19 = vunpack.c.h.bf16 %v5287_v49  ;;  %v8586_v29 = vunpack.c.l.bf16 %v5287_v49 }
  0x51   :  { %393 = vmax.xlane.f32.xlu1 %v392_v8  ;;  %390 = vmax.xlane.f32.xlu0 %v389_v15  ;;  %v404_v8 = vsel %vm274_vm0, %v8584_v55, -inf  ;;  %v401_v15 = vsel %vm274_vm0, %v8583_v54, -inf  ;;  %v8590_v54 = vunpack.c.h.bf16 %v5300_v45  ;;  %v8589_v55 = vunpack.c.l.bf16 %v5300_v45 }
  0x55   :  { %399 = vmax.xlane.f32.xlu1 %v398_v40  ;;  %396 = vmax.xlane.f32.xlu0 %v395_v44  ;;  %v410_v40 = vsel %vm274_vm0, %v8587_v19, -inf  ;;  %v407_v44 = vsel %vm274_vm0, %v8586_v29, -inf  ;;  %v8593_v29 = vunpack.c.h.bf16 %v5313_v35  ;;  %v8592_v19 = vunpack.c.l.bf16 %v5313_v35 }
  0x59   :  { %405 = vmax.xlane.f32.xlu1 %v404_v8  ;;  %402 = vmax.xlane.f32.xlu0 %v401_v15  ;;  %v416_v8 = vsel %vm274_vm0, %v8590_v54, -inf  ;;  %v413_v15 = vsel %vm274_vm0, %v8589_v55, -inf  ;;  %v8596_v55 = vunpack.c.h.bf16 %v5326_v34  ;;  %v8595_v54 = vunpack.c.l.bf16 %v5326_v34 }
  0x5d   :  { %411 = vmax.xlane.f32.xlu1 %v410_v40  ;;  %408 = vmax.xlane.f32.xlu0 %v407_v44  ;;  %v422_v40 = vsel %vm274_vm0, %v8593_v29, -inf  ;;  %v419_v44 = vsel %vm274_vm0, %v8592_v19, -inf  ;;  %v8599_v19 = vunpack.c.h.bf16 %v5339_v24  ;;  %v8598_v29 = vunpack.c.l.bf16 %v5339_v24 }
  0x61   :  { %417 = vmax.xlane.f32.xlu1 %v416_v8  ;;  %414 = vmax.xlane.f32.xlu0 %v413_v15  ;;  %v428_v8 = vsel %vm274_vm0, %v8596_v55, -inf  ;;  %v425_v15 = vsel %vm274_vm0, %v8595_v54, -inf  ;;  %v8602_v54 = vunpack.c.h.bf16 %v5352_v20  ;;  %v8601_v55 = vunpack.c.l.bf16 %v5352_v20 }
  0x65   :  { %423 = vmax.xlane.f32.xlu1 %v422_v40  ;;  %420 = vmax.xlane.f32.xlu0 %v419_v44  ;;  %v434_v40 = vsel %vm274_vm0, %v8599_v19, -inf  ;;  %v431_v44 = vsel %vm274_vm0, %v8598_v29, -inf  ;;  %v8605_v29 = vunpack.c.h.bf16 %v5365_v10  ;;  %v8604_v19 = vunpack.c.l.bf16 %v5365_v10 }
  0x69   :  { %429 = vmax.xlane.f32.xlu1 %v428_v8  ;;  %426 = vmax.xlane.f32.xlu0 %v425_v15  ;;  %v440_v8 = vsel %vm274_vm0, %v8602_v54, -inf  ;;  %v437_v15 = vsel %vm274_vm0, %v8601_v55, -inf  ;;  %v8608_v55 = vunpack.c.h.bf16 %v5378_v9  ;;  %v8607_v54 = vunpack.c.l.bf16 %v5378_v9 }
  0x6d   :  { %435 = vmax.xlane.f32.xlu1 %v434_v40  ;;  %432 = vmax.xlane.f32.xlu0 %v431_v44  ;;  %v446_v40 = vsel %vm274_vm0, %v8605_v29, -inf  ;;  %v443_v44 = vsel %vm274_vm0, %v8604_v19, -inf  ;;  %v8611_v19 = vunpack.c.h.bf16 %v5391_v62  ;;  %v8610_v29 = vunpack.c.l.bf16 %v5391_v62 }
  0x71   :  { %441 = vmax.xlane.f32.xlu1 %v440_v8  ;;  %438 = vmax.xlane.f32.xlu0 %v437_v15  ;;  %v452_v8 = vsel %vm274_vm0, %v8608_v55, -inf  ;;  %v449_v15 = vsel %vm274_vm0, %v8607_v54, -inf  ;;  %v8614_v54 = vunpack.c.h.bf16 %v5404_v61  ;;  %v8613_v55 = vunpack.c.l.bf16 %v5404_v61 }
  0x75   :  { %447 = vmax.xlane.f32.xlu1 %v446_v40  ;;  %444 = vmax.xlane.f32.xlu0 %v443_v44  ;;  %v458_v40 = vsel %vm274_vm0, %v8611_v19, -inf  ;;  %v455_v44 = vsel %vm274_vm0, %v8610_v29, -inf  ;;  %v8617_v29 = vunpack.c.h.bf16 %v5417_v57  ;;  %v8616_v19 = vunpack.c.l.bf16 %v5417_v57 }
  0x79   :  { %453 = vmax.xlane.f32.xlu1 %v452_v8  ;;  %450 = vmax.xlane.f32.xlu0 %v449_v15  ;;  %v464_v8 = vsel %vm274_vm0, %v8614_v54, -inf  ;;  %v461_v15 = vsel %vm274_vm0, %v8613_v55, -inf  ;;  %v8620_v55 = vunpack.c.h.bf16 %v5430_v56  ;;  %v8619_v54 = vunpack.c.l.bf16 %v5430_v56 }
  0x7d   :  { %459 = vmax.xlane.f32.xlu1 %v458_v40  ;;  %456 = vmax.xlane.f32.xlu0 %v455_v44  ;;  %v470_v40 = vsel %vm274_vm0, %v8617_v29, -inf  ;;  %v467_v44 = vsel %vm274_vm0, %v8616_v19, -inf  ;;  %v8622_v19 = vunpack.c.h.bf16 %v5443_v52  ;;  %v8623_v29 = vunpack.c.l.bf16 %v5443_v52 }
  0x81   :  { %465 = vmax.xlane.f32.xlu1 %v464_v8  ;;  %462 = vmax.xlane.f32.xlu0 %v461_v15  ;;  %v476_v8 = vsel %vm274_vm0, %v8620_v55, -inf  ;;  %v473_v15 = vsel %vm274_vm0, %v8619_v54, -inf  ;;  %v8627_v54 = vunpack.c.h.bf16 %v5456_v51  ;;  %v8628_v55 = vunpack.c.l.bf16 %v5456_v51 }
  0x85   :  { %471 = vmax.xlane.f32.xlu1 %v470_v40  ;;  %468 = vmax.xlane.f32.xlu0 %v467_v44  ;;  %v482_v40 = vsel %vm274_vm0, %v8622_v19, -inf  ;;  %v479_v44 = vsel %vm274_vm0, %v8623_v29, -inf  ;;  %v488_v19 = vsel %vm274_vm0, %v8627_v54, -inf  ;;  %v485_v29 = vsel %vm274_vm0, %v8628_v55, -inf }
  0x86   :  { %v494_v54 = vsel %vm274_vm0, %v8632_v46, -inf  ;;  %v491_v55 = vsel %vm274_vm0, %v8633_v42, -inf }
  0x89   :  { %477 = vmax.xlane.f32.xlu1 %v476_v8  ;;  %474 = vmax.xlane.f32.xlu0 %v473_v15 }
  0x8d   :  { %483 = vmax.xlane.f32.xlu1 %v482_v40  ;;  %480 = vmax.xlane.f32.xlu0 %v479_v44  ;;  %v5486_v40 = vld [vmem:[%s8568_s0 + $0x128] sm:$0xff]  }
  0x8e   :  { %v5471_v8 = vpop.xlane.xlu1 %282  ;;  %v5473_v15 = vpop.xlane.xlu0 %276  ;;  %v8637_v37 = vunpack.c.h.bf16 %v5486_v40  ;;  %v8638_v36 = vunpack.c.l.bf16 %v5486_v40 }
  0x8f   :  { %8869 = vst [vmem:[#allocation5_spill] sm:$0xff] %v5471_v8  ;;  %8870 = vst [vmem:[#allocation6_spill] sm:$0xff] %v5473_v15 }
  0x90   :  { %v500_v46 = vsel %vm274_vm0, %v8637_v37, -inf  ;;  %v497_v42 = vsel %vm274_vm0, %v8638_v36, -inf }
  0x91   :  { %489 = vmax.xlane.f32.xlu1 %v488_v19  ;;  %486 = vmax.xlane.f32.xlu0 %v485_v29  ;;  %v5503_v19 = vld [vmem:[%s8568_s0 + $0x130] sm:$0xff]  }
  0x92   :  { %v5488_v44 = vpop.xlane.xlu1 %285  ;;  %v5490_v41 = vpop.xlane.xlu0 %279  ;;  %v8642_v31 = vunpack.c.h.bf16 %v5503_v19  ;;  %v8643_v27 = vunpack.c.l.bf16 %v5503_v19 }
  0x93   :  { %8871 = vst [vmem:[#allocation7_spill] sm:$0xff] %v5488_v44  ;;  %8872 = vst [vmem:[#allocation8_spill] sm:$0xff] %v5490_v41 }
  0x94   :  { %v506_v37 = vsel %vm274_vm0, %v8642_v31, -inf  ;;  %v503_v36 = vsel %vm274_vm0, %v8643_v27, -inf }
  0x95   :  { %495 = vmax.xlane.f32.xlu1 %v494_v54  ;;  %492 = vmax.xlane.f32.xlu0 %v491_v55  ;;  %v5520_v54 = vld [vmem:[%s8568_s0 + $0x138] sm:$0xff]  }
  0x96   :  { %v5505_v29 = vpop.xlane.xlu1 %291  ;;  %v5507_v32 = vpop.xlane.xlu0 %288  ;;  %v8647_v22 = vunpack.c.h.bf16 %v5520_v54  ;;  %v8648_v21 = vunpack.c.l.bf16 %v5520_v54 }
  0x97   :  { %8873 = vst [vmem:[#allocation9_spill] sm:$0xff] %v5505_v29  ;;  %8874 = vst [vmem:[#allocation10_spill] sm:$0xff] %v5507_v32 }
  0x98   :  { %v512_v31 = vsel %vm274_vm0, %v8647_v22, -inf  ;;  %v509_v27 = vsel %vm274_vm0, %v8648_v21, -inf }
  0x99   :  { %501 = vmax.xlane.f32.xlu1 %v500_v46  ;;  %498 = vmax.xlane.f32.xlu0 %v497_v42  ;;  %v5537_v42 = vld [vmem:[%s8568_s0 + $0x140] sm:$0xff]  }
  0x9a   :  { %v5522_v55 = vpop.xlane.xlu1 %297  ;;  %v5524_v26 = vpop.xlane.xlu0 %294  ;;  %v8652_v16 = vunpack.c.h.bf16 %v5537_v42  ;;  %v8653_v12 = vunpack.c.l.bf16 %v5537_v42 }
  0x9b   :  { %8875 = vst [vmem:[#allocation11_spill] sm:$0xff] %v5522_v55  ;;  %8876 = vst [vmem:[#allocation12_spill] sm:$0xff] %v5524_v26 }
  0x9c   :  { %v518_v22 = vsel %vm274_vm0, %v8652_v16, -inf  ;;  %v515_v21 = vsel %vm274_vm0, %v8653_v12, -inf }
  0x9d   :  { %507 = vmax.xlane.f32.xlu1 %v506_v37  ;;  %504 = vmax.xlane.f32.xlu0 %v503_v36  ;;  %v5554_v36 = vld [vmem:[%s8568_s0 + $0x148] sm:$0xff]  }
  0x9e   :  { %v5539_v46 = vpop.xlane.xlu1 %303  ;;  %v5541_v17 = vpop.xlane.xlu0 %300  ;;  %v8655_v2 = vunpack.c.h.bf16 %v5554_v36  ;;  %v8656_v4 = vunpack.c.l.bf16 %v5554_v36 }
  0x9f   :  { %8877 = vst [vmem:[#allocation13_spill] sm:$0xff] %v5539_v46  ;;  %8878 = vst [vmem:[#allocation14_spill] sm:$0xff] %v5541_v17 }
  0xa0   :  { %v524_v16 = vsel %vm274_vm0, %v8655_v2, -inf  ;;  %v521_v12 = vsel %vm274_vm0, %v8656_v4, -inf }
  0xa1   :  { %513 = vmax.xlane.f32.xlu1 %v512_v31  ;;  %510 = vmax.xlane.f32.xlu0 %v509_v27  ;;  %v5571_v27 = vld [vmem:[%s8568_s0 + $0x150] sm:$0xff]  }
  0xa2   :  { %v5556_v37 = vpop.xlane.xlu1 %309  ;;  %v5558_v11 = vpop.xlane.xlu0 %306  ;;  %v8657_v5 = vunpack.c.h.bf16 %v5571_v27 }
  0xa3   :  { %8879 = vst [vmem:[#allocation15_spill] sm:$0xff] %v5556_v37  ;;  %8880 = vst [vmem:[#allocation16_spill] sm:$0xff] %v5558_v11  ;;  %v8658_v37 = vunpack.c.l.bf16 %v5571_v27 }
  0xa4   :  { %v530_v2 = vsel %vm274_vm0, %v8657_v5, -inf }
  0xa5   :  { %519 = vmax.xlane.f32.xlu1 %v518_v22  ;;  %516 = vmax.xlane.f32.xlu0 %v515_v21  ;;  %v5588_v21 = vld [vmem:[%s8568_s0 + $0x158] sm:$0xff]   ;;  %v527_v4 = vsel %vm274_vm0, %v8658_v37, -inf }
  0xa6   :  { %v5573_v31 = vpop.xlane.xlu1 %315  ;;  %v5575_v3 = vpop.xlane.xlu0 %312  ;;  %v8660_v11 = vunpack.c.l.bf16 %v5588_v21 }
  0xa7   :  { %8881 = vst [vmem:[#allocation17_spill] sm:$0xff] %v5573_v31  ;;  %8882 = vst [vmem:[#allocation18_spill] sm:$0xff] %v5575_v3  ;;  %v8659_v31 = vunpack.c.h.bf16 %v5588_v21 }
  0xa8   :  { %v533_v37 = vsel %vm274_vm0, %v8660_v11, -inf }
  0xa9   :  { %525 = vmax.xlane.f32.xlu1 %v524_v16  ;;  %522 = vmax.xlane.f32.xlu0 %v521_v12  ;;  %v5605_v12 = vld [vmem:[%s8568_s0 + $0x160] sm:$0xff]   ;;  %v536_v5 = vsel %vm274_vm0, %v8659_v31, -inf }
  0xaa   :  { %v5590_v22 = vpop.xlane.xlu1 %321  ;;  %v5592_v3 = vpop.xlane.xlu0 %318  ;;  %v8662_v46 = vunpack.c.l.bf16 %v5605_v12 }
  0xab   :  { %8883 = vst [vmem:[#allocation19_spill] sm:$0xff] %v5590_v22  ;;  %8884 = vst [vmem:[#allocation20_spill] sm:$0xff] %v5592_v3  ;;  %v8661_v22 = vunpack.c.h.bf16 %v5605_v12 }
  0xac   :  { %v539_v11 = vsel %vm274_vm0, %v8662_v46, -inf }
  0xad   :  { %531 = vmax.xlane.f32.xlu1 %v530_v2  ;;  %528 = vmax.xlane.f32.xlu0 %v527_v4  ;;  %v5622_v2 = vld [vmem:[%s8568_s0 + $0x168] sm:$0xff]   ;;  %v542_v31 = vsel %vm274_vm0, %v8661_v22, -inf }
  0xae   :  { %v5607_v16 = vpop.xlane.xlu1 %327  ;;  %v5609_v3 = vpop.xlane.xlu0 %324  ;;  %v8664_v17 = vunpack.c.l.bf16 %v5622_v2 }
  0xaf   :  { %8885 = vst [vmem:[#allocation21_spill] sm:$0xff] %v5607_v16  ;;  %8886 = vst [vmem:[#allocation22_spill] sm:$0xff] %v5609_v3  ;;  %v8663_v16 = vunpack.c.h.bf16 %v5622_v2 }
  0xb0   :  { %v545_v46 = vsel %vm274_vm0, %v8664_v17, -inf }
  0xb1   :  { %537 = vmax.xlane.f32.xlu1 %v536_v5  ;;  %534 = vmax.xlane.f32.xlu0 %v533_v37  ;;  %v5639_v5 = vld [vmem:[%s8568_s0 + $0x170] sm:$0xff]   ;;  %v548_v22 = vsel %vm274_vm0, %v8663_v16, -inf }
  0xb2   :  { %v5624_v4 = vpop.xlane.xlu1 %333  ;;  %v5626_v3 = vpop.xlane.xlu0 %330  ;;  %v8666_v55 = vunpack.c.l.bf16 %v5639_v5 }
  0xb3   :  { %8887 = vst [vmem:[#allocation23_spill] sm:$0xff] %v5624_v4  ;;  %8888 = vst [vmem:[#allocation24_spill] sm:$0xff] %v5626_v3  ;;  %v8665_v3 = vunpack.c.h.bf16 %v5639_v5 }
  0xb4   :  { %v551_v17 = vsel %vm274_vm0, %v8666_v55, -inf }
  0xb5   :  { %543 = vmax.xlane.f32.xlu1 %v542_v31  ;;  %540 = vmax.xlane.f32.xlu0 %v539_v11  ;;  %v5656_v11 = vld [vmem:[%s8568_s0 + $0x178] sm:$0xff]   ;;  %v554_v16 = vsel %vm274_vm0, %v8665_v3, -inf }
  0xb6   :  { %v5641_v37 = vpop.xlane.xlu1 %339  ;;  %v5643_v4 = vpop.xlane.xlu0 %336  ;;  %v8668_v26 = vunpack.c.l.bf16 %v5656_v11 }
  0xb7   :  { %8889 = vst [vmem:[#allocation25_spill] sm:$0xff] %v5641_v37  ;;  %8890 = vst [vmem:[#allocation26_spill] sm:$0xff] %v5643_v4  ;;  %v8667_v4 = vunpack.c.h.bf16 %v5656_v11 }
  0xb8   :  { %v557_v55 = vsel %vm274_vm0, %v8668_v26, -inf }
  0xb9   :  { %549 = vmax.xlane.f32.xlu1 %v548_v22  ;;  %546 = vmax.xlane.f32.xlu0 %v545_v46  ;;  %v5673_v46 = vld [vmem:[%s8568_s0 + $0x180] sm:$0xff]   ;;  %v560_v3 = vsel %vm274_vm0, %v8667_v4, -inf }
  0xba   :  { %v5658_v31 = vpop.xlane.xlu1 %345  ;;  %v5660_v37 = vpop.xlane.xlu0 %342  ;;  %v8670_v29 = vunpack.c.l.bf16 %v5673_v46 }
  0xbb   :  { %8891 = vst [vmem:[#allocation27_spill] sm:$0xff] %v5658_v31  ;;  %8892 = vst [vmem:[#allocation28_spill] sm:$0xff] %v5660_v37  ;;  %v8669_v37 = vunpack.c.h.bf16 %v5673_v46 }
  0xbc   :  { %v563_v26 = vsel %vm274_vm0, %v8670_v29, -inf }
  0xbd   :  { %555 = vmax.xlane.f32.xlu1 %v554_v16  ;;  %552 = vmax.xlane.f32.xlu0 %v551_v17  ;;  %v5690_v17 = vld [vmem:[%s8568_s0 + $0x188] sm:$0xff]   ;;  %v566_v4 = vsel %vm274_vm0, %v8669_v37, -inf }
  0xbe   :  { %v5675_v22 = vpop.xlane.xlu1 %351  ;;  %v5677_v31 = vpop.xlane.xlu0 %348  ;;  %v8672_v32 = vunpack.c.l.bf16 %v5690_v17 }
  0xbf   :  { %8893 = vst [vmem:[#allocation29_spill] sm:$0xff] %v5675_v22  ;;  %8894 = vst [vmem:[#allocation30_spill] sm:$0xff] %v5677_v31  ;;  %v8671_v31 = vunpack.c.h.bf16 %v5690_v17 }
  0xc0   :  { %v569_v29 = vsel %vm274_vm0, %v8672_v32, -inf }
  0xc1   :  { %561 = vmax.xlane.f32.xlu1 %v560_v3  ;;  %558 = vmax.xlane.f32.xlu0 %v557_v55  ;;  %v5707_v3 = vld [vmem:[%s8568_s0 + $0x190] sm:$0xff]   ;;  %v572_v37 = vsel %vm274_vm0, %v8671_v31, -inf }
  0xc2   :  { %v5692_v16 = vpop.xlane.xlu1 %357  ;;  %v5694_v22 = vpop.xlane.xlu0 %354  ;;  %v8674_v44 = vunpack.c.l.bf16 %v5707_v3 }
  0xc3   :  { %8895 = vst [vmem:[#allocation31_spill] sm:$0xff] %v5692_v16  ;;  %8896 = vst [vmem:[#allocation32_spill] sm:$0xff] %v5694_v22  ;;  %v8673_v22 = vunpack.c.h.bf16 %v5707_v3 }
  0xc4   :  { %v575_v32 = vsel %vm274_vm0, %v8674_v44, -inf }
  0xc5   :  { %567 = vmax.xlane.f32.xlu1 %v566_v4  ;;  %564 = vmax.xlane.f32.xlu0 %v563_v26  ;;  %v5724_v26 = vld [vmem:[%s8568_s0 + $0x198] sm:$0xff]   ;;  %v578_v31 = vsel %vm274_vm0, %v8673_v22, -inf }
  0xc6   :  { %v5709_v55 = vpop.xlane.xlu1 %363  ;;  %v5711_v16 = vpop.xlane.xlu0 %360  ;;  %v8676_v8 = vunpack.c.l.bf16 %v5724_v26 }
  0xc7   :  { %8897 = vst [vmem:[#allocation33_spill] sm:$0xff] %v5709_v55  ;;  %8898 = vst [vmem:[#allocation34_spill] sm:$0xff] %v5711_v16  ;;  %v8675_v55 = vunpack.c.h.bf16 %v5724_v26 }
  0xc8   :  { %v581_v44 = vsel %vm274_vm0, %v8676_v8, -inf }
  0xc9   :  { %573 = vmax.xlane.f32.xlu1 %v572_v37  ;;  %570 = vmax.xlane.f32.xlu0 %v569_v29  ;;  %v5741_v29 = vld [vmem:[%s8568_s0 + $0x1a0] sm:$0xff]   ;;  %v584_v22 = vsel %vm274_vm0, %v8675_v55, -inf }
  0xca   :  { %v5726_v4 = vpop.xlane.xlu1 %369  ;;  %v5728_v16 = vpop.xlane.xlu0 %366  ;;  %8901 = vst [vmem:[#allocation37_spill] sm:$0xff] %v5741_v29  ;;  %v8678_v15 = vunpack.c.l.bf16 %v5741_v29 }
  0xcb   :  { %8899 = vst [vmem:[#allocation35_spill] sm:$0xff] %v5726_v4  ;;  %8900 = vst [vmem:[#allocation36_spill] sm:$0xff] %v5728_v16  ;;  %v8677_v4 = vunpack.c.h.bf16 %v5741_v29 }
  0xcc   :  { %v587_v8 = vsel %vm274_vm0, %v8678_v15, -inf }
  0xcd   :  { %579 = vmax.xlane.f32.xlu1 %v578_v31  ;;  %576 = vmax.xlane.f32.xlu0 %v575_v32  ;;  %v5758_v32 = vld [vmem:[%s8568_s0 + $0x1a8] sm:$0xff]   ;;  %v590_v55 = vsel %vm274_vm0, %v8677_v4, -inf }
  0xce   :  { %v5743_v37 = vpop.xlane.xlu1 %375  ;;  %v5745_v16 = vpop.xlane.xlu0 %372  ;;  %8904 = vst [vmem:[#allocation40_spill] sm:$0xff] %v5758_v32  ;;  %v8682_v41 = vunpack.c.l.bf16 %v5758_v32 }
  0xcf   :  { %8902 = vst [vmem:[#allocation38_spill] sm:$0xff] %v5743_v37  ;;  %8903 = vst [vmem:[#allocation39_spill] sm:$0xff] %v5745_v16  ;;  %v8681_v37 = vunpack.c.h.bf16 %v5758_v32 }
  0xd0   :  { %v593_v15 = vsel %vm274_vm0, %v8682_v41, -inf }
  0xd1   :  { %585 = vmax.xlane.f32.xlu1 %v584_v22  ;;  %582 = vmax.xlane.f32.xlu0 %v581_v44  ;;  %v5775_v44 = vld [vmem:[%s8568_s0 + $0x1b0] sm:$0xff]   ;;  %v596_v4 = vsel %vm274_vm0, %v8681_v37, -inf }
  0xd2   :  { %v5760_v31 = vpop.xlane.xlu1 %381  ;;  %v5762_v16 = vpop.xlane.xlu0 %378  ;;  %8907 = vst [vmem:[#allocation43_spill] sm:$0xff] %v5775_v44  ;;  %v8686_v29 = vunpack.c.l.bf16 %v5775_v44 }
  0xd3   :  { %8905 = vst [vmem:[#allocation41_spill] sm:$0xff] %v5760_v31  ;;  %8906 = vst [vmem:[#allocation42_spill] sm:$0xff] %v5762_v16  ;;  %v8685_v16 = vunpack.c.h.bf16 %v5775_v44 }
  0xd4   :  { %v599_v41 = vsel %vm274_vm0, %v8686_v29, -inf }
  0xd5   :  { %591 = vmax.xlane.f32.xlu1 %v590_v55  ;;  %588 = vmax.xlane.f32.xlu0 %v587_v8  ;;  %v5792_v8 = vld [vmem:[%s8568_s0 + $0x1b8] sm:$0xff]   ;;  %v602_v37 = vsel %vm274_vm0, %v8685_v16, -inf }
  0xd6   :  { %v5777_v22 = vpop.xlane.xlu1 %387  ;;  %v5779_v31 = vpop.xlane.xlu0 %384  ;;  %8910 = vst [vmem:[#allocation46_spill] sm:$0xff] %v5792_v8  ;;  %v8690_v32 = vunpack.c.l.bf16 %v5792_v8 }
  0xd7   :  { %8908 = vst [vmem:[#allocation44_spill] sm:$0xff] %v5777_v22  ;;  %8909 = vst [vmem:[#allocation45_spill] sm:$0xff] %v5779_v31  ;;  %v8689_v31 = vunpack.c.h.bf16 %v5792_v8 }
  0xd8   :  { %v605_v29 = vsel %vm274_vm0, %v8690_v32, -inf }
  0xd9   :  { %597 = vmax.xlane.f32.xlu1 %v596_v4  ;;  %594 = vmax.xlane.f32.xlu0 %v593_v15  ;;  %v5809_v15 = vld [vmem:[%s8568_s0 + $0x1c0] sm:$0xff]   ;;  %v608_v16 = vsel %vm274_vm0, %v8689_v31, -inf }
  0xda   :  { %v5794_v55 = vpop.xlane.xlu1 %393  ;;  %v5796_v22 = vpop.xlane.xlu0 %390  ;;  %8913 = vst [vmem:[#allocation49_spill] sm:$0xff] %v5809_v15  ;;  %v8694_v44 = vunpack.c.l.bf16 %v5809_v15 }
  0xdb   :  { %8911 = vst [vmem:[#allocation47_spill] sm:$0xff] %v5794_v55  ;;  %8912 = vst [vmem:[#allocation48_spill] sm:$0xff] %v5796_v22  ;;  %v8693_v22 = vunpack.c.h.bf16 %v5809_v15 }
  0xdc   :  { %v611_v32 = vsel %vm274_vm0, %v8694_v44, -inf }
  0xdd   :  { %603 = vmax.xlane.f32.xlu1 %v602_v37  ;;  %600 = vmax.xlane.f32.xlu0 %v599_v41  ;;  %v5826_v41 = vld [vmem:[%s8568_s0 + $0x1c8] sm:$0xff]   ;;  %v614_v31 = vsel %vm274_vm0, %v8693_v22, -inf }
  0xde   :  { %v5811_v4 = vpop.xlane.xlu1 %399  ;;  %v5813_v55 = vpop.xlane.xlu0 %396  ;;  %8916 = vst [vmem:[#allocation52_spill] sm:$0xff] %v5826_v41  ;;  %v8698_v8 = vunpack.c.l.bf16 %v5826_v41 }
  0xdf   :  { %8914 = vst [vmem:[#allocation50_spill] sm:$0xff] %v5811_v4  ;;  %8915 = vst [vmem:[#allocation51_spill] sm:$0xff] %v5813_v55  ;;  %v8697_v55 = vunpack.c.h.bf16 %v5826_v41 }
  0xe0   :  { %v617_v44 = vsel %vm274_vm0, %v8698_v8, -inf }
  0xe1   :  { %609 = vmax.xlane.f32.xlu1 %v608_v16  ;;  %606 = vmax.xlane.f32.xlu0 %v605_v29  ;;  %v5843_v16 = vld [vmem:[%s8568_s0 + $0x1d0] sm:$0xff]   ;;  %v620_v22 = vsel %vm274_vm0, %v8697_v55, -inf }
  0xe2   :  { %v5828_v37 = vpop.xlane.xlu1 %405  ;;  %v5830_v4 = vpop.xlane.xlu0 %402  ;;  %8919 = vst [vmem:[#allocation55_spill] sm:$0xff] %v5843_v16  ;;  %v8702_v15 = vunpack.c.l.bf16 %v5843_v16 }
  0xe3   :  { %8917 = vst [vmem:[#allocation53_spill] sm:$0xff] %v5828_v37  ;;  %8918 = vst [vmem:[#allocation54_spill] sm:$0xff] %v5830_v4  ;;  %v8701_v4 = vunpack.c.h.bf16 %v5843_v16 }
  0xe4   :  { %v623_v8 = vsel %vm274_vm0, %v8702_v15, -inf }
  0xe5   :  { %615 = vmax.xlane.f32.xlu1 %v614_v31  ;;  %612 = vmax.xlane.f32.xlu0 %v611_v32  ;;  %v5860_v32 = vld [vmem:[%s8568_s0 + $0x1d8] sm:$0xff]   ;;  %v626_v55 = vsel %vm274_vm0, %v8701_v4, -inf }
  0xe6   :  { %v5845_v29 = vpop.xlane.xlu1 %411  ;;  %v5847_v37 = vpop.xlane.xlu0 %408  ;;  %8922 = vst [vmem:[#allocation58_spill] sm:$0xff] %v5860_v32  ;;  %v8706_v41 = vunpack.c.l.bf16 %v5860_v32 }
  0xe7   :  { %8920 = vst [vmem:[#allocation56_spill] sm:$0xff] %v5845_v29  ;;  %8921 = vst [vmem:[#allocation57_spill] sm:$0xff] %v5847_v37  ;;  %v8705_v37 = vunpack.c.h.bf16 %v5860_v32 }
  0xe8   :  { %v629_v15 = vsel %vm274_vm0, %v8706_v41, -inf }
  0xe9   :  { %621 = vmax.xlane.f32.xlu1 %v620_v22  ;;  %618 = vmax.xlane.f32.xlu0 %v617_v44  ;;  %v5877_v44 = vld [vmem:[%s8568_s0 + $0x1e0] sm:$0xff]   ;;  %v632_v4 = vsel %vm274_vm0, %v8705_v37, -inf }
  0xea   :  { %v5862_v31 = vpop.xlane.xlu1 %417  ;;  %v5864_v29 = vpop.xlane.xlu0 %414  ;;  %8925 = vst [vmem:[#allocation61_spill] sm:$0xff] %v5877_v44  ;;  %v8710_v16 = vunpack.c.l.bf16 %v5877_v44 }
  0xeb   :  { %8923 = vst [vmem:[#allocation59_spill] sm:$0xff] %v5862_v31  ;;  %8924 = vst [vmem:[#allocation60_spill] sm:$0xff] %v5864_v29  ;;  %v8709_v29 = vunpack.c.h.bf16 %v5877_v44 }
  0xec   :  { %v635_v41 = vsel %vm274_vm0, %v8710_v16, -inf }
  0xed   :  { %627 = vmax.xlane.f32.xlu1 %v626_v55  ;;  %624 = vmax.xlane.f32.xlu0 %v623_v8  ;;  %v5894_v8 = vld [vmem:[%s8568_s0 + $0x1e8] sm:$0xff]   ;;  %v638_v37 = vsel %vm274_vm0, %v8709_v29, -inf }
  0xee   :  { %v5879_v22 = vpop.xlane.xlu1 %423  ;;  %v5881_v31 = vpop.xlane.xlu0 %420  ;;  %8928 = vst [vmem:[#allocation64_spill] sm:$0xff] %v5894_v8  ;;  %v8714_v32 = vunpack.c.l.bf16 %v5894_v8 }
  0xef   :  { %8926 = vst [vmem:[#allocation62_spill] sm:$0xff] %v5879_v22  ;;  %8927 = vst [vmem:[#allocation63_spill] sm:$0xff] %v5881_v31  ;;  %v8713_v22 = vunpack.c.h.bf16 %v5894_v8 }
  0xf0   :  { %v641_v16 = vsel %vm274_vm0, %v8714_v32, -inf }
  0xf1   :  { %633 = vmax.xlane.f32.xlu1 %v632_v4  ;;  %630 = vmax.xlane.f32.xlu0 %v629_v15  ;;  %v5911_v15 = vld [vmem:[%s8568_s0 + $0x1f0] sm:$0xff]   ;;  %v644_v29 = vsel %vm274_vm0, %v8713_v22, -inf }
  0xf2   :  { %v5896_v55 = vpop.xlane.xlu1 %429  ;;  %v5898_v31 = vpop.xlane.xlu0 %426  ;;  %v8718_v44 = vunpack.c.l.bf16 %v5911_v15 }
  0xf3   :  { %8929 = vst [vmem:[#allocation65_spill] sm:$0xff] %v5896_v55  ;;  %8930 = vst [vmem:[#allocation66_spill] sm:$0xff] %v5898_v31  ;;  %v8717_v31 = vunpack.c.h.bf16 %v5911_v15 }
  0xf4   :  { %v647_v32 = vsel %vm274_vm0, %v8718_v44, -inf }
  0xf5   :  { %639 = vmax.xlane.f32.xlu1 %v638_v37  ;;  %636 = vmax.xlane.f32.xlu0 %v635_v41  ;;  %v5928_v41 = vld [vmem:[%s8568_s0 + $0x1f8] sm:$0xff]   ;;  %v650_v22 = vsel %vm274_vm0, %v8717_v31, -inf }
  0xf6   :  { %v5913_v4 = vpop.xlane.xlu1 %435  ;;  %v5915_v55 = vpop.xlane.xlu0 %432  ;;  %8933 = vst [vmem:[#allocation69_spill] sm:$0xff] %v5928_v41  ;;  %v8722_v8 = vunpack.c.l.bf16 %v5928_v41 }
  0xf7   :  { %8931 = vst [vmem:[#allocation67_spill] sm:$0xff] %v5913_v4  ;;  %8932 = vst [vmem:[#allocation68_spill] sm:$0xff] %v5915_v55  ;;  %v8719_v55 = vunpack.c.h.bf16 %v5928_v41 }
  0xf8   :  { %v653_v31 = vsel %vm274_vm0, %v8722_v8, -inf  ;;  %v8945_v8 = vunpack.c.l.bf16 %v5007_v0 }
  0xf9   :  { %645 = vmax.xlane.f32.xlu1 %v644_v29  ;;  %642 = vmax.xlane.f32.xlu0 %v641_v16 }
  0xfa   :  { %v5930_v37 = vpop.xlane.xlu1 %441  ;;  %v5932_v4 = vpop.xlane.xlu0 %438 }
  0xfb   :  { %8934 = vst [vmem:[#allocation70_spill] sm:$0xff] %v5930_v37  ;;  %8935 = vst [vmem:[#allocation71_spill] sm:$0xff] %v5932_v4  ;;  %v656_v37 = vsel %vm274_vm0, %v8719_v55, -inf }
  0xfd   :  { %651 = vmax.xlane.f32.xlu1 %v650_v22  ;;  %648 = vmax.xlane.f32.xlu0 %v647_v32  ;;  %v8940_v32 = vunpack.c.h.bf16 %v5012_v1 }
  0xfe   :  { %v5942_v29 = vpop.xlane.xlu1 %447  ;;  %v5944_v16 = vpop.xlane.xlu0 %444 }
  0xff   :  { %8936 = vst [vmem:[#allocation72_spill] sm:$0xff] %v5942_v29  ;;  %8937 = vst [vmem:[#allocation73_spill] sm:$0xff] %v5944_v16  ;;  %v662_v22 = vsel %vm274_vm0, %v8940_v32, 0.0  ;;  %v8941_v29 = vunpack.c.l.bf16 %v5012_v1 }
 0x101   :  { %657 = vmax.xlane.f32.xlu1 %v656_v37  ;;  %654 = vmax.xlane.f32.xlu0 %v653_v31  ;;  %v659_v16 = vsel %vm274_vm0, %v8941_v29, 0.0  ;;  %v8944_v31 = vunpack.c.h.bf16 %v5007_v0  ;;  %v8948_v29 = vunpack.c.h.bf16 %v5021_v6 }
 0x102   :  { %v5952_v44 = vpop.xlane.xlu1 %453  ;;  %v5954_v4 = vpop.xlane.xlu0 %450 }
 0x103   :  { %8938 = vst [vmem:[#allocation74_spill] sm:$0xff] %v5952_v44  ;;  %8939 = vst [vmem:[#allocation75_spill] sm:$0xff] %v5954_v4  ;;  %v668_v37 = vsel %vm274_vm0, %v8944_v31, 0.0  ;;  %v665_v44 = vsel %vm274_vm0, %v8945_v8, 0.0 }
 0x105   :  { %663 = vadd.xlane.f32.xlu1 %v662_v22  ;;  %660 = vadd.xlane.f32.xlu0 %v659_v16  ;;  %v674_v16 = vsel %vm274_vm0, %v8948_v29, 0.0  ;;  %v8949_v22 = vunpack.c.l.bf16 %v5021_v6 }
 0x106   :  { %v5962_v55 = vpop.xlane.xlu1 %459  ;;  %v5964_v41 = vpop.xlane.xlu0 %456 }
 0x107   :  { %8942 = vst [vmem:[#allocation76_spill] sm:$0xff] %v5962_v55  ;;  %8943 = vst [vmem:[#allocation77_spill] sm:$0xff] %v5964_v41  ;;  %v671_v55 = vsel %vm274_vm0, %v8949_v22, 0.0  ;;  %v8953_v22 = vunpack.c.l.bf16 %v5053_v18 }
 0x109   :  { %669 = vadd.xlane.f32.xlu1 %v668_v37  ;;  %666 = vadd.xlane.f32.xlu0 %v665_v44  ;;  %v8950_v44 = vunpack.c.h.bf16 %v5040_v13  ;;  %v8951_v37 = vunpack.c.l.bf16 %v5040_v13 }
 0x10a   :  { %v5972_v32 = vpop.xlane.xlu1 %465  ;;  %v5974_v1 = vpop.xlane.xlu0 %462 }
 0x10b   :  { %8946 = vst [vmem:[#allocation78_spill] sm:$0xff] %v5972_v32  ;;  %8947 = vst [vmem:[#allocation79_spill] sm:$0xff] %v5974_v1  ;;  %v680_v8 = vsel %vm274_vm0, %v8950_v44, 0.0  ;;  %v677_v32 = vsel %vm274_vm0, %v8951_v37, 0.0  ;;  %v683_v1 = vsel %vm274_vm0, %v8953_v22, 0.0  ;;  %v8955_v37 = vunpack.c.l.bf16 %v5066_v23 }
 0x10c   :  { %v8958_v22 = vunpack.c.l.bf16 %v5079_v28 }
 0x10d   :  { %675 = vadd.xlane.f32.xlu1 %v674_v16  ;;  %672 = vadd.xlane.f32.xlu0 %v671_v55  ;;  %v8952_v55 = vunpack.c.h.bf16 %v5053_v18  ;;  %v689_v41 = vsel %vm274_vm0, %v8955_v37, 0.0  ;;  %v8961_v37 = vunpack.c.l.bf16 %v5092_v33 }
 0x10e   :  { %v5982_v31 = vpop.xlane.xlu1 %471  ;;  %v5984_v0 = vpop.xlane.xlu0 %468  ;;  %v695_v4 = vsel %vm274_vm0, %v8958_v22, 0.0  ;;  %v8964_v22 = vunpack.c.l.bf16 %v5105_v38 }
 0x10f   :  { %v686_v16 = vsel %vm274_vm0, %v8952_v55, 0.0 }
 0x111   :  { %681 = vadd.xlane.f32.xlu1 %v680_v8  ;;  %678 = vadd.xlane.f32.xlu0 %v677_v32  ;;  %v8954_v32 = vunpack.c.h.bf16 %v5066_v23 }
 0x112   :  { %v5992_v29 = vpop.xlane.xlu1 %477  ;;  %v5994_v6 = vpop.xlane.xlu0 %474 }
 0x113   :  { %v692_v8 = vsel %vm274_vm0, %v8954_v32, 0.0 }
 0x115   :  { %687 = vadd.xlane.f32.xlu1 %v686_v16  ;;  %684 = vadd.xlane.f32.xlu0 %v683_v1  ;;  %v8957_v1 = vunpack.c.h.bf16 %v5079_v28 }
 0x116   :  { %v6002_v44 = vpop.xlane.xlu1 %483  ;;  %v6004_v13 = vpop.xlane.xlu0 %480 }
 0x117   :  { %v698_v16 = vsel %vm274_vm0, %v8957_v1, 0.0 }
 0x119   :  { %693 = vadd.xlane.f32.xlu1 %v692_v8  ;;  %690 = vadd.xlane.f32.xlu0 %v689_v41  ;;  %v8960_v41 = vunpack.c.h.bf16 %v5092_v33 }
 0x11a   :  { %v6012_v55 = vpop.xlane.xlu1 %489  ;;  %v6014_v18 = vpop.xlane.xlu0 %486 }
 0x11b   :  { %8956 = vst [vmem:[#allocation80_spill] sm:$0xff] %v6014_v18  ;;  %v704_v8 = vsel %vm274_vm0, %v8960_v41, 0.0  ;;  %v701_v18 = vsel %vm274_vm0, %v8961_v37, 0.0  ;;  %v8967_v37 = vunpack.c.l.bf16 %v5118_v43 }
 0x11d   :  { %699 = vadd.xlane.f32.xlu1 %v698_v16  ;;  %696 = vadd.xlane.f32.xlu0 %v695_v4  ;;  %v8963_v4 = vunpack.c.h.bf16 %v5105_v38 }
 0x11e   :  { %v6022_v32 = vpop.xlane.xlu1 %495  ;;  %v6024_v23 = vpop.xlane.xlu0 %492 }
 0x11f   :  { %8959 = vst [vmem:[#allocation81_spill] sm:$0xff] %v6024_v23  ;;  %v710_v16 = vsel %vm274_vm0, %v8963_v4, 0.0  ;;  %v707_v23 = vsel %vm274_vm0, %v8964_v22, 0.0  ;;  %v8970_v22 = vunpack.c.l.bf16 %v5131_v48 }
 0x121   :  { %705 = vadd.xlane.f32.xlu1 %v704_v8  ;;  %702 = vadd.xlane.f32.xlu0 %v701_v18  ;;  %v8966_v18 = vunpack.c.h.bf16 %v5118_v43 }
 0x122   :  { %v6032_v1 = vpop.xlane.xlu1 %501  ;;  %v6034_v28 = vpop.xlane.xlu0 %498 }
 0x123   :  { %8962 = vst [vmem:[#allocation82_spill] sm:$0xff] %v6034_v28  ;;  %v716_v8 = vsel %vm274_vm0, %v8966_v18, 0.0  ;;  %v713_v28 = vsel %vm274_vm0, %v8967_v37, 0.0  ;;  %v8973_v37 = vunpack.c.l.bf16 %v5144_v53 }
 0x125   :  { %711 = vadd.xlane.f32.xlu1 %v710_v16  ;;  %708 = vadd.xlane.f32.xlu0 %v707_v23  ;;  %v8969_v23 = vunpack.c.h.bf16 %v5131_v48 }
 0x126   :  { %v6042_v41 = vpop.xlane.xlu1 %507  ;;  %v6044_v33 = vpop.xlane.xlu0 %504 }
 0x127   :  { %8965 = vst [vmem:[#allocation83_spill] sm:$0xff] %v6044_v33  ;;  %v722_v16 = vsel %vm274_vm0, %v8969_v23, 0.0  ;;  %v719_v33 = vsel %vm274_vm0, %v8970_v22, 0.0  ;;  %v8977_v22 = vunpack.c.l.bf16 %v5157_v58 }
 0x129   :  { %717 = vadd.xlane.f32.xlu1 %v716_v8  ;;  %714 = vadd.xlane.f32.xlu0 %v713_v28  ;;  %v8972_v28 = vunpack.c.h.bf16 %v5144_v53 }
 0x12a   :  { %v6052_v4 = vpop.xlane.xlu1 %513  ;;  %v6054_v38 = vpop.xlane.xlu0 %510 }
 0x12b   :  { %8968 = vst [vmem:[#allocation84_spill] sm:$0xff] %v6054_v38  ;;  %v728_v8 = vsel %vm274_vm0, %v8972_v28, 0.0  ;;  %v725_v38 = vsel %vm274_vm0, %v8973_v37, 0.0  ;;  %v8981_v37 = vunpack.c.l.bf16 %v5170_v63 }
 0x12d   :  { %723 = vadd.xlane.f32.xlu1 %v722_v16  ;;  %720 = vadd.xlane.f32.xlu0 %v719_v33  ;;  %v8976_v33 = vunpack.c.h.bf16 %v5157_v58 }
 0x12e   :  { %v6062_v18 = vpop.xlane.xlu1 %519  ;;  %v6064_v43 = vpop.xlane.xlu0 %516 }
 0x12f   :  { %8971 = vst [vmem:[#allocation85_spill] sm:$0xff] %v6064_v43  ;;  %v734_v16 = vsel %vm274_vm0, %v8976_v33, 0.0  ;;  %v731_v43 = vsel %vm274_vm0, %v8977_v22, 0.0  ;;  %v8985_v22 = vunpack.c.l.bf16 %v5183_v14 }
 0x131   :  { %729 = vadd.xlane.f32.xlu1 %v728_v8  ;;  %726 = vadd.xlane.f32.xlu0 %v725_v38  ;;  %v8980_v38 = vunpack.c.h.bf16 %v5170_v63 }
 0x132   :  { %v6072_v23 = vpop.xlane.xlu1 %525  ;;  %v6074_v48 = vpop.xlane.xlu0 %522 }
 0x133   :  { %8974 = vst [vmem:[#allocation86_spill] sm:$0xff] %v6072_v23  ;;  %8975 = vst [vmem:[#allocation87_spill] sm:$0xff] %v6074_v48  ;;  %v740_v8 = vsel %vm274_vm0, %v8980_v38, 0.0  ;;  %v737_v48 = vsel %vm274_vm0, %v8981_v37, 0.0  ;;  %v8989_v37 = vunpack.c.l.bf16 %v5196_v25 }
 0x135   :  { %735 = vadd.xlane.f32.xlu1 %v734_v16  ;;  %732 = vadd.xlane.f32.xlu0 %v731_v43  ;;  %v8984_v43 = vunpack.c.h.bf16 %v5183_v14 }
 0x136   :  { %v6082_v28 = vpop.xlane.xlu1 %531  ;;  %v6084_v53 = vpop.xlane.xlu0 %528 }
 0x137   :  { %8978 = vst [vmem:[#allocation88_spill] sm:$0xff] %v6082_v28  ;;  %8979 = vst [vmem:[#allocation89_spill] sm:$0xff] %v6084_v53  ;;  %v746_v16 = vsel %vm274_vm0, %v8984_v43, 0.0  ;;  %v743_v53 = vsel %vm274_vm0, %v8985_v22, 0.0  ;;  %v8993_v22 = vunpack.c.l.bf16 %v5209_v39 }
 0x139   :  { %741 = vadd.xlane.f32.xlu1 %v740_v8  ;;  %738 = vadd.xlane.f32.xlu0 %v737_v48  ;;  %v8988_v48 = vunpack.c.h.bf16 %v5196_v25 }
 0x13a   :  { %v6092_v33 = vpop.xlane.xlu1 %537  ;;  %v6094_v58 = vpop.xlane.xlu0 %534 }
 0x13b   :  { %8982 = vst [vmem:[#allocation90_spill] sm:$0xff] %v6092_v33  ;;  %8983 = vst [vmem:[#allocation91_spill] sm:$0xff] %v6094_v58  ;;  %v752_v8 = vsel %vm274_vm0, %v8988_v48, 0.0  ;;  %v749_v58 = vsel %vm274_vm0, %v8989_v37, 0.0  ;;  %v8997_v37 = vunpack.c.l.bf16 %v5222_v50  ;;  %v9164_v33 = vld [vmem:[#allocation8_spill] sm:$0xff] }
 0x13d   :  { %747 = vadd.xlane.f32.xlu1 %v746_v16  ;;  %744 = vadd.xlane.f32.xlu0 %v743_v53  ;;  %v8992_v53 = vunpack.c.h.bf16 %v5209_v39 }
 0x13e   :  { %v6102_v38 = vpop.xlane.xlu1 %543  ;;  %v6104_v63 = vpop.xlane.xlu0 %540 }
 0x13f   :  { %8986 = vst [vmem:[#allocation92_spill] sm:$0xff] %v6102_v38  ;;  %8987 = vst [vmem:[#allocation93_spill] sm:$0xff] %v6104_v63  ;;  %v758_v16 = vsel %vm274_vm0, %v8992_v53, 0.0  ;;  %v755_v63 = vsel %vm274_vm0, %v8993_v22, 0.0  ;;  %v9001_v22 = vunpack.c.l.bf16 %v5235_v7 }
 0x141   :  { %753 = vadd.xlane.f32.xlu1 %v752_v8  ;;  %750 = vadd.xlane.f32.xlu0 %v749_v58  ;;  %v8996_v58 = vunpack.c.h.bf16 %v5222_v50 }
 0x142   :  { %v6112_v43 = vpop.xlane.xlu1 %549  ;;  %v6114_v14 = vpop.xlane.xlu0 %546 }
 0x143   :  { %8990 = vst [vmem:[#allocation94_spill] sm:$0xff] %v6112_v43  ;;  %8991 = vst [vmem:[#allocation95_spill] sm:$0xff] %v6114_v14  ;;  %v764_v8 = vsel %vm274_vm0, %v8996_v58, 0.0  ;;  %v761_v14 = vsel %vm274_vm0, %v8997_v37, 0.0  ;;  %v9005_v37 = vunpack.c.l.bf16 %v5248_v30 }
 0x145   :  { %759 = vadd.xlane.f32.xlu1 %v758_v16  ;;  %756 = vadd.xlane.f32.xlu0 %v755_v63  ;;  %v9000_v63 = vunpack.c.h.bf16 %v5235_v7 }
 0x146   :  { %v6122_v48 = vpop.xlane.xlu1 %555  ;;  %v6124_v25 = vpop.xlane.xlu0 %552 }
 0x147   :  { %8994 = vst [vmem:[#allocation96_spill] sm:$0xff] %v6122_v48  ;;  %8995 = vst [vmem:[#allocation97_spill] sm:$0xff] %v6124_v25  ;;  %v770_v16 = vsel %vm274_vm0, %v9000_v63, 0.0  ;;  %v767_v25 = vsel %vm274_vm0, %v9001_v22, 0.0  ;;  %v9009_v22 = vunpack.c.l.bf16 %v5261_v60 }
 0x149   :  { %765 = vadd.xlane.f32.xlu1 %v764_v8  ;;  %762 = vadd.xlane.f32.xlu0 %v761_v14  ;;  %v9004_v14 = vunpack.c.h.bf16 %v5248_v30 }
 0x14a   :  { %v6132_v53 = vpop.xlane.xlu1 %561  ;;  %v6134_v39 = vpop.xlane.xlu0 %558 }
 0x14b   :  { %8998 = vst [vmem:[#allocation98_spill] sm:$0xff] %v6132_v53  ;;  %8999 = vst [vmem:[#allocation99_spill] sm:$0xff] %v6134_v39  ;;  %v776_v8 = vsel %vm274_vm0, %v9004_v14, 0.0  ;;  %v773_v39 = vsel %vm274_vm0, %v9005_v37, 0.0  ;;  %v9013_v37 = vunpack.c.l.bf16 %v5274_v59 }
 0x14d   :  { %771 = vadd.xlane.f32.xlu1 %v770_v16  ;;  %768 = vadd.xlane.f32.xlu0 %v767_v25  ;;  %v9008_v25 = vunpack.c.h.bf16 %v5261_v60 }
 0x14e   :  { %v6142_v58 = vpop.xlane.xlu1 %567  ;;  %v6144_v50 = vpop.xlane.xlu0 %564 }
 0x14f   :  { %9002 = vst [vmem:[#allocation100_spill] sm:$0xff] %v6142_v58  ;;  %9003 = vst [vmem:[#allocation101_spill] sm:$0xff] %v6144_v50  ;;  %v782_v16 = vsel %vm274_vm0, %v9008_v25, 0.0  ;;  %v779_v50 = vsel %vm274_vm0, %v9009_v22, 0.0  ;;  %v9017_v22 = vunpack.c.l.bf16 %v5287_v49 }
 0x151   :  { %777 = vadd.xlane.f32.xlu1 %v776_v8  ;;  %774 = vadd.xlane.f32.xlu0 %v773_v39  ;;  %v9012_v39 = vunpack.c.h.bf16 %v5274_v59 }
 0x152   :  { %v6152_v63 = vpop.xlane.xlu1 %573  ;;  %v6154_v7 = vpop.xlane.xlu0 %570 }
 0x153   :  { %9006 = vst [vmem:[#allocation102_spill] sm:$0xff] %v6152_v63  ;;  %9007 = vst [vmem:[#allocation103_spill] sm:$0xff] %v6154_v7  ;;  %v788_v8 = vsel %vm274_vm0, %v9012_v39, 0.0  ;;  %v785_v7 = vsel %vm274_vm0, %v9013_v37, 0.0  ;;  %v9021_v37 = vunpack.c.l.bf16 %v5300_v45 }
 0x155   :  { %783 = vadd.xlane.f32.xlu1 %v782_v16  ;;  %780 = vadd.xlane.f32.xlu0 %v779_v50  ;;  %v9016_v50 = vunpack.c.h.bf16 %v5287_v49 }
 0x156   :  { %v6162_v14 = vpop.xlane.xlu1 %579  ;;  %v6164_v30 = vpop.xlane.xlu0 %576 }
 0x157   :  { %9010 = vst [vmem:[#allocation104_spill] sm:$0xff] %v6162_v14  ;;  %9011 = vst [vmem:[#allocation105_spill] sm:$0xff] %v6164_v30  ;;  %v794_v16 = vsel %vm274_vm0, %v9016_v50, 0.0  ;;  %v791_v30 = vsel %vm274_vm0, %v9017_v22, 0.0  ;;  %v9025_v22 = vunpack.c.l.bf16 %v5313_v35 }
 0x159   :  { %789 = vadd.xlane.f32.xlu1 %v788_v8  ;;  %786 = vadd.xlane.f32.xlu0 %v785_v7  ;;  %v9020_v7 = vunpack.c.h.bf16 %v5300_v45 }
 0x15a   :  { %v6172_v25 = vpop.xlane.xlu1 %585  ;;  %v6174_v60 = vpop.xlane.xlu0 %582 }
 0x15b   :  { %9014 = vst [vmem:[#allocation106_spill] sm:$0xff] %v6172_v25  ;;  %9015 = vst [vmem:[#allocation107_spill] sm:$0xff] %v6174_v60  ;;  %v800_v8 = vsel %vm274_vm0, %v9020_v7, 0.0  ;;  %v797_v60 = vsel %vm274_vm0, %v9021_v37, 0.0  ;;  %v9029_v37 = vunpack.c.l.bf16 %v5326_v34 }
 0x15d   :  { %795 = vadd.xlane.f32.xlu1 %v794_v16  ;;  %792 = vadd.xlane.f32.xlu0 %v791_v30  ;;  %v9024_v30 = vunpack.c.h.bf16 %v5313_v35 }
 0x15e   :  { %v6182_v39 = vpop.xlane.xlu1 %591  ;;  %v6184_v59 = vpop.xlane.xlu0 %588 }
 0x15f   :  { %9018 = vst [vmem:[#allocation108_spill] sm:$0xff] %v6182_v39  ;;  %9019 = vst [vmem:[#allocation109_spill] sm:$0xff] %v6184_v59  ;;  %v806_v16 = vsel %vm274_vm0, %v9024_v30, 0.0  ;;  %v803_v59 = vsel %vm274_vm0, %v9025_v22, 0.0  ;;  %v9033_v22 = vunpack.c.l.bf16 %v5339_v24 }
 0x161   :  { %801 = vadd.xlane.f32.xlu1 %v800_v8  ;;  %798 = vadd.xlane.f32.xlu0 %v797_v60  ;;  %v9028_v60 = vunpack.c.h.bf16 %v5326_v34 }
 0x162   :  { %v6192_v50 = vpop.xlane.xlu1 %597  ;;  %v6194_v49 = vpop.xlane.xlu0 %594 }
 0x163   :  { %9022 = vst [vmem:[#allocation110_spill] sm:$0xff] %v6192_v50  ;;  %9023 = vst [vmem:[#allocation111_spill] sm:$0xff] %v6194_v49  ;;  %v812_v8 = vsel %vm274_vm0, %v9028_v60, 0.0  ;;  %v809_v49 = vsel %vm274_vm0, %v9029_v37, 0.0  ;;  %v9037_v37 = vunpack.c.l.bf16 %v5352_v20 }
 0x165   :  { %807 = vadd.xlane.f32.xlu1 %v806_v16  ;;  %804 = vadd.xlane.f32.xlu0 %v803_v59  ;;  %v9032_v59 = vunpack.c.h.bf16 %v5339_v24 }
 0x166   :  { %v6202_v7 = vpop.xlane.xlu1 %603  ;;  %v6204_v45 = vpop.xlane.xlu0 %600 }
 0x167   :  { %9026 = vst [vmem:[#allocation112_spill] sm:$0xff] %v6202_v7  ;;  %9027 = vst [vmem:[#allocation113_spill] sm:$0xff] %v6204_v45  ;;  %v818_v16 = vsel %vm274_vm0, %v9032_v59, 0.0  ;;  %v815_v45 = vsel %vm274_vm0, %v9033_v22, 0.0  ;;  %v9041_v22 = vunpack.c.l.bf16 %v5365_v10 }
 0x169   :  { %813 = vadd.xlane.f32.xlu1 %v812_v8  ;;  %810 = vadd.xlane.f32.xlu0 %v809_v49  ;;  %v9036_v49 = vunpack.c.h.bf16 %v5352_v20 }
 0x16a   :  { %v6212_v30 = vpop.xlane.xlu1 %609  ;;  %v6214_v35 = vpop.xlane.xlu0 %606 }
 0x16b   :  { %9030 = vst [vmem:[#allocation114_spill] sm:$0xff] %v6212_v30  ;;  %9031 = vst [vmem:[#allocation115_spill] sm:$0xff] %v6214_v35  ;;  %v824_v8 = vsel %vm274_vm0, %v9036_v49, 0.0  ;;  %v821_v35 = vsel %vm274_vm0, %v9037_v37, 0.0  ;;  %v9045_v37 = vunpack.c.l.bf16 %v5378_v9 }
 0x16d   :  { %819 = vadd.xlane.f32.xlu1 %v818_v16  ;;  %816 = vadd.xlane.f32.xlu0 %v815_v45  ;;  %v9040_v45 = vunpack.c.h.bf16 %v5365_v10 }
 0x16e   :  { %v6222_v60 = vpop.xlane.xlu1 %615  ;;  %v6224_v34 = vpop.xlane.xlu0 %612 }
 0x16f   :  { %9034 = vst [vmem:[#allocation116_spill] sm:$0xff] %v6222_v60  ;;  %9035 = vst [vmem:[#allocation117_spill] sm:$0xff] %v6224_v34  ;;  %v830_v16 = vsel %vm274_vm0, %v9040_v45, 0.0  ;;  %v827_v34 = vsel %vm274_vm0, %v9041_v22, 0.0  ;;  %v9049_v22 = vunpack.c.l.bf16 %v5391_v62 }
 0x171   :  { %825 = vadd.xlane.f32.xlu1 %v824_v8  ;;  %822 = vadd.xlane.f32.xlu0 %v821_v35  ;;  %v9044_v35 = vunpack.c.h.bf16 %v5378_v9 }
 0x172   :  { %v6232_v59 = vpop.xlane.xlu1 %621  ;;  %v6234_v24 = vpop.xlane.xlu0 %618 }
 0x173   :  { %9038 = vst [vmem:[#allocation118_spill] sm:$0xff] %v6232_v59  ;;  %9039 = vst [vmem:[#allocation119_spill] sm:$0xff] %v6234_v24  ;;  %v836_v8 = vsel %vm274_vm0, %v9044_v35, 0.0  ;;  %v833_v24 = vsel %vm274_vm0, %v9045_v37, 0.0  ;;  %v9053_v37 = vunpack.c.l.bf16 %v5404_v61 }
 0x175   :  { %831 = vadd.xlane.f32.xlu1 %v830_v16  ;;  %828 = vadd.xlane.f32.xlu0 %v827_v34  ;;  %v9048_v34 = vunpack.c.h.bf16 %v5391_v62 }
 0x176   :  { %v6242_v49 = vpop.xlane.xlu1 %627  ;;  %v6244_v20 = vpop.xlane.xlu0 %624 }
 0x177   :  { %9042 = vst [vmem:[#allocation120_spill] sm:$0xff] %v6242_v49  ;;  %9043 = vst [vmem:[#allocation121_spill] sm:$0xff] %v6244_v20  ;;  %v842_v16 = vsel %vm274_vm0, %v9048_v34, 0.0  ;;  %v839_v20 = vsel %vm274_vm0, %v9049_v22, 0.0  ;;  %v9057_v22 = vunpack.c.l.bf16 %v5417_v57 }
 0x179   :  { %837 = vadd.xlane.f32.xlu1 %v836_v8  ;;  %834 = vadd.xlane.f32.xlu0 %v833_v24  ;;  %v9052_v24 = vunpack.c.h.bf16 %v5404_v61 }
 0x17a   :  { %v6252_v45 = vpop.xlane.xlu1 %633  ;;  %v6254_v10 = vpop.xlane.xlu0 %630 }
 0x17b   :  { %9046 = vst [vmem:[#allocation122_spill] sm:$0xff] %v6252_v45  ;;  %9047 = vst [vmem:[#allocation123_spill] sm:$0xff] %v6254_v10  ;;  %v848_v8 = vsel %vm274_vm0, %v9052_v24, 0.0  ;;  %v845_v10 = vsel %vm274_vm0, %v9053_v37, 0.0  ;;  %v9061_v37 = vunpack.c.l.bf16 %v5430_v56 }
 0x17d   :  { %843 = vadd.xlane.f32.xlu1 %v842_v16  ;;  %840 = vadd.xlane.f32.xlu0 %v839_v20  ;;  %v9056_v20 = vunpack.c.h.bf16 %v5417_v57 }
 0x17e   :  { %v6262_v35 = vpop.xlane.xlu1 %639  ;;  %v6264_v9 = vpop.xlane.xlu0 %636 }
 0x17f   :  { %9050 = vst [vmem:[#allocation124_spill] sm:$0xff] %v6262_v35  ;;  %9051 = vst [vmem:[#allocation125_spill] sm:$0xff] %v6264_v9  ;;  %v854_v16 = vsel %vm274_vm0, %v9056_v20, 0.0  ;;  %v851_v9 = vsel %vm274_vm0, %v9057_v22, 0.0  ;;  %v9065_v22 = vunpack.c.l.bf16 %v5443_v52 }
 0x181   :  { %849 = vadd.xlane.f32.xlu1 %v848_v8  ;;  %846 = vadd.xlane.f32.xlu0 %v845_v10  ;;  %v9060_v10 = vunpack.c.h.bf16 %v5430_v56 }
 0x182   :  { %v6272_v34 = vpop.xlane.xlu1 %645  ;;  %v6274_v62 = vpop.xlane.xlu0 %642 }
 0x183   :  { %9054 = vst [vmem:[#allocation126_spill] sm:$0xff] %v6272_v34  ;;  %9055 = vst [vmem:[#allocation127_spill] sm:$0xff] %v6274_v62  ;;  %v860_v8 = vsel %vm274_vm0, %v9060_v10, 0.0  ;;  %v857_v62 = vsel %vm274_vm0, %v9061_v37, 0.0  ;;  %v9067_v37 = vunpack.c.l.bf16 %v5456_v51 }
 0x185   :  { %855 = vadd.xlane.f32.xlu1 %v854_v16  ;;  %852 = vadd.xlane.f32.xlu0 %v851_v9  ;;  %v9064_v9 = vunpack.c.h.bf16 %v5443_v52 }
 0x186   :  { %v6282_v24 = vpop.xlane.xlu1 %651  ;;  %v6284_v61 = vpop.xlane.xlu0 %648 }
 0x187   :  { %9058 = vst [vmem:[#allocation128_spill] sm:$0xff] %v6282_v24  ;;  %9059 = vst [vmem:[#allocation129_spill] sm:$0xff] %v6284_v61  ;;  %v866_v16 = vsel %vm274_vm0, %v9064_v9, 0.0  ;;  %v863_v61 = vsel %vm274_vm0, %v9065_v22, 0.0  ;;  %v9069_v22 = vunpack.c.l.bf16 %v5469_v47 }
 0x189   :  { %861 = vadd.xlane.f32.xlu1 %v860_v8  ;;  %858 = vadd.xlane.f32.xlu0 %v857_v62  ;;  %v9066_v62 = vunpack.c.h.bf16 %v5456_v51 }
 0x18a   :  { %v6292_v20 = vpop.xlane.xlu1 %657  ;;  %v6294_v57 = vpop.xlane.xlu0 %654 }
 0x18b   :  { %9062 = vst [vmem:[#allocation130_spill] sm:$0xff] %v6292_v20  ;;  %9063 = vst [vmem:[#allocation131_spill] sm:$0xff] %v6294_v57  ;;  %v872_v8 = vsel %vm274_vm0, %v9066_v62, 0.0  ;;  %v869_v57 = vsel %vm274_vm0, %v9067_v37, 0.0  ;;  %v875_v20 = vsel %vm274_vm0, %v9069_v22, 0.0  ;;  %v9071_v37 = vunpack.c.l.bf16 %v5486_v40 }
 0x18c   :  { %v9073_v22 = vunpack.c.l.bf16 %v5503_v19 }
 0x18d   :  { %867 = vadd.xlane.f32.xlu1 %v866_v16  ;;  %864 = vadd.xlane.f32.xlu0 %v863_v61  ;;  %v9068_v61 = vunpack.c.h.bf16 %v5469_v47  ;;  %v881_v24 = vsel %vm274_vm0, %v9071_v37, 0.0  ;;  %v9075_v37 = vunpack.c.l.bf16 %v5520_v54 }
 0x18e   :  { %v6302_v10 = vpop.xlane.xlu1 %663  ;;  %v6304_v56 = vpop.xlane.xlu0 %660  ;;  %v887_v34 = vsel %vm274_vm0, %v9073_v22, 0.0  ;;  %v9077_v22 = vunpack.c.l.bf16 %v5537_v42 }
 0x18f   :  { %v878_v16 = vsel %vm274_vm0, %v9068_v61, 0.0  ;;  %v893_v35 = vsel %vm274_vm0, %v9075_v37, 0.0  ;;  %v9079_v37 = vunpack.c.l.bf16 %v5554_v36 }
 0x190   :  { %v899_v45 = vsel %vm274_vm0, %v9077_v22, 0.0  ;;  %v9081_v22 = vunpack.c.l.bf16 %v5571_v27 }
 0x191   :  { %873 = vadd.xlane.f32.xlu1 %v872_v8  ;;  %870 = vadd.xlane.f32.xlu0 %v869_v57  ;;  %v9070_v57 = vunpack.c.h.bf16 %v5486_v40  ;;  %v905_v49 = vsel %vm274_vm0, %v9079_v37, 0.0  ;;  %v9083_v37 = vunpack.c.l.bf16 %v5588_v21 }
 0x192   :  { %v6312_v9 = vpop.xlane.xlu1 %669  ;;  %v6314_v52 = vpop.xlane.xlu0 %666  ;;  %v911_v59 = vsel %vm274_vm0, %v9081_v22, 0.0  ;;  %v9085_v22 = vunpack.c.l.bf16 %v5605_v12 }
 0x193   :  { %v884_v8 = vsel %vm274_vm0, %v9070_v57, 0.0  ;;  %v917_v60 = vsel %vm274_vm0, %v9083_v37, 0.0  ;;  %v9087_v37 = vunpack.c.l.bf16 %v5622_v2 }
 0x194   :  { %v923_v30 = vsel %vm274_vm0, %v9085_v22, 0.0  ;;  %v9089_v22 = vunpack.c.l.bf16 %v5639_v5 }
 0x195   :  { %879 = vadd.xlane.f32.xlu1 %v878_v16  ;;  %876 = vadd.xlane.f32.xlu0 %v875_v20  ;;  %v9072_v20 = vunpack.c.h.bf16 %v5503_v19  ;;  %v929_v7 = vsel %vm274_vm0, %v9087_v37, 0.0  ;;  %v9091_v37 = vunpack.c.l.bf16 %v5656_v11 }
 0x196   :  { %v6322_v62 = vpop.xlane.xlu1 %675  ;;  %v6324_v51 = vpop.xlane.xlu0 %672  ;;  %v935_v50 = vsel %vm274_vm0, %v9089_v22, 0.0  ;;  %v9093_v22 = vunpack.c.l.bf16 %v5673_v46 }
 0x197   :  { %v890_v16 = vsel %vm274_vm0, %v9072_v20, 0.0  ;;  %v941_v39 = vsel %vm274_vm0, %v9091_v37, 0.0  ;;  %v9097_v37 = vunpack.c.l.bf16 %v5690_v17 }
 0x198   :  { %v947_v25 = vsel %vm274_vm0, %v9093_v22, 0.0  ;;  %v9101_v22 = vunpack.c.l.bf16 %v5707_v3 }
 0x199   :  { %885 = vadd.xlane.f32.xlu1 %v884_v8  ;;  %882 = vadd.xlane.f32.xlu0 %v881_v24  ;;  %v9074_v24 = vunpack.c.h.bf16 %v5520_v54  ;;  %v953_v14 = vsel %vm274_vm0, %v9097_v37, 0.0  ;;  %v9105_v37 = vunpack.c.l.bf16 %v5724_v26 }
 0x19a   :  { %v6332_v61 = vpop.xlane.xlu1 %681  ;;  %v6334_v47 = vpop.xlane.xlu0 %678  ;;  %v959_v63 = vsel %vm274_vm0, %v9101_v22, 0.0 }
 0x19b   :  { %v896_v8 = vsel %vm274_vm0, %v9074_v24, 0.0  ;;  %v965_v58 = vsel %vm274_vm0, %v9105_v37, 0.0 }
 0x19d   :  { %891 = vadd.xlane.f32.xlu1 %v890_v16  ;;  %888 = vadd.xlane.f32.xlu0 %v887_v34  ;;  %v9076_v34 = vunpack.c.h.bf16 %v5537_v42 }
 0x19e   :  { %v6342_v57 = vpop.xlane.xlu1 %687  ;;  %v6344_v40 = vpop.xlane.xlu0 %684 }
 0x19f   :  { %v902_v16 = vsel %vm274_vm0, %v9076_v34, 0.0 }
 0x1a1   :  { %897 = vadd.xlane.f32.xlu1 %v896_v8  ;;  %894 = vadd.xlane.f32.xlu0 %v893_v35  ;;  %v9078_v35 = vunpack.c.h.bf16 %v5554_v36 }
 0x1a2   :  { %v6352_v20 = vpop.xlane.xlu1 %693  ;;  %v6354_v19 = vpop.xlane.xlu0 %690 }
 0x1a3   :  { %v908_v8 = vsel %vm274_vm0, %v9078_v35, 0.0 }
 0x1a5   :  { %903 = vadd.xlane.f32.xlu1 %v902_v16  ;;  %900 = vadd.xlane.f32.xlu0 %v899_v45  ;;  %v9080_v45 = vunpack.c.h.bf16 %v5571_v27 }
 0x1a6   :  { %v6362_v24 = vpop.xlane.xlu1 %699  ;;  %v6364_v54 = vpop.xlane.xlu0 %696 }
 0x1a7   :  { %v914_v16 = vsel %vm274_vm0, %v9080_v45, 0.0 }
 0x1a9   :  { %909 = vadd.xlane.f32.xlu1 %v908_v8  ;;  %906 = vadd.xlane.f32.xlu0 %v905_v49  ;;  %v9082_v49 = vunpack.c.h.bf16 %v5588_v21 }
 0x1aa   :  { %v6372_v34 = vpop.xlane.xlu1 %705  ;;  %v6374_v42 = vpop.xlane.xlu0 %702 }
 0x1ab   :  { %v920_v8 = vsel %vm274_vm0, %v9082_v49, 0.0 }
 0x1ad   :  { %915 = vadd.xlane.f32.xlu1 %v914_v16  ;;  %912 = vadd.xlane.f32.xlu0 %v911_v59  ;;  %v9084_v59 = vunpack.c.h.bf16 %v5605_v12 }
 0x1ae   :  { %v6382_v35 = vpop.xlane.xlu1 %711  ;;  %v6384_v36 = vpop.xlane.xlu0 %708 }
 0x1af   :  { %v926_v16 = vsel %vm274_vm0, %v9084_v59, 0.0 }
 0x1b1   :  { %921 = vadd.xlane.f32.xlu1 %v920_v8  ;;  %918 = vadd.xlane.f32.xlu0 %v917_v60  ;;  %v9086_v60 = vunpack.c.h.bf16 %v5622_v2 }
 0x1b2   :  { %v6392_v45 = vpop.xlane.xlu1 %717  ;;  %v6394_v27 = vpop.xlane.xlu0 %714 }
 0x1b3   :  { %v932_v8 = vsel %vm274_vm0, %v9086_v60, 0.0 }
 0x1b5   :  { %927 = vadd.xlane.f32.xlu1 %v926_v16  ;;  %924 = vadd.xlane.f32.xlu0 %v923_v30  ;;  %v9088_v30 = vunpack.c.h.bf16 %v5639_v5 }
 0x1b6   :  { %v6402_v49 = vpop.xlane.xlu1 %723  ;;  %v6404_v21 = vpop.xlane.xlu0 %720 }
 0x1b7   :  { %v938_v16 = vsel %vm274_vm0, %v9088_v30, 0.0 }
 0x1b9   :  { %933 = vadd.xlane.f32.xlu1 %v932_v8  ;;  %930 = vadd.xlane.f32.xlu0 %v929_v7  ;;  %v9090_v7 = vunpack.c.h.bf16 %v5656_v11 }
 0x1ba   :  { %v6412_v59 = vpop.xlane.xlu1 %729  ;;  %v6414_v12 = vpop.xlane.xlu0 %726 }
 0x1bb   :  { %v944_v8 = vsel %vm274_vm0, %v9090_v7, 0.0 }
 0x1bd   :  { %939 = vadd.xlane.f32.xlu1 %v938_v16  ;;  %936 = vadd.xlane.f32.xlu0 %v935_v50  ;;  %v9092_v50 = vunpack.c.h.bf16 %v5673_v46 }
 0x1be   :  { %v6422_v60 = vpop.xlane.xlu1 %735  ;;  %v6424_v2 = vpop.xlane.xlu0 %732 }
 0x1bf   :  { %v950_v16 = vsel %vm274_vm0, %v9092_v50, 0.0 }
 0x1c1   :  { %945 = vadd.xlane.f32.xlu1 %v944_v8  ;;  %942 = vadd.xlane.f32.xlu0 %v941_v39  ;;  %v9096_v39 = vunpack.c.h.bf16 %v5690_v17 }
 0x1c2   :  { %v6432_v30 = vpop.xlane.xlu1 %741  ;;  %v6434_v5 = vpop.xlane.xlu0 %738 }
 0x1c3   :  { %v956_v8 = vsel %vm274_vm0, %v9096_v39, 0.0 }
 0x1c5   :  { %951 = vadd.xlane.f32.xlu1 %v950_v16  ;;  %948 = vadd.xlane.f32.xlu0 %v947_v25  ;;  %v9100_v25 = vunpack.c.h.bf16 %v5707_v3 }
 0x1c6   :  { %v6442_v7 = vpop.xlane.xlu1 %747  ;;  %v6444_v11 = vpop.xlane.xlu0 %744 }
 0x1c7   :  { %9094 = vst [vmem:[#allocation132_spill] sm:$0xff] %v6442_v7  ;;  %9095 = vst [vmem:[#allocation133_spill] sm:$0xff] %v6444_v11  ;;  %v962_v16 = vsel %vm274_vm0, %v9100_v25, 0.0  ;;  %v6752_v7 = vmul.f32 0.020408163, %v6362_v24 }
 0x1c9   :  { %957 = vadd.xlane.f32.xlu1 %v956_v8  ;;  %954 = vadd.xlane.f32.xlu0 %v953_v14  ;;  %v9104_v14 = vunpack.c.h.bf16 %v5724_v26 }
 0x1ca   :  { %v6452_v50 = vpop.xlane.xlu1 %753  ;;  %v6454_v46 = vpop.xlane.xlu0 %750 }
 0x1cb   :  { %9098 = vst [vmem:[#allocation134_spill] sm:$0xff] %v6452_v50  ;;  %9099 = vst [vmem:[#allocation135_spill] sm:$0xff] %v6454_v46  ;;  %v968_v8 = vsel %vm274_vm0, %v9104_v14, 0.0 }
 0x1cd   :  { %963 = vadd.xlane.f32.xlu1 %v962_v16  ;;  %960 = vadd.xlane.f32.xlu0 %v959_v63  ;;  %v9108_v16 = vld [vmem:[#allocation37_spill] sm:$0xff] }
 0x1ce   :  { %v6462_v39 = vpop.xlane.xlu1 %759  ;;  %v6464_v17 = vpop.xlane.xlu0 %756  ;;  %v9109_v63 = vunpack.c.h.bf16 %v9108_v16  ;;  %v9110_v53 = vunpack.c.l.bf16 %v9108_v16 }
 0x1cf   :  { %9102 = vst [vmem:[#allocation136_spill] sm:$0xff] %v6462_v39  ;;  %9103 = vst [vmem:[#allocation137_spill] sm:$0xff] %v6464_v17 }
 0x1d0   :  { %v974_v22 = vsel %vm274_vm0, %v9109_v63, 0.0  ;;  %v971_v48 = vsel %vm274_vm0, %v9110_v53, 0.0  ;;  %v9118_v53 = vld [vmem:[#allocation43_spill] sm:$0xff] }
 0x1d1   :  { %969 = vadd.xlane.f32.xlu1 %v968_v8  ;;  %966 = vadd.xlane.f32.xlu0 %v965_v58  ;;  %v9113_v8 = vld [vmem:[#allocation40_spill] sm:$0xff] }
 0x1d2   :  { %v6472_v25 = vpop.xlane.xlu1 %765  ;;  %v6474_v3 = vpop.xlane.xlu0 %762  ;;  %v9114_v58 = vunpack.c.h.bf16 %v9113_v8  ;;  %v9115_v43 = vunpack.c.l.bf16 %v9113_v8 }
 0x1d3   :  { %9106 = vst [vmem:[#allocation138_spill] sm:$0xff] %v6472_v25  ;;  %9107 = vst [vmem:[#allocation139_spill] sm:$0xff] %v6474_v3 }
 0x1d4   :  { %v980_v37 = vsel %vm274_vm0, %v9114_v58, 0.0  ;;  %v977_v38 = vsel %vm274_vm0, %v9115_v43, 0.0  ;;  %v9123_v43 = vld [vmem:[#allocation46_spill] sm:$0xff] }
 0x1d5   :  { %975 = vadd.xlane.f32.xlu1 %v974_v22  ;;  %972 = vadd.xlane.f32.xlu0 %v971_v48  ;;  %v9119_v48 = vunpack.c.h.bf16 %v9118_v53 }
 0x1d6   :  { %v6482_v14 = vpop.xlane.xlu1 %771  ;;  %v6484_v26 = vpop.xlane.xlu0 %768 }
 0x1d7   :  { %9111 = vst [vmem:[#allocation37_spill] sm:$0xff] %v6482_v14  ;;  %9112 = vst [vmem:[#allocation140_spill] sm:$0xff] %v6484_v26  ;;  %v986_v22 = vsel %vm274_vm0, %v9119_v48, 0.0  ;;  %v9120_v14 = vunpack.c.l.bf16 %v9118_v53 }
 0x1d9   :  { %981 = vadd.xlane.f32.xlu1 %v980_v37  ;;  %978 = vadd.xlane.f32.xlu0 %v977_v38  ;;  %v983_v26 = vsel %vm274_vm0, %v9120_v14, 0.0  ;;  %v9124_v38 = vunpack.c.h.bf16 %v9123_v43  ;;  %v9128_v14 = vld [vmem:[#allocation49_spill] sm:$0xff] }
 0x1da   :  { %v6492_v63 = vpop.xlane.xlu1 %777  ;;  %v6494_v16 = vpop.xlane.xlu0 %774 }
 0x1db   :  { %9116 = vst [vmem:[#allocation40_spill] sm:$0xff] %v6492_v63  ;;  %9117 = vst [vmem:[#allocation141_spill] sm:$0xff] %v6494_v16  ;;  %v992_v37 = vsel %vm274_vm0, %v9124_v38, 0.0  ;;  %v9125_v63 = vunpack.c.l.bf16 %v9123_v43 }
 0x1dd   :  { %987 = vadd.xlane.f32.xlu1 %v986_v22  ;;  %984 = vadd.xlane.f32.xlu0 %v983_v26  ;;  %v989_v16 = vsel %vm274_vm0, %v9125_v63, 0.0  ;;  %v9129_v26 = vunpack.c.h.bf16 %v9128_v14  ;;  %v9133_v63 = vld [vmem:[#allocation52_spill] sm:$0xff] }
 0x1de   :  { %v6502_v58 = vpop.xlane.xlu1 %783  ;;  %v6504_v8 = vpop.xlane.xlu0 %780 }
 0x1df   :  { %9121 = vst [vmem:[#allocation43_spill] sm:$0xff] %v6502_v58  ;;  %9122 = vst [vmem:[#allocation142_spill] sm:$0xff] %v6504_v8  ;;  %v998_v22 = vsel %vm274_vm0, %v9129_v26, 0.0  ;;  %v9130_v58 = vunpack.c.l.bf16 %v9128_v14 }
 0x1e1   :  { %993 = vadd.xlane.f32.xlu1 %v992_v37  ;;  %990 = vadd.xlane.f32.xlu0 %v989_v16  ;;  %v995_v8 = vsel %vm274_vm0, %v9130_v58, 0.0  ;;  %v9134_v16 = vunpack.c.h.bf16 %v9133_v63  ;;  %v9138_v58 = vld [vmem:[#allocation55_spill] sm:$0xff] }
 0x1e2   :  { %v6512_v48 = vpop.xlane.xlu1 %789  ;;  %v6514_v53 = vpop.xlane.xlu0 %786 }
 0x1e3   :  { %9126 = vst [vmem:[#allocation46_spill] sm:$0xff] %v6512_v48  ;;  %9127 = vst [vmem:[#allocation143_spill] sm:$0xff] %v6514_v53  ;;  %v1004_v37 = vsel %vm274_vm0, %v9134_v16, 0.0  ;;  %v9135_v48 = vunpack.c.l.bf16 %v9133_v63  ;;  %v1307_v16 = vlaneseq }
 0x1e5   :  { %999 = vadd.xlane.f32.xlu1 %v998_v22  ;;  %996 = vadd.xlane.f32.xlu0 %v995_v8  ;;  %v1001_v53 = vsel %vm274_vm0, %v9135_v48, 0.0  ;;  %v9139_v8 = vunpack.c.h.bf16 %v9138_v58 }
 0x1e6   :  { %v6522_v38 = vpop.xlane.xlu1 %795  ;;  %v6524_v43 = vpop.xlane.xlu0 %792 }
 0x1e7   :  { %9131 = vst [vmem:[#allocation49_spill] sm:$0xff] %v6522_v38  ;;  %9132 = vst [vmem:[#allocation144_spill] sm:$0xff] %v6524_v43  ;;  %v1010_v22 = vsel %vm274_vm0, %v9139_v8, 0.0  ;;  %v9140_v38 = vunpack.c.l.bf16 %v9138_v58  ;;  %v6552_v58 = vand.u32 127, %v1307_v16  ;;  %v9148_v8 = vld [vmem:[#allocation61_spill] sm:$0xff] }
 0x1e9   :  { %1005 = vadd.xlane.f32.xlu1 %v1004_v37  ;;  %1002 = vadd.xlane.f32.xlu0 %v1001_v53  ;;  %v1007_v43 = vsel %vm274_vm0, %v9140_v38, 0.0  ;;  %v9143_v53 = vld [vmem:[#allocation58_spill] sm:$0xff] }
 0x1ea   :  { %v6532_v26 = vpop.xlane.xlu1 %801  ;;  %v6534_v14 = vpop.xlane.xlu0 %798  ;;  %v9144_v37 = vunpack.c.h.bf16 %v9143_v53 }
 0x1eb   :  { %9136 = vst [vmem:[#allocation52_spill] sm:$0xff] %v6532_v26  ;;  %9137 = vst [vmem:[#allocation145_spill] sm:$0xff] %v6534_v14  ;;  %v9145_v14 = vunpack.c.l.bf16 %v9143_v53  ;;  %v6564_v53 = vshrl.u32 %v1307_v16, 7  ;;  %v6581_v16 = vmul.f32 0.020408163, %v6304_v56 }
 0x1ec   :  { %v1016_v26 = vsel %vm274_vm0, %v9144_v37, 0.0 }
 0x1ed   :  { %1011 = vadd.xlane.f32.xlu1 %v1010_v22  ;;  %1008 = vadd.xlane.f32.xlu0 %v1007_v43  ;;  %v1013_v46 = vsel %vm274_vm0, %v9145_v14, 0.0  ;;  %v9149_v22 = vunpack.c.h.bf16 %v9148_v8  ;;  %9157 = vst [vmem:[#allocation149_spill] sm:$0xff] %v6581_v16 }
 0x1ee   :  { %v6542_v63 = vpop.xlane.xlu1 %807  ;;  %v6544_v48 = vpop.xlane.xlu0 %804 }
 0x1ef   :  { %9141 = vst [vmem:[#allocation55_spill] sm:$0xff] %v6542_v63  ;;  %9142 = vst [vmem:[#allocation146_spill] sm:$0xff] %v6544_v48  ;;  %v1022_v48 = vsel %vm274_vm0, %v9149_v22, 0.0  ;;  %v9150_v63 = vunpack.c.l.bf16 %v9148_v8 }
 0x1f1   :  { %1017 = vadd.xlane.f32.xlu1 %v1016_v26  ;;  %1014 = vadd.xlane.f32.xlu0 %v1013_v46  ;;  %v1019_v37 = vsel %vm274_vm0, %v9150_v63, 0.0  ;;  %v1461_v46 = vadd.s32 4294967288, %v6552_v58  ;;  %v6578_v63 = vmul.f32 0.020408163, %v6302_v10  ;;  %v9162_v10 = vunpack.c.h.bf16 %v5911_v15 }
 0x1f2   :  { %v6554_v38 = vpop.xlane.xlu1 %813  ;;  %v6556_v43 = vpop.xlane.xlu0 %810 }
 0x1f3   :  { %9146 = vst [vmem:[#allocation58_spill] sm:$0xff] %v6554_v38  ;;  %9147 = vst [vmem:[#allocation147_spill] sm:$0xff] %v6556_v43  ;;  %v9153_v38 = vld [vmem:[#allocation64_spill] sm:$0xff]  ;;  %v1034_v56 = vsel %vm274_vm0, %v9162_v10, 0.0  ;;  %v1179_v50 = vsub.f32 %v9164_v33, %v6578_v63 }
 0x1f4   :  { %v9154_v43 = vunpack.c.h.bf16 %v9153_v38  ;;  %v9155_v22 = vunpack.c.l.bf16 %v9153_v38  ;;  %9156 = vst [vmem:[#allocation64_spill] sm:$0xff] %v6578_v63  ;;  %v1171_v10 = vld [vmem:[%s8569_s1] sm:$0xf]  ;;  %v1482_v63 = vadd.s32 4294967264, %v6552_v58 }
 0x1f5   :  { %1023 = vadd.xlane.f32.xlu1 %v1022_v48  ;;  %1020 = vadd.xlane.f32.xlu0 %v1019_v37  ;;  %v1468_v48 = vadd.s32 4294967280, %v6552_v58  ;;  %v6585_v37 = vmul.f32 0.020408163, %v6314_v52 }
 0x1f6   :  { %v6567_v26 = vpop.xlane.xlu1 %819  ;;  %v6569_v14 = vpop.xlane.xlu0 %816  ;;  %v1028_v25 = vsel %vm274_vm0, %v9154_v43, 0.0  ;;  %v1025_v8 = vsel %vm274_vm0, %v9155_v22, 0.0  ;;  %v6589_v43 = vsub.s32 %v1461_v46, %v6564_v53  ;;  %v9166_v46 = vld [vmem:[#allocation6_spill] sm:$0xff]  ;;  %v6648_v11 = vsub.s32 %v1482_v63, %v6564_v53 }
 0x1f7   :  { %9151 = vst [vmem:[#allocation61_spill] sm:$0xff] %v6567_v26  ;;  %9152 = vst [vmem:[#allocation148_spill] sm:$0xff] %v6569_v14  ;;  %v1475_v26 = vadd.s32 4294967272, %v6552_v58  ;;  %v9163_v14 = vunpack.c.l.bf16 %v5911_v15  ;;  %v6616_v15 = vsub.s32 %v1468_v48, %v6564_v53  ;;  %v1510_v63 = vadd.s32 4294967232, %v6552_v58 }
 0x1f8   :  { %9158 = vst [vmem:[#allocation150_spill] sm:$0xff] %v6585_v37  ;;  %9159 = vst [vmem:[#allocation151_spill] sm:$0xff] %v6589_v43  ;;  %v1465_v39 = vrot.slane %v1179_v50, %v6589_v43 }
 0x1f9   :  { %1029 = vadd.xlane.f32.xlu1 %v1028_v25  ;;  %1026 = vadd.xlane.f32.xlu0 %v1025_v8  ;;  %v1031_v52 = vsel %vm274_vm0, %v9163_v14, 0.0  ;;  %v6605_v25 = vsub.s32 %v6552_v58, %v6564_v53  ;;  %v1178_v8 = vsub.f32 %v9166_v46, %v6581_v16  ;;  %9168 = vst [vmem:[#allocation154_spill] sm:$0xff] %v6616_v15  ;;  %v9169_v14 = vld [vmem:[#allocation5_spill] sm:$0xff]  ;;  %v1496_v16 = vadd.s32 4294967248, %v6552_v58 }
 0x1fa   :  { %v6591_v38 = vpop.xlane.xlu1 %825  ;;  %v6593_v22 = vpop.xlane.xlu0 %822  ;;  %v1180_v33 = vsub.f32 %v9169_v14, %v6585_v37  ;;  %v6625_v46 = vsub.s32 %v1475_v26, %v6564_v53  ;;  %v9174_v14 = vld [vmem:[#allocation69_spill] sm:$0xff]  ;;  %v4306_v26 = vmul.f32 -1.442695, %v1171_v10  ;;  %v6653_v10 = vmul.f32 0.020408163, %v6334_v47 }
 0x1fb   :  { %9160 = vst [vmem:[#allocation152_spill] sm:$0xff] %v6591_v38  ;;  %9161 = vst [vmem:[#allocation153_spill] sm:$0xff] %v6593_v22  ;;  %v6610_v38 = vmul.f32 0.020408163, %v6312_v9  ;;  %v6622_v22 = vmul.f32 0.020408163, %v6324_v51  ;;  %v9175_v37 = vunpack.c.h.bf16 %v9174_v14  ;;  %v9176_v51 = vunpack.c.l.bf16 %v9174_v14 }
 0x1fc   :  { %9165 = vst [vmem:[#allocation8_spill] sm:$0xff] %v6605_v25  ;;  %9171 = vst [vmem:[#allocation155_spill] sm:$0xff] %v6625_v46  ;;  %v1489_v9 = vadd.s32 4294967256, %v6552_v58  ;;  %4951 = vpow2.f32 %v4306_v26 }
 0x1fd   :  { %9167 = vst [vmem:[#allocation6_spill] sm:$0xff] %v6610_v38  ;;  %9170 = vst [vmem:[#allocation5_spill] sm:$0xff] %v6622_v22  ;;  %1035 = vadd.xlane.f32.xlu1 %v1034_v56  ;;  %1032 = vadd.xlane.f32.xlu0 %v1031_v52  ;;  %v1040_v17 = vsel %vm274_vm0, %v9175_v37, 0.0  ;;  %v1037_v28 = vsel %vm274_vm0, %v9176_v51, 0.0  ;;  %v1460_v56 = vrot.slane %v1178_v8, %v6605_v25  ;;  %v9177_v52 = vld [vmem:[#allocation7_spill] sm:$0xff]  ;;  %v9180_v37 = vld [vmem:[#allocation10_spill] sm:$0xff] }
 0x1fe   :  { %v6629_v48 = vpop.xlane.xlu1 %831  ;;  %v6631_v3 = vpop.xlane.xlu0 %828  ;;  %v1181_v23 = vsub.f32 %v9177_v52, %v6610_v38  ;;  %9179 = vst [vmem:[#allocation7_spill] sm:$0xff] %v6648_v11  ;;  %v1182_v14 = vsub.f32 %v9180_v37, %v6622_v22  ;;  %9181 = vst [vmem:[#allocation10_spill] sm:$0xff] %v6653_v10  ;;  %v6656_v50 = vsub.s32 %v1489_v9, %v6564_v53  ;;  %v9186_v52 = vld [vmem:[#allocation9_spill] sm:$0xff]  ;;  %v9188_v22 = vld [vmem:[#allocation12_spill] sm:$0xff]  ;;  %vm2119_vm0 = vcmask 1041409  }
 0x1ff   :  { %9172 = vst [vmem:[#allocation156_spill] sm:$0xff] %v6629_v48  ;;  %9173 = vst [vmem:[#allocation157_spill] sm:$0xff] %v6631_v3  ;;  %v6644_v48 = vmul.f32 0.020408163, %v6322_v62  ;;  %v1472_v3 = vrot.slane %v1180_v33, %v6616_v15  ;;  %v1503_v62 = vadd.s32 4294967240, %v6552_v58  ;;  %v6660_v8 = vsub.s32 %v1496_v16, %v6564_v53 }
 0x200   :  { %9182 = vst [vmem:[#allocation158_spill] sm:$0xff] %v6656_v50  ;;  %v1467_v47 = vsel %vm1466_vm1, %v1465_v39, %v1460_v56  ;;  %v1479_v9 = vrot.slane %v1181_v23, %v6625_v46  ;;  %v1486_v37 = vrot.slane %v1182_v14, %v6648_v11  ;;  %v1184_v38 = vsub.f32 %v9188_v22, %v6653_v10  ;;  %v9193_v22 = vld [vmem:[#allocation11_spill] sm:$0xff] }
 0x201   :  { %9178 = vst [vmem:[#allocation69_spill] sm:$0xff] %v6644_v48  ;;  %1041 = vadd.xlane.f32.xlu1 %v1040_v17  ;;  %1038 = vadd.xlane.f32.xlu0 %v1037_v28  ;;  %9183 = vst [vmem:[#allocation159_spill] sm:$0xff] %v6660_v8  ;;  %v1183_v17 = vsub.f32 %v9186_v52, %v6644_v48  ;;  %v6672_v28 = vmul.f32 0.020408163, %v6332_v61  ;;  %v1474_v16 = vsel %vm1473_vm2, %v1472_v3, %v1467_v47  ;;  %v9196_v48 = vld [vmem:[#allocation14_spill] sm:$0xff] }
 0x202   :  { %v6663_v33 = vpop.xlane.xlu1 %837  ;;  %v6665_v51 = vpop.xlane.xlu0 %834  ;;  %v6682_v39 = vsub.s32 %v1503_v62, %v6564_v53  ;;  %v1517_v23 = vadd.s32 4294967224, %v6552_v58  ;;  %v1481_v56 = vsel %vm1480_vm3, %v1479_v9, %v1474_v16  ;;  %v1500_v47 = vrot.slane %v1184_v38, %v6660_v8 }
 0x203   :  { %9184 = vst [vmem:[#allocation160_spill] sm:$0xff] %v6663_v33  ;;  %9185 = vst [vmem:[#allocation161_spill] sm:$0xff] %v6665_v51  ;;  %v6679_v33 = vmul.f32 0.020408163, %v6344_v40  ;;  %v1493_v3 = vrot.slane %v1183_v17, %v6656_v50  ;;  %v1185_v14 = vsub.f32 %v9193_v22, %v6672_v28  ;;  %v6694_v40 = vmul.f32 0.020408163, %v6342_v57 }
 0x204   :  { %9187 = vst [vmem:[#allocation9_spill] sm:$0xff] %v6672_v28  ;;  %9190 = vst [vmem:[#allocation162_spill] sm:$0xff] %v6682_v39  ;;  %v1488_v62 = vsel %vm1487_vm4, %v1486_v37, %v1481_v56  ;;  %v6699_v52 = vsub.s32 %v1510_v63, %v6564_v53  ;;  %v1531_v17 = vadd.s32 4294967208, %v6552_v58  ;;  %v1524_v9 = vadd.s32 4294967216, %v6552_v58  ;;  %v9201_v22 = vld [vmem:[#allocation13_spill] sm:$0xff] }
 0x205   :  { %9189 = vst [vmem:[#allocation12_spill] sm:$0xff] %v6679_v33  ;;  %9194 = vst [vmem:[#allocation11_spill] sm:$0xff] %v6694_v40  ;;  %v1186_v10 = vsub.f32 %v9196_v48, %v6679_v33  ;;  %v6706_v16 = vmul.f32 0.020408163, %v6354_v19  ;;  %v6709_v57 = vsub.s32 %v1517_v23, %v6564_v53  ;;  %v1545_v37 = vadd.s32 4294967192, %v6552_v58 }
 0x206   :  { %v6685_v26 = vpop.xlane.xlu1 %843  ;;  %v6687_v61 = vpop.xlane.xlu0 %840  ;;  %9195 = vst [vmem:[#allocation165_spill] sm:$0xff] %v6699_v52  ;;  %v1507_v56 = vrot.slane %v1185_v14, %v6682_v39  ;;  %v1495_v48 = vsel %vm1494_vm5, %v1493_v3, %v1488_v62  ;;  %v1187_v33 = vsub.f32 %v9201_v22, %v6694_v40  ;;  %v6723_v23 = vmul.f32 0.020408163, %v6352_v20  ;;  %v9204_v3 = vld [vmem:[#allocation16_spill] sm:$0xff] }
 0x207   :  { %9191 = vst [vmem:[#allocation163_spill] sm:$0xff] %v6685_v26  ;;  %9192 = vst [vmem:[#allocation164_spill] sm:$0xff] %v6687_v61  ;;  %v1502_v19 = vsel %vm1501_vm6, %v1500_v47, %v1495_v48  ;;  %v1514_v28 = vrot.slane %v1186_v10, %v6699_v52  ;;  %v1538_v26 = vadd.s32 4294967200, %v6552_v58  ;;  %v6730_v14 = vsub.s32 %v1524_v9, %v6564_v53 }
 0x208   :  { %9197 = vst [vmem:[#allocation14_spill] sm:$0xff] %v6706_v16  ;;  %9198 = vst [vmem:[#allocation166_spill] sm:$0xff] %v6709_v57  ;;  %v1188_v62 = vsub.f32 %v9204_v3, %v6706_v16  ;;  %v6735_v47 = vsub.s32 %v1545_v37, %v6564_v53  ;;  %v1559_v20 = vadd.s32 4294967176, %v6552_v58  ;;  %v1521_v40 = vrot.slane %v1187_v33, %v6709_v57  ;;  %v9208_v16 = vld [vmem:[#allocation15_spill] sm:$0xff] }
 0x209   :  { %9203 = vst [vmem:[#allocation169_spill] sm:$0xff] %v6730_v14  ;;  %v4952_v22 = vpop.eup %4951  ;;  %v1189_v61 = vsub.f32 %v9208_v16, %v6723_v23  ;;  %v6748_v37 = vsub.s32 %v1538_v26, %v6564_v53  ;;  %v1552_v26 = vadd.s32 4294967184, %v6552_v58 }
 0x20a   :  { %v6712_v38 = vpop.xlane.xlu1 %849  ;;  %v6714_v63 = vpop.xlane.xlu0 %846  ;;  %9205 = vst [vmem:[#allocation16_spill] sm:$0xff] %v6735_v47  ;;  %v1528_v51 = vrot.slane %v1188_v62, %v6730_v14  ;;  %v6762_v16 = vsub.s32 %v1559_v20, %v6564_v53  ;;  %v1175_v62 = vadd.f32 1.0, %v4952_v22  ;;  %v6775_v20 = vmul.f32 0.020408163, %v6384_v36 }
 0x20b   :  { %9199 = vst [vmem:[#allocation167_spill] sm:$0xff] %v6712_v38  ;;  %9200 = vst [vmem:[#allocation168_spill] sm:$0xff] %v6714_v63  ;;  %v6727_v38 = vsub.s32 %v1531_v17, %v6564_v53  ;;  %v1509_v17 = vsel %vm1508_vm7, %v1507_v56, %v1502_v19  ;;  %v6789_v36 = vsub.s32 %v1552_v26, %v6564_v53  ;;  %v9219_v26 = vld [vmem:[#allocation22_spill] sm:$0xff] }
 0x20c   :  { %v1516_v3 = vsel %vm1515_vm8, %v1514_v28, %v1509_v17  ;;  %9209 = vst [vmem:[#allocation15_spill] sm:$0xff] %v6748_v37  ;;  %v6759_v28 = vmul.f32 0.020408163, %v6364_v54  ;;  %9210 = vst [vmem:[#allocation172_spill] sm:$0xff] %v6762_v16  ;;  %4953 = vrcp.f32 %v1175_v62 }
 0x20d   :  { %9202 = vst [vmem:[#allocation13_spill] sm:$0xff] %v6727_v38  ;;  %v1523_v24 = vsel %vm1522_vm9, %v1521_v40, %v1516_v3  ;;  %v1535_v54 = vrot.slane %v1189_v61, %v6727_v38  ;;  %v9213_v40 = vld [vmem:[#allocation17_spill] sm:$0xff]  ;;  %v9214_v61 = vld [vmem:[#allocation18_spill] sm:$0xff] }
 0x20e   :  { %v856_v10 = vpop.xlane.xlu1 %855  ;;  %v853_v48 = vpop.xlane.xlu0 %852  ;;  %v1530_v22 = vsel %vm1529_vm10, %v1528_v51, %v1523_v24  ;;  %v1191_v3 = vsub.f32 %v9213_v40, %v6752_v7  ;;  %9215 = vst [vmem:[#allocation17_spill] sm:$0xff] %v6789_v36  ;;  %v9216_v24 = vld [vmem:[#allocation21_spill] sm:$0xff] }
 0x20f   :  { %v6740_v63 = vmul.f32 0.020408163, %v856_v10  ;;  %v6742_v9 = vmul.f32 0.020408163, %v853_v48  ;;  %v6767_v48 = vmul.f32 0.020408163, %v6382_v35 }
 0x210   :  { %v1549_v62 = vrot.slane %v1191_v3, %v6735_v47 }
 0x211   :  { %9206 = vst [vmem:[#allocation170_spill] sm:$0xff] %v6740_v63  ;;  %9207 = vst [vmem:[#allocation171_spill] sm:$0xff] %v6742_v9  ;;  %v1243_v33 = vsub.f32 %v5982_v31, %v6740_v63  ;;  %v1242_v56 = vsub.f32 %v5984_v0, %v6742_v9  ;;  %v1195_v40 = vsub.f32 %v9216_v24, %v6767_v48 }
 0x212   :  { %v862_v19 = vpop.xlane.xlu1 %861  ;;  %v859_v10 = vpop.xlane.xlu0 %858  ;;  %v1194_v9 = vsub.f32 %v9219_v26, %v6775_v20 }
 0x213   :  { %v6769_v31 = vmul.f32 0.020408163, %v862_v19  ;;  %v6771_v0 = vmul.f32 0.020408163, %v859_v10  ;;  %v1810_v58 = vrot.slane %v1243_v33, %v6589_v43  ;;  %v1806_v17 = vrot.slane %v1242_v56, %v6605_v25 }
 0x214   :  { %v1190_v10 = vsub.f32 %v9214_v61, %v6759_v28  ;;  %v6792_v33 = vmul.f32 0.020408163, %v6394_v27  ;;  %v1537_v61 = vsel %vm1536_vm11, %v1535_v54, %v1530_v22  ;;  %v6814_v54 = vmul.f32 0.020408163, %v6372_v34 }
 0x215   :  { %9211 = vst [vmem:[#allocation173_spill] sm:$0xff] %v6769_v31  ;;  %9212 = vst [vmem:[#allocation174_spill] sm:$0xff] %v6771_v0  ;;  %v1245_v35 = vsub.f32 %v5992_v29, %v6769_v31  ;;  %v1244_v19 = vsub.f32 %v5994_v6, %v6771_v0  ;;  %v1811_v27 = vsel %vm1466_vm1, %v1810_v58, %v1806_v17  ;;  %v6817_v22 = vmul.f32 0.020408163, %v6392_v45  ;;  %v9220_v58 = vld [vmem:[#allocation24_spill] sm:$0xff] }
 0x216   :  { %v868_v56 = vpop.xlane.xlu1 %867  ;;  %v865_v51 = vpop.xlane.xlu0 %864  ;;  %v1196_v17 = vsub.f32 %v9220_v58, %v6792_v33  ;;  %v1573_v24 = vrot.slane %v1195_v40, %v6589_v43  ;;  %v6829_v34 = vmul.f32 0.020408163, %v6404_v21  ;;  %v9224_v58 = vld [vmem:[#allocation80_spill] sm:$0xff]  ;;  %v9225_v21 = vld [vmem:[#allocation19_spill] sm:$0xff] }
 0x217   :  { %v1815_v29 = vrot.slane %v1244_v19, %v6616_v15  ;;  %v6797_v31 = vmul.f32 0.020408163, %v868_v56  ;;  %v6799_v6 = vmul.f32 0.020408163, %v865_v51  ;;  %v1820_v63 = vrot.slane %v1245_v35, %v6625_v46 }
 0x218   :  { %v1542_v51 = vrot.slane %v1190_v10, %v6748_v37  ;;  %v1569_v10 = vrot.slane %v1194_v9, %v6605_v25  ;;  %9223 = vst [vmem:[#allocation175_spill] sm:$0xff] %v6829_v34 }
 0x219   :  { %9217 = vst [vmem:[#allocation18_spill] sm:$0xff] %v6797_v31  ;;  %9218 = vst [vmem:[#allocation21_spill] sm:$0xff] %v6799_v6  ;;  %v1816_v0 = vsel %vm1473_vm2, %v1815_v29, %v1811_v27  ;;  %v1247_v19 = vsub.f32 %v6002_v44, %v6797_v31  ;;  %v1246_v56 = vsub.f32 %v6004_v13, %v6799_v6  ;;  %v6834_v27 = vmul.f32 0.020408163, %v6374_v42 }
 0x21a   :  { %v874_v3 = vpop.xlane.xlu1 %873  ;;  %v871_v35 = vpop.xlane.xlu0 %870  ;;  %v1821_v26 = vsel %vm1480_vm3, %v1820_v63, %v1816_v0  ;;  %v1544_v9 = vsel %vm1543_vm12, %v1542_v51, %v1537_v61  ;;  %v1578_v63 = vrot.slane %v1196_v17, %v6616_v15  ;;  %v1574_v61 = vsel %vm1466_vm1, %v1573_v24, %v1569_v10  ;;  %v9229_v51 = vld [vmem:[#allocation26_spill] sm:$0xff]  ;;  %v9231_v10 = vld [vmem:[#allocation20_spill] sm:$0xff] }
 0x21b   :  { %v1825_v44 = vrot.slane %v1246_v56, %v6648_v11  ;;  %v6823_v29 = vmul.f32 0.020408163, %v874_v3  ;;  %v6825_v13 = vmul.f32 0.020408163, %v871_v35  ;;  %v1830_v45 = vrot.slane %v1247_v19, %v6656_v50  ;;  %v9226_v19 = vld [vmem:[#allocation23_spill] sm:$0xff] }
 0x21c   :  { %v1193_v35 = vsub.f32 %v9225_v21, %v6814_v54  ;;  %v1197_v31 = vsub.f32 %v9226_v19, %v6817_v22  ;;  %v1198_v21 = vsub.f32 %v9229_v51, %v6829_v34  ;;  %v1551_v24 = vsel %vm1550_vm13, %v1549_v62, %v1544_v9 }
 0x21d   :  { %9221 = vst [vmem:[#allocation22_spill] sm:$0xff] %v6823_v29  ;;  %9222 = vst [vmem:[#allocation24_spill] sm:$0xff] %v6825_v13  ;;  %v1826_v40 = vsel %vm1487_vm4, %v1825_v44, %v1821_v26  ;;  %v1249_v56 = vsub.f32 %v6012_v55, %v6823_v29  ;;  %v1248_v3 = vsub.f32 %v9224_v58, %v6825_v13  ;;  %v6848_v44 = vmul.f32 0.020408163, %v6402_v49  ;;  %v6873_v13 = vpop.eup %4953 }
 0x21e   :  { %v880_v42 = vpop.xlane.xlu1 %879  ;;  %v877_v0 = vpop.xlane.xlu0 %876  ;;  %v1831_v17 = vsel %vm1494_vm5, %v1830_v45, %v1826_v40  ;;  %v6861_v29 = vmul.f32 0.020408163, %v6414_v12  ;;  %v1192_v51 = vsub.f32 %v9231_v10, %v6834_v27  ;;  %v1579_v45 = vsel %vm1473_vm2, %v1578_v63, %v1574_v61  ;;  %v9235_v61 = vld [vmem:[#allocation28_spill] sm:$0xff] }
 0x21f   :  { %v1835_v55 = vrot.slane %v1248_v3, %v6660_v8  ;;  %v6851_v26 = vmul.f32 0.020408163, %v880_v42  ;;  %v6853_v58 = vmul.f32 0.020408163, %v877_v0  ;;  %v1840_v19 = vrot.slane %v1249_v56, %v6682_v39  ;;  %v9230_v42 = vld [vmem:[#allocation81_spill] sm:$0xff] }
 0x220   :  { %v1583_v56 = vrot.slane %v1197_v31, %v6625_v46  ;;  %v1588_v62 = vrot.slane %v1198_v21, %v6648_v11  ;;  %v6884_v9 = vmul.f32 0.020408163, %v6412_v59  ;;  %v1200_v10 = vsub.f32 %v9235_v61, %v6861_v29 }
 0x221   :  { %9227 = vst [vmem:[#allocation80_spill] sm:$0xff] %v6851_v26  ;;  %9228 = vst [vmem:[#allocation19_spill] sm:$0xff] %v6853_v58  ;;  %v1836_v49 = vsel %vm1501_vm6, %v1835_v55, %v1831_v17  ;;  %v1251_v3 = vsub.f32 %v6022_v32, %v6851_v26  ;;  %v1250_v0 = vsub.f32 %v9230_v42, %v6853_v58  ;;  %v9232_v55 = vld [vmem:[#allocation25_spill] sm:$0xff] }
 0x222   :  { %v886_v40 = vpop.xlane.xlu1 %885  ;;  %v883_v12 = vpop.xlane.xlu0 %882  ;;  %v1199_v17 = vsub.f32 %v9232_v55, %v6848_v44  ;;  %v1841_v63 = vsel %vm1508_vm7, %v1840_v19, %v1836_v49  ;;  %v1563_v21 = vrot.slane %v1193_v35, %v6762_v16  ;;  %v1556_v59 = vrot.slane %v1192_v51, %v6789_v36  ;;  %v9240_v51 = vld [vmem:[#allocation27_spill] sm:$0xff] }
 0x223   :  { %v1845_v32 = vrot.slane %v1250_v0, %v6699_v52  ;;  %v6878_v26 = vmul.f32 0.020408163, %v886_v40  ;;  %v6880_v42 = vmul.f32 0.020408163, %v883_v12  ;;  %v1850_v31 = vrot.slane %v1251_v3, %v6709_v57  ;;  %v9236_v40 = vld [vmem:[#allocation82_spill] sm:$0xff] }
 0x224   :  { %v1584_v58 = vsel %vm1480_vm3, %v1583_v56, %v1579_v45  ;;  %v6899_v3 = vmul.f32 0.020408163, %v6424_v2  ;;  %v1598_v45 = vrot.slane %v1200_v10, %v6660_v8  ;;  %v6927_v10 = vsub.s32 0, %v6564_v53 }
 0x225   :  { %9233 = vst [vmem:[#allocation23_spill] sm:$0xff] %v6878_v26  ;;  %9234 = vst [vmem:[#allocation26_spill] sm:$0xff] %v6880_v42  ;;  %v1846_v55 = vsel %vm1515_vm8, %v1845_v32, %v1841_v63  ;;  %v1253_v0 = vsub.f32 %v6032_v1, %v6878_v26  ;;  %v1252_v12 = vsub.f32 %v9236_v40, %v6880_v42  ;;  %v9266_v42 = vld [vmem:[#allocation136_spill] sm:$0xff] }
 0x226   :  { %9237 = vst [vmem:[#allocation81_spill] sm:$0xff] %v6899_v3  ;;  %v892_v19 = vpop.xlane.xlu1 %891  ;;  %v889_v49 = vpop.xlane.xlu0 %888  ;;  %v1593_v32 = vrot.slane %v1199_v17, %v6656_v50  ;;  %v1589_v35 = vsel %vm1487_vm4, %v1588_v62, %v1584_v58  ;;  %v1201_v40 = vsub.f32 %v9240_v51, %v6884_v9  ;;  %v1851_v2 = vsel %vm1522_vm9, %v1850_v31, %v1846_v55  ;;  %v9243_v58 = vld [vmem:[#allocation30_spill] sm:$0xff] }
 0x227   :  { %v1855_v63 = vrot.slane %v1252_v12, %v6730_v14  ;;  %v6903_v1 = vmul.f32 0.020408163, %v892_v19  ;;  %v6905_v61 = vmul.f32 0.020408163, %v889_v49  ;;  %v1860_v56 = vrot.slane %v1253_v0, %v6727_v38  ;;  %v9241_v12 = vld [vmem:[#allocation83_spill] sm:$0xff] }
 0x228   :  { %v6919_v49 = vmul.f32 0.020408163, %v6422_v60  ;;  %v1202_v62 = vsub.f32 %v9243_v58, %v6899_v3  ;;  %v6924_v0 = vmul.f32 0.020408163, %v6434_v5  ;;  %v1603_v60 = vrot.slane %v1201_v40, %v6682_v39 }
 0x229   :  { %9238 = vst [vmem:[#allocation20_spill] sm:$0xff] %v6903_v1  ;;  %9239 = vst [vmem:[#allocation25_spill] sm:$0xff] %v6905_v61  ;;  %v1856_v26 = vsel %vm1529_vm10, %v1855_v63, %v1851_v2  ;;  %v1255_v17 = vsub.f32 %v6042_v41, %v6903_v1  ;;  %v1254_v19 = vsub.f32 %v9241_v12, %v6905_v61  ;;  %v7010_v6 = vmul.f32 0.020408163, %v9266_v42 }
 0x22a   :  { %9242 = vst [vmem:[#allocation28_spill] sm:$0xff] %v6919_v49  ;;  %9244 = vst [vmem:[#allocation82_spill] sm:$0xff] %v6924_v0  ;;  %v898_v31 = vpop.xlane.xlu1 %897  ;;  %v895_v55 = vpop.xlane.xlu0 %894  ;;  %v1558_v63 = vsel %vm1557_vm14, %v1556_v59, %v1551_v24  ;;  %v1594_v12 = vsel %vm1494_vm5, %v1593_v32, %v1589_v35  ;;  %v1861_v58 = vsel %vm1536_vm11, %v1860_v56, %v1856_v26  ;;  %v9247_v59 = vld [vmem:[#allocation84_spill] sm:$0xff]  ;;  %v6949_v32 = vmul.f32 0.020408163, %v6432_v30 }
 0x22b   :  { %v1865_v41 = vrot.slane %v1254_v19, %v6748_v37  ;;  %v6931_v51 = vmul.f32 0.020408163, %v898_v31  ;;  %v6933_v2 = vmul.f32 0.020408163, %v895_v55  ;;  %v1870_v5 = vrot.slane %v1255_v17, %v6735_v47  ;;  %v9248_v31 = vld [vmem:[#allocation29_spill] sm:$0xff]  ;;  %v9249_v26 = vld [vmem:[#allocation32_spill] sm:$0xff] }
 0x22c   :  { %v1599_v1 = vsel %vm1501_vm6, %v1598_v45, %v1594_v12  ;;  %v1203_v55 = vsub.f32 %v9248_v31, %v6919_v49  ;;  %v1608_v40 = vrot.slane %v1202_v62, %v6699_v52  ;;  %v1204_v35 = vsub.f32 %v9249_v26, %v6924_v0 }
 0x22d   :  { %9245 = vst [vmem:[#allocation27_spill] sm:$0xff] %v6931_v51  ;;  %9246 = vst [vmem:[#allocation83_spill] sm:$0xff] %v6933_v2  ;;  %v1866_v61 = vsel %vm1543_vm12, %v1865_v41, %v1861_v58  ;;  %v1257_v24 = vsub.f32 %v6052_v4, %v6931_v51  ;;  %v1256_v19 = vsub.f32 %v9247_v59, %v6933_v2  ;;  %v7025_v42 = vsub.s32 1, %v6564_v53 }
 0x22e   :  { %v904_v56 = vpop.xlane.xlu1 %903  ;;  %v901_v45 = vpop.xlane.xlu0 %900  ;;  %v1310_v58 = vrot.slane %v6873_v13, %v6927_v10  ;;  %v1871_v62 = vsel %vm1550_vm13, %v1870_v5, %v1866_v61  ;;  %v1604_v30 = vsel %vm1508_vm7, %v1603_v60, %v1599_v1  ;;  %v1565_v26 = vsel %vm1564_vm15, %v1563_v21, %v1558_v63  ;;  %v9253_v1 = vld [vmem:[#allocation31_spill] sm:$0xff]  ;;  %v9257_v21 = vld [vmem:[#allocation133_spill] sm:$0xff] }
 0x22f   :  { %v1880_v17 = vrot.slane %v1257_v24, %v6762_v16  ;;  %v1875_v4 = vrot.slane %v1256_v19, %v6789_v36  ;;  %v6955_v41 = vmul.f32 0.020408163, %v904_v56  ;;  %v6957_v12 = vmul.f32 0.020408163, %v901_v45  ;;  %v9252_v24 = vld [vmem:[#allocation85_spill] sm:$0xff] }
 0x230   :  { %v1613_v56 = vrot.slane %v1203_v55, %v6709_v57  ;;  %v1609_v45 = vsel %vm1515_vm8, %v1608_v40, %v1604_v30  ;;  %v1205_v60 = vsub.f32 %v9253_v1, %v6949_v32  ;;  %v6982_v63 = vmul.f32 0.020408163, %v9257_v21  ;;  %v9264_v21 = vld [vmem:[#allocation33_spill] sm:$0xff] }
 0x231   :  { %9250 = vst [vmem:[#allocation30_spill] sm:$0xff] %v6955_v41  ;;  %9251 = vst [vmem:[#allocation84_spill] sm:$0xff] %v6957_v12  ;;  %v1876_v59 = vsel %vm1557_vm14, %v1875_v4, %v1871_v62  ;;  %v1259_v31 = vsub.f32 %v6062_v18, %v6955_v41  ;;  %v1258_v19 = vsub.f32 %v9252_v24, %v6957_v12  ;;  %v9255_v24 = vld [vmem:[#allocation132_spill] sm:$0xff] }
 0x232   :  { %v1881_v2 = vsel %vm1564_vm15, %v1880_v17, %v1876_v59  ;;  %v910_v61 = vpop.xlane.xlu1 %909  ;;  %v907_v5 = vpop.xlane.xlu0 %906  ;;  %v1618_v4 = vrot.slane %v1204_v35, %v6730_v14  ;;  %v6979_v51 = vmul.f32 0.020408163, %v9255_v24  ;;  %9258 = vst [vmem:[#allocation85_spill] sm:$0xff] %v6982_v63  ;;  %v9260_v35 = vld [vmem:[#allocation86_spill] sm:$0xff] }
 0x233   :  { %v2120_v18 = vsel %vm2119_vm0, %v1881_v2, %v1565_v26  ;;  %v6976_v62 = vmul.f32 0.020408163, %v910_v61  ;;  %v6986_v40 = vmul.f32 0.020408163, %v907_v5  ;;  %v1889_v17 = vrot.slane %v1259_v31, %v6589_v43  ;;  %v9261_v61 = vld [vmem:[#allocation87_spill] sm:$0xff]  ;;  %9267 = vst [vmem:[#allocation86_spill] sm:$0xff] %v7010_v6 }
 0x234   :  { %9256 = vst [vmem:[#allocation32_spill] sm:$0xff] %v6979_v51  ;;  %v6984_v55 = vmul.f32 %v2120_v18, %v1310_v58  ;;  %v1885_v30 = vrot.slane %v1258_v19, %v6605_v25  ;;  %v1614_v2 = vsel %vm1522_vm9, %v1613_v56, %v1609_v45  ;;  %v1623_v5 = vrot.slane %v1205_v60, %v6727_v38  ;;  %v9265_v45 = vld [vmem:[#allocation34_spill] sm:$0xff] }
 0x235   :  { %9254 = vst [vmem:[#allocation29_spill] sm:$0xff] %v6976_v62  ;;  %9259 = vst [vmem:[#allocation31_spill] sm:$0xff] %v6986_v40  ;;  %v1261_v59 = vsub.f32 %v9260_v35, %v6976_v62  ;;  %v1260_v1 = vsub.f32 %v9261_v61, %v6986_v40  ;;  %v1619_v31 = vsel %vm1529_vm10, %v1618_v4, %v1614_v2  ;;  %v9268_v2 = vld [vmem:[#allocation88_spill] sm:$0xff] }
 0x236   :  { %v6995_v26 = vrot.slane %v6984_v55, %v6927_v10  ;;  %v916_v58 = vpop.xlane.xlu1 %915  ;;  %v913_v18 = vpop.xlane.xlu0 %912  ;;  %v1207_v56 = vsub.f32 %v9264_v21, %v6979_v51  ;;  %v1206_v35 = vsub.f32 %v9265_v45, %v6982_v63  ;;  %v1890_v60 = vsel %vm1466_vm1, %v1889_v17, %v1885_v30  ;;  %v9270_v45 = vld [vmem:[#allocation137_spill] sm:$0xff]  ;;  %v9272_v30 = vld [vmem:[#allocation139_spill] sm:$0xff] }
 0x237   :  { %v7001_v24 = vmul.f32 0.020408163, %v916_v58  ;;  %v7003_v19 = vmul.f32 0.020408163, %v913_v18  ;;  %v1894_v61 = vrot.slane %v1260_v1, %v6616_v15  ;;  %v1899_v4 = vrot.slane %v1261_v59, %v6625_v46  ;;  %v9269_v18 = vld [vmem:[#allocation89_spill] sm:$0xff]  ;;  %v9283_v51 = vld [vmem:[#allocation91_spill] sm:$0xff] }
 0x238   :  { %2145 = vbcast.lane.b32.xlu1 %v6995_v26, 264  ;;  %2141 = vbcast.lane.b32.xlu0 %v6995_v26, 256  ;;  %v7022_v62 = vmul.f32 0.020408163, %v9270_v45  ;;  %v1624_v17 = vsel %vm1536_vm11, %v1623_v5, %v1619_v31  ;;  %v7030_v59 = vmul.f32 0.020408163, %v9272_v30  ;;  %v1628_v45 = vrot.slane %v1206_v35, %v6748_v37 }
 0x239   :  { %9262 = vst [vmem:[#allocation132_spill] sm:$0xff] %v7001_v24  ;;  %9263 = vst [vmem:[#allocation133_spill] sm:$0xff] %v7003_v19  ;;  %v1263_v58 = vsub.f32 %v9268_v2, %v7001_v24  ;;  %v1262_v21 = vsub.f32 %v9269_v18, %v7003_v19  ;;  %v1895_v1 = vsel %vm1473_vm2, %v1894_v61, %v1890_v60  ;;  %v9275_v19 = vld [vmem:[#allocation134_spill] sm:$0xff]  ;;  %v9280_v35 = vld [vmem:[#allocation39_spill] sm:$0xff] }
 0x23a   :  { %9271 = vst [vmem:[#allocation87_spill] sm:$0xff] %v7022_v62  ;;  %v922_v40 = vpop.xlane.xlu1 %921  ;;  %v919_v12 = vpop.xlane.xlu0 %918  ;;  %9273 = vst [vmem:[#allocation33_spill] sm:$0xff] %v7030_v59  ;;  %v1633_v18 = vrot.slane %v1207_v56, %v6735_v47  ;;  %v7038_v41 = vmul.f32 0.020408163, %v9275_v19  ;;  %v9278_v5 = vld [vmem:[#allocation38_spill] sm:$0xff]  ;;  %v1210_v19 = vsub.f32 %v9280_v35, %v7022_v62  ;;  %v1629_v35 = vsel %vm1543_vm12, %v1628_v45, %v1624_v17  ;;  %v9293_v17 = vld [vmem:[#allocation93_spill] sm:$0xff] }
 0x23b   :  { %v1904_v2 = vrot.slane %v1262_v21, %v6648_v11  ;;  %v7033_v24 = vmul.f32 0.020408163, %v922_v40  ;;  %v7040_v63 = vmul.f32 0.020408163, %v919_v12  ;;  %v1211_v31 = vsub.f32 %v9278_v5, %v7010_v6  ;;  %v9279_v56 = vld [vmem:[#allocation90_spill] sm:$0xff]  ;;  %v9284_v6 = vld [vmem:[#allocation135_spill] sm:$0xff] }
 0x23c   :  { %9276 = vst [vmem:[#allocation136_spill] sm:$0xff] %v7038_v41  ;;  %2149 = vbcast.lane.b32.xlu1 %v6995_v26, 272  ;;  %2157 = vbcast.lane.b32.xlu0 %v6995_v26, 288  ;;  %v1909_v61 = vrot.slane %v1263_v58, %v6656_v50  ;;  %v1900_v40 = vsel %vm1480_vm3, %v1899_v4, %v1895_v1  ;;  %v9281_v21 = vld [vmem:[#allocation138_spill] sm:$0xff]  ;;  %v7059_v58 = vmul.f32 0.020408163, %v9284_v6 }
 0x23d   :  { %9274 = vst [vmem:[#allocation34_spill] sm:$0xff] %v7033_v24  ;;  %9277 = vst [vmem:[#allocation88_spill] sm:$0xff] %v7040_v63  ;;  %v1265_v60 = vsub.f32 %v9279_v56, %v7033_v24  ;;  %v7053_v12 = vmul.f32 0.020408163, %v9281_v21  ;;  %v1905_v30 = vsel %vm1487_vm4, %v1904_v2, %v1900_v40  ;;  %v1264_v3 = vsub.f32 %v9283_v51, %v7040_v63  ;;  %v9286_v4 = vld [vmem:[#allocation42_spill] sm:$0xff]  ;;  %v9289_v21 = vld [vmem:[#allocation35_spill] sm:$0xff] }
 0x23e   :  { %v928_v49 = vpop.xlane.xlu1 %927  ;;  %v925_v5 = vpop.xlane.xlu0 %924  ;;  %9285 = vst [vmem:[#allocation137_spill] sm:$0xff] %v7059_v58  ;;  %v1212_v1 = vsub.f32 %v9286_v4, %v7030_v59  ;;  %v1209_v2 = vsub.f32 %v9289_v21, %v7038_v41  ;;  %v9290_v40 = vld [vmem:[#allocation140_spill] sm:$0xff]  ;;  %v1652_v21 = vrot.slane %v1211_v31, %v6589_v43 }
 0x23f   :  { %9282 = vst [vmem:[#allocation89_spill] sm:$0xff] %v7053_v12  ;;  %v7063_v56 = vmul.f32 0.020408163, %v928_v49  ;;  %v7065_v24 = vmul.f32 0.020408163, %v925_v5  ;;  %v1914_v51 = vrot.slane %v1264_v3, %v6660_v8  ;;  %v1919_v6 = vrot.slane %v1265_v60, %v6682_v39  ;;  %v9292_v5 = vld [vmem:[#allocation92_spill] sm:$0xff] }
 0x240   :  { %v7071_v62 = vmul.f32 0.020408163, %v9290_v40  ;;  %2153 = vbcast.lane.b32.xlu1 %v6995_v26, 280  ;;  %2165 = vbcast.lane.b32.xlu0 %v6995_v26, 304  ;;  %v1910_v49 = vsel %vm1494_vm5, %v1909_v61, %v1905_v30  ;;  %v1648_v40 = vrot.slane %v1210_v19, %v6605_v25  ;;  %v9294_v3 = vld [vmem:[#allocation41_spill] sm:$0xff]  ;;  %v1657_v60 = vrot.slane %v1212_v1, %v6616_v15  ;;  %v9298_v31 = vld [vmem:[#allocation36_spill] sm:$0xff] }
 0x241   :  { %9287 = vst [vmem:[#allocation139_spill] sm:$0xff] %v7063_v56  ;;  %9288 = vst [vmem:[#allocation134_spill] sm:$0xff] %v7065_v24  ;;  %v1267_v4 = vsub.f32 %v9292_v5, %v7063_v56  ;;  %v1266_v45 = vsub.f32 %v9293_v17, %v7065_v24  ;;  %v1213_v63 = vsub.f32 %v9294_v3, %v7053_v12  ;;  %v9295_v61 = vld [vmem:[#allocation37_spill] sm:$0xff] }
 0x242   :  { %9291 = vst [vmem:[#allocation38_spill] sm:$0xff] %v7071_v62  ;;  %v1915_v59 = vsel %vm1501_vm6, %v1914_v51, %v1910_v49  ;;  %v934_v41 = vpop.xlane.xlu1 %933  ;;  %v931_v0 = vpop.xlane.xlu0 %930  ;;  %v7089_v30 = vmul.f32 0.020408163, %v9295_v61  ;;  %v1208_v17 = vsub.f32 %v9298_v31, %v7059_v58  ;;  %v9299_v19 = vld [vmem:[#allocation45_spill] sm:$0xff]  ;;  %v1634_v1 = vsel %vm1550_vm13, %v1633_v18, %v1629_v35  ;;  %v9305_v35 = vld [vmem:[#allocation44_spill] sm:$0xff] }
 0x243   :  { %v1924_v5 = vrot.slane %v1266_v45, %v6699_v52  ;;  %v7092_v56 = vmul.f32 0.020408163, %v934_v41  ;;  %v1214_v24 = vsub.f32 %v9299_v19, %v7071_v62  ;;  %v9300_v3 = vld [vmem:[#allocation141_spill] sm:$0xff]  ;;  %v7101_v51 = vmul.f32 0.020408163, %v931_v0  ;;  %v9303_v45 = vld [vmem:[#allocation94_spill] sm:$0xff] }
 0x244   :  { %9296 = vst [vmem:[#allocation90_spill] sm:$0xff] %v7089_v30  ;;  %v7099_v12 = vmul.f32 0.020408163, %v9300_v3  ;;  %2161 = vbcast.lane.b32.xlu1 %v6995_v26, 296  ;;  %2173 = vbcast.lane.b32.xlu0 %v6995_v26, 320  ;;  %v1929_v41 = vrot.slane %v1267_v4, %v6709_v57  ;;  %v1920_v49 = vsel %vm1508_vm7, %v1919_v6, %v1915_v59  ;;  %v9304_v3 = vld [vmem:[#allocation95_spill] sm:$0xff] }
 0x245   :  { %9297 = vst [vmem:[#allocation39_spill] sm:$0xff] %v7092_v56  ;;  %9302 = vst [vmem:[#allocation91_spill] sm:$0xff] %v7101_v51  ;;  %v1269_v61 = vsub.f32 %v9303_v45, %v7092_v56  ;;  %v1653_v31 = vsel %vm1466_vm1, %v1652_v21, %v1648_v40  ;;  %v1662_v19 = vrot.slane %v1213_v63, %v6625_v46  ;;  %v9308_v40 = vld [vmem:[#allocation40_spill] sm:$0xff] }
 0x246   :  { %9301 = vst [vmem:[#allocation138_spill] sm:$0xff] %v7099_v12  ;;  %v1925_v0 = vsel %vm1515_vm8, %v1924_v5, %v1920_v49  ;;  %v1268_v62 = vsub.f32 %v9304_v3, %v7101_v51  ;;  %v940_v58 = vpop.xlane.xlu1 %939  ;;  %v937_v34 = vpop.xlane.xlu0 %936  ;;  %v1658_v18 = vsel %vm1473_vm2, %v1657_v60, %v1653_v31  ;;  %v1215_v4 = vsub.f32 %v9305_v35, %v7089_v30  ;;  %v9309_v5 = vld [vmem:[#allocation48_spill] sm:$0xff] }
 0x247   :  { %v7118_v59 = vmul.f32 0.020408163, %v940_v58  ;;  %v7120_v6 = vmul.f32 0.020408163, %v937_v34  ;;  %v1667_v21 = vrot.slane %v1214_v24, %v6648_v11  ;;  %v7124_v63 = vmul.f32 0.020408163, %v9308_v40 }
 0x248   :  { %v1216_v49 = vsub.f32 %v9309_v5, %v7099_v12  ;;  %v1934_v45 = vrot.slane %v1268_v62, %v6730_v14  ;;  %2169 = vbcast.lane.b32.xlu1 %v6995_v26, 312  ;;  %2181 = vbcast.lane.b32.xlu0 %v6995_v26, 336  ;;  %v1939_v60 = vrot.slane %v1269_v61, %v6727_v38  ;;  %v9310_v34 = vld [vmem:[#allocation96_spill] sm:$0xff]  ;;  %v9311_v24 = vld [vmem:[#allocation97_spill] sm:$0xff]  ;;  %v9312_v5 = vld [vmem:[#allocation142_spill] sm:$0xff] }
 0x249   :  { %9306 = vst [vmem:[#allocation135_spill] sm:$0xff] %v7118_v59  ;;  %9307 = vst [vmem:[#allocation42_spill] sm:$0xff] %v7120_v6  ;;  %v1930_v58 = vsel %vm1522_vm9, %v1929_v41, %v1925_v0  ;;  %v1271_v31 = vsub.f32 %v9310_v34, %v7118_v59  ;;  %v1270_v3 = vsub.f32 %v9311_v24, %v7120_v6  ;;  %v7140_v62 = vmul.f32 0.020408163, %v9312_v5  ;;  %v9315_v24 = vld [vmem:[#allocation47_spill] sm:$0xff] }
 0x24a   :  { %v1643_v35 = vrot.slane %v1209_v2, %v6762_v16  ;;  %v1638_v40 = vrot.slane %v1208_v17, %v6789_v36  ;;  %v1935_v56 = vsel %vm1529_vm10, %v1934_v45, %v1930_v58  ;;  %v946_v51 = vpop.xlane.xlu1 %945  ;;  %v943_v30 = vpop.xlane.xlu0 %942  ;;  %v1663_v61 = vsel %vm1480_vm3, %v1662_v19, %v1658_v18  ;;  %v9317_v45 = vld [vmem:[#allocation98_spill] sm:$0xff]  ;;  %v9318_v58 = vld [vmem:[#allocation43_spill] sm:$0xff] }
 0x24b   :  { %9313 = vst [vmem:[#allocation35_spill] sm:$0xff] %v7140_v62  ;;  %v1944_v41 = vrot.slane %v1270_v3, %v6748_v37  ;;  %v7145_v0 = vmul.f32 0.020408163, %v946_v51  ;;  %v1314_v34 = vrot.slane %v6873_v13, %v7025_v42  ;;  %v1672_v2 = vrot.slane %v1215_v4, %v6656_v50  ;;  %v9320_v3 = vld [vmem:[#allocation51_spill] sm:$0xff] }
 0x24c   :  { %v1668_v17 = vsel %vm1487_vm4, %v1667_v21, %v1663_v61  ;;  %v1217_v5 = vsub.f32 %v9315_v24, %v7124_v63  ;;  %v7153_v59 = vmul.f32 0.020408163, %v943_v30  ;;  %2177 = vbcast.lane.b32.xlu1 %v6995_v26, 328  ;;  %2189 = vbcast.lane.b32.xlu0 %v6995_v26, 352  ;;  %v1677_v19 = vrot.slane %v1216_v49, %v6660_v8  ;;  %v9321_v24 = vld [vmem:[#allocation99_spill] sm:$0xff] }
 0x24d   :  { %9314 = vst [vmem:[#allocation140_spill] sm:$0xff] %v7145_v0  ;;  %v1949_v51 = vrot.slane %v1271_v31, %v6735_v47  ;;  %v1940_v18 = vsel %vm1536_vm11, %v1939_v60, %v1935_v56  ;;  %v1273_v4 = vsub.f32 %v9317_v45, %v7145_v0  ;;  %v7163_v21 = vmul.f32 0.020408163, %v9318_v58 }
 0x24e   :  { %9316 = vst [vmem:[#allocation92_spill] sm:$0xff] %v7153_v59  ;;  %v1218_v30 = vsub.f32 %v9320_v3, %v7140_v62  ;;  %v1945_v61 = vsel %vm1543_vm12, %v1944_v41, %v1940_v18  ;;  %v1272_v6 = vsub.f32 %v9321_v24, %v7153_v59  ;;  %v952_v12 = vpop.xlane.xlu1 %951  ;;  %v949_v49 = vpop.xlane.xlu0 %948  ;;  %v1639_v31 = vsel %vm1557_vm14, %v1638_v40, %v1634_v1  ;;  %v9324_v3 = vld [vmem:[#allocation143_spill] sm:$0xff]  ;;  %v9326_v40 = vld [vmem:[#allocation100_spill] sm:$0xff] }
 0x24f   :  { %9319 = vst [vmem:[#allocation93_spill] sm:$0xff] %v7163_v21  ;;  %v1959_v56 = vrot.slane %v1273_v4, %v6762_v16  ;;  %v7172_v60 = vmul.f32 0.020408163, %v952_v12  ;;  %v7174_v45 = vmul.f32 0.020408163, %v949_v49  ;;  %v1682_v58 = vrot.slane %v1217_v5, %v6682_v39  ;;  %v9327_v5 = vld [vmem:[#allocation101_spill] sm:$0xff] }
 0x250   :  { %v1673_v0 = vsel %vm1494_vm5, %v1672_v2, %v1668_v17  ;;  %v7179_v62 = vmul.f32 0.020408163, %v9324_v3  ;;  %v1954_v41 = vrot.slane %v1272_v6, %v6789_v36  ;;  %2185 = vbcast.lane.b32.xlu1 %v6995_v26, 344  ;;  %2197 = vbcast.lane.b32.xlu0 %v6995_v26, 368  ;;  %v1950_v12 = vsel %vm1550_vm13, %v1949_v51, %v1945_v61  ;;  %v9328_v2 = vld [vmem:[#allocation50_spill] sm:$0xff] }
 0x251   :  { %9322 = vst [vmem:[#allocation41_spill] sm:$0xff] %v7172_v60  ;;  %9323 = vst [vmem:[#allocation37_spill] sm:$0xff] %v7174_v45  ;;  %v1678_v1 = vsel %vm1501_vm6, %v1677_v19, %v1673_v0  ;;  %v1275_v18 = vsub.f32 %v9326_v40, %v7172_v60  ;;  %v1274_v4 = vsub.f32 %v9327_v5, %v7174_v45  ;;  %v9329_v0 = vld [vmem:[#allocation46_spill] sm:$0xff] }
 0x252   :  { %9325 = vst [vmem:[#allocation36_spill] sm:$0xff] %v7179_v62  ;;  %v1219_v17 = vsub.f32 %v9328_v2, %v7163_v21  ;;  %v1687_v24 = vrot.slane %v1218_v30, %v6699_v52  ;;  %v1955_v6 = vsel %vm1557_vm14, %v1954_v41, %v1950_v12  ;;  %v958_v49 = vpop.xlane.xlu1 %957  ;;  %v955_v3 = vpop.xlane.xlu0 %954  ;;  %v1644_v59 = vsel %vm1564_vm15, %v1643_v35, %v1639_v31  ;;  %v9332_v5 = vld [vmem:[#allocation54_spill] sm:$0xff] }
 0x253   :  { %v7196_v19 = vmul.f32 0.020408163, %v9329_v0  ;;  %v1960_v51 = vsel %vm1564_vm15, %v1959_v56, %v1955_v6  ;;  %v7199_v61 = vmul.f32 0.020408163, %v958_v49  ;;  %v1683_v40 = vsel %vm1508_vm7, %v1682_v58, %v1678_v1  ;;  %v9334_v56 = vld [vmem:[#allocation102_spill] sm:$0xff]  ;;  %v9335_v6 = vld [vmem:[#allocation103_spill] sm:$0xff] }
 0x254   :  { %v1220_v2 = vsub.f32 %v9332_v5, %v7179_v62  ;;  %v2121_v30 = vsel %vm2119_vm0, %v1960_v51, %v1644_v59  ;;  %v7205_v60 = vmul.f32 0.020408163, %v955_v3  ;;  %2193 = vbcast.lane.b32.xlu1 %v6995_v26, 360  ;;  %v1968_v35 = vrot.slane %v1275_v18, %v6589_v43  ;;  %v9336_v0 = vld [vmem:[#allocation53_spill] sm:$0xff]  ;;  %v9337_v51 = vld [vmem:[#allocation144_spill] sm:$0xff] }
 0x255   :  { %9330 = vst [vmem:[#allocation45_spill] sm:$0xff] %v7196_v19  ;;  %9331 = vst [vmem:[#allocation141_spill] sm:$0xff] %v7199_v61  ;;  %v7208_v41 = vmul.f32 %v2121_v30, %v1314_v34  ;;  %v1964_v31 = vrot.slane %v1274_v4, %v6605_v25  ;;  %v1277_v12 = vsub.f32 %v9334_v56, %v7199_v61  ;;  %v7221_v5 = vmul.f32 0.020408163, %v9337_v51  ;;  %v9343_v51 = vld [vmem:[#allocation104_spill] sm:$0xff] }
 0x256   :  { %9333 = vst [vmem:[#allocation94_spill] sm:$0xff] %v7205_v60  ;;  %v1692_v58 = vrot.slane %v1219_v17, %v6709_v57  ;;  %v1688_v1 = vsel %vm1515_vm8, %v1687_v24, %v1683_v40  ;;  %v1276_v59 = vsub.f32 %v9335_v6, %v7205_v60  ;;  %v964_v49 = vpop.xlane.xlu1 %963  ;;  %v961_v3 = vpop.xlane.xlu0 %960  ;;  %v1221_v34 = vsub.f32 %v9336_v0, %v7196_v19  ;;  %v9340_v24 = vld [vmem:[#allocation49_spill] sm:$0xff] }
 0x257   :  { %9338 = vst [vmem:[#allocation95_spill] sm:$0xff] %v7221_v5  ;;  %v7225_v18 = vrot.slane %v7208_v41, %v6927_v10  ;;  %v7227_v4 = vmul.f32 0.020408163, %v964_v49  ;;  %v1697_v17 = vrot.slane %v1220_v2, %v6730_v14  ;;  %v7231_v40 = vmul.f32 0.020408163, %v9340_v24  ;;  %v9344_v49 = vld [vmem:[#allocation105_spill] sm:$0xff] }
 0x258   :  { %v1973_v30 = vrot.slane %v1276_v59, %v6616_v15  ;;  %v7234_v56 = vmul.f32 0.020408163, %v961_v3  ;;  %2201 = vbcast.lane.b32.xlu1 %v6995_v26, 376  ;;  %v1969_v6 = vsel %vm1466_vm1, %v1968_v35, %v1964_v31  ;;  %v1978_v0 = vrot.slane %v1277_v12, %v6625_v46  ;;  %v9345_v26 = vld [vmem:[#allocation57_spill] sm:$0xff] }
 0x259   :  { %9339 = vst [vmem:[#allocation44_spill] sm:$0xff] %v7227_v4  ;;  %9341 = vst [vmem:[#allocation40_spill] sm:$0xff] %v7231_v40  ;;  %v1279_v61 = vsub.f32 %v9343_v51, %v7227_v4  ;;  %2208 = vbcast.lane.b32.xlu0 %v7225_v18, 256  ;;  %v1693_v3 = vsel %vm1522_vm9, %v1692_v58, %v1688_v1  ;;  %v1222_v45 = vsub.f32 %v9345_v26, %v7221_v5 }
 0x25a   :  { %9342 = vst [vmem:[#allocation48_spill] sm:$0xff] %v7234_v56  ;;  %v1974_v2 = vsel %vm1473_vm2, %v1973_v30, %v1969_v6  ;;  %v1278_v24 = vsub.f32 %v9344_v49, %v7234_v56  ;;  %v970_v60 = vpop.xlane.xlu1 %969  ;;  %v967_v59 = vpop.xlane.xlu0 %966  ;;  %v1702_v12 = vrot.slane %v1221_v34, %v6727_v38  ;;  %v1698_v51 = vsel %vm1529_vm10, %v1697_v17, %v1693_v3  ;;  %v9348_v30 = vld [vmem:[#allocation56_spill] sm:$0xff]  ;;  %v9351_v34 = vld [vmem:[#allocation145_spill] sm:$0xff] }
 0x25b   :  { %v7248_v35 = vmul.f32 0.020408163, %v970_v60  ;;  %v7250_v31 = vmul.f32 0.020408163, %v967_v59  ;;  %v1223_v6 = vsub.f32 %v9348_v30, %v7231_v40  ;;  %v1988_v58 = vrot.slane %v1279_v61, %v6656_v50  ;;  %v9349_v60 = vld [vmem:[#allocation106_spill] sm:$0xff]  ;;  %v9350_v59 = vld [vmem:[#allocation107_spill] sm:$0xff] }
 0x25c   :  { %v1983_v49 = vrot.slane %v1278_v24, %v6648_v11  ;;  %2212 = vbcast.lane.b32.xlu1 %v7225_v18, 264  ;;  %v1979_v1 = vsel %vm1480_vm3, %v1978_v0, %v1974_v2  ;;  %v7266_v17 = vmul.f32 0.020408163, %v9351_v34  ;;  %v1707_v56 = vrot.slane %v1222_v45, %v6748_v37  ;;  %v9357_v45 = vld [vmem:[#allocation108_spill] sm:$0xff] }
 0x25d   :  { %9346 = vst [vmem:[#allocation96_spill] sm:$0xff] %v7248_v35  ;;  %9347 = vst [vmem:[#allocation97_spill] sm:$0xff] %v7250_v31  ;;  %v1281_v26 = vsub.f32 %v9349_v60, %v7248_v35  ;;  %v1280_v4 = vsub.f32 %v9350_v59, %v7250_v31  ;;  %2216 = vbcast.lane.b32.xlu0 %v7225_v18, 272  ;;  %v1703_v2 = vsel %vm1536_vm11, %v1702_v12, %v1698_v51  ;;  %v9354_v60 = vld [vmem:[#allocation52_spill] sm:$0xff]  ;;  %v9361_v31 = vld [vmem:[#allocation109_spill] sm:$0xff] }
 0x25e   :  { %9352 = vst [vmem:[#allocation142_spill] sm:$0xff] %v7266_v17  ;;  %v1984_v3 = vsel %vm1487_vm4, %v1983_v49, %v1979_v1  ;;  %v976_v24 = vpop.xlane.xlu1 %975  ;;  %v973_v30 = vpop.xlane.xlu0 %972  ;;  %v7275_v35 = vmul.f32 0.020408163, %v9354_v60  ;;  %v1712_v34 = vrot.slane %v1223_v6, %v6735_v47  ;;  %v9358_v12 = vld [vmem:[#allocation60_spill] sm:$0xff] }
 0x25f   :  { %v1993_v61 = vrot.slane %v1280_v4, %v6660_v8  ;;  %v7271_v0 = vmul.f32 0.020408163, %v976_v24  ;;  %v7277_v59 = vmul.f32 0.020408163, %v973_v30  ;;  %v1998_v49 = vrot.slane %v1281_v26, %v6682_v39  ;;  %v9359_v24 = vld [vmem:[#allocation55_spill] sm:$0xff] }
 0x260   :  { %9355 = vst [vmem:[#allocation98_spill] sm:$0xff] %v7275_v35  ;;  %2220 = vbcast.lane.b32.xlu1 %v7225_v18, 280  ;;  %v1989_v1 = vsel %vm1494_vm5, %v1988_v58, %v1984_v3  ;;  %v1224_v51 = vsub.f32 %v9358_v12, %v7266_v17  ;;  %v7289_v60 = vmul.f32 0.020408163, %v9359_v24  ;;  %v1708_v58 = vsel %vm1543_vm12, %v1707_v56, %v1703_v2  ;;  %v9362_v3 = vld [vmem:[#allocation146_spill] sm:$0xff]  ;;  %v9366_v12 = vld [vmem:[#allocation59_spill] sm:$0xff] }
 0x261   :  { %9353 = vst [vmem:[#allocation47_spill] sm:$0xff] %v7271_v0  ;;  %9356 = vst [vmem:[#allocation43_spill] sm:$0xff] %v7277_v59  ;;  %v1283_v4 = vsub.f32 %v9357_v45, %v7271_v0  ;;  %2224 = vbcast.lane.b32.xlu0 %v7225_v18, 288  ;;  %v1994_v30 = vsel %vm1501_vm6, %v1993_v61, %v1989_v1  ;;  %v1282_v6 = vsub.f32 %v9361_v31, %v7277_v59  ;;  %v9367_v17 = vld [vmem:[#allocation147_spill] sm:$0xff]  ;;  %v9369_v2 = vld [vmem:[#allocation110_spill] sm:$0xff] }
 0x262   :  { %9360 = vst [vmem:[#allocation51_spill] sm:$0xff] %v7289_v60  ;;  %v982_v5 = vpop.xlane.xlu1 %981  ;;  %v979_v26 = vpop.xlane.xlu0 %978  ;;  %v7296_v40 = vmul.f32 0.020408163, %v9362_v3  ;;  %v1225_v24 = vsub.f32 %v9366_v12, %v7275_v35  ;;  %v7305_v21 = vmul.f32 0.020408163, %v9367_v17  ;;  %v1999_v56 = vsel %vm1508_vm7, %v1998_v49, %v1994_v30  ;;  %v9370_v1 = vld [vmem:[#allocation111_spill] sm:$0xff] }
 0x263   :  { %v7298_v45 = vmul.f32 0.020408163, %v982_v5  ;;  %v7300_v0 = vmul.f32 0.020408163, %v979_v26  ;;  %v2003_v61 = vrot.slane %v1282_v6, %v6699_v52  ;;  %v2008_v31 = vrot.slane %v1283_v4, %v6709_v57  ;;  %v9371_v4 = vld [vmem:[#allocation62_spill] sm:$0xff]  ;;  %v9372_v49 = vld [vmem:[#allocation63_spill] sm:$0xff] }
 0x264   :  { %9363 = vst [vmem:[#allocation99_spill] sm:$0xff] %v7296_v40  ;;  %9368 = vst [vmem:[#allocation101_spill] sm:$0xff] %v7305_v21  ;;  %2228 = vbcast.lane.b32.xlu1 %v7225_v18, 296  ;;  %v1713_v3 = vsel %vm1550_vm13, %v1712_v34, %v1708_v58  ;;  %v1717_v17 = vrot.slane %v1224_v51, %v6789_v36  ;;  %v1227_v35 = vsub.f32 %v9371_v4, %v7289_v60  ;;  %v9376_v51 = vld [vmem:[#allocation66_spill] sm:$0xff] }
 0x265   :  { %9364 = vst [vmem:[#allocation143_spill] sm:$0xff] %v7298_v45  ;;  %9365 = vst [vmem:[#allocation100_spill] sm:$0xff] %v7300_v0  ;;  %v1285_v5 = vsub.f32 %v9369_v2, %v7298_v45  ;;  %v1284_v26 = vsub.f32 %v9370_v1, %v7300_v0  ;;  %2232 = vbcast.lane.b32.xlu0 %v7225_v18, 304  ;;  %v2004_v6 = vsel %vm1515_vm8, %v2003_v61, %v1999_v56  ;;  %v9374_v0 = vld [vmem:[#allocation58_spill] sm:$0xff] }
 0x266   :  { %v988_v12 = vpop.xlane.xlu1 %987  ;;  %v985_v59 = vpop.xlane.xlu0 %984  ;;  %v1226_v30 = vsub.f32 %v9372_v49, %v7296_v40  ;;  %v1722_v1 = vrot.slane %v1225_v24, %v6762_v16  ;;  %v7328_v34 = vmul.f32 0.020408163, %v9374_v0  ;;  %v1228_v58 = vsub.f32 %v9376_v51, %v7305_v21  ;;  %v9379_v49 = vld [vmem:[#allocation148_spill] sm:$0xff]  ;;  %v9381_v51 = vld [vmem:[#allocation113_spill] sm:$0xff] }
 0x267   :  { %v2013_v2 = vrot.slane %v1284_v26, %v6730_v14  ;;  %v7324_v45 = vmul.f32 0.020408163, %v988_v12  ;;  %v7332_v61 = vmul.f32 0.020408163, %v985_v59  ;;  %v2018_v56 = vrot.slane %v1285_v5, %v6727_v38  ;;  %v9378_v26 = vld [vmem:[#allocation112_spill] sm:$0xff] }
 0x268   :  { %9375 = vst [vmem:[#allocation46_spill] sm:$0xff] %v7328_v34  ;;  %2236 = vbcast.lane.b32.xlu1 %v7225_v18, 312  ;;  %v2009_v4 = vsel %vm1522_vm9, %v2008_v31, %v2004_v6  ;;  %v1317_v24 = vsub.s32 2, %v6564_v53  ;;  %v1718_v0 = vsel %vm1557_vm14, %v1717_v17, %v1713_v3  ;;  %v7343_v40 = vmul.f32 0.020408163, %v9379_v49  ;;  %v9384_v3 = vld [vmem:[#allocation65_spill] sm:$0xff] }
 0x269   :  { %9373 = vst [vmem:[#allocation50_spill] sm:$0xff] %v7324_v45  ;;  %9377 = vst [vmem:[#allocation54_spill] sm:$0xff] %v7332_v61  ;;  %v1287_v12 = vsub.f32 %v9378_v26, %v7324_v45  ;;  %2240 = vbcast.lane.b32.xlu0 %v7225_v18, 320  ;;  %v2014_v59 = vsel %vm1529_vm10, %v2013_v2, %v2009_v4  ;;  %v1286_v60 = vsub.f32 %v9381_v51, %v7332_v61  ;;  %v9385_v51 = vld [vmem:[#allocation61_spill] sm:$0xff] }
 0x26a   :  { %9380 = vst [vmem:[#allocation102_spill] sm:$0xff] %v7343_v40  ;;  %v994_v5 = vpop.xlane.xlu1 %993  ;;  %v991_v21 = vpop.xlane.xlu0 %990  ;;  %v1731_v31 = vrot.slane %v1227_v35, %v6589_v43  ;;  %v1727_v6 = vrot.slane %v1226_v30, %v6605_v25  ;;  %v1229_v17 = vsub.f32 %v9384_v3, %v7328_v34  ;;  %v1736_v49 = vrot.slane %v1228_v58, %v6616_v15  ;;  %v9387_v30 = vld [vmem:[#allocation114_spill] sm:$0xff] }
 0x26b   :  { %v7350_v26 = vmul.f32 0.020408163, %v994_v5  ;;  %v7352_v45 = vmul.f32 0.020408163, %v991_v21  ;;  %v2028_v2 = vrot.slane %v1287_v12, %v6735_v47  ;;  %v2023_v4 = vrot.slane %v1286_v60, %v6748_v37  ;;  %v9388_v5 = vld [vmem:[#allocation115_spill] sm:$0xff]  ;;  %v9389_v12 = vld [vmem:[#allocation68_spill] sm:$0xff] }
 0x26c   :  { %2244 = vbcast.lane.b32.xlu1 %v7225_v18, 328  ;;  %v7361_v61 = vmul.f32 0.020408163, %v9385_v51  ;;  %v2019_v35 = vsel %vm1536_vm11, %v2018_v56, %v2014_v59  ;;  %v1723_v58 = vsel %vm1564_vm15, %v1722_v1, %v1718_v0  ;;  %v1230_v60 = vsub.f32 %v9389_v12, %v7343_v40  ;;  %v9390_v56 = vld [vmem:[#allocation153_spill] sm:$0xff] }
 0x26d   :  { %9382 = vst [vmem:[#allocation103_spill] sm:$0xff] %v7350_v26  ;;  %9383 = vst [vmem:[#allocation53_spill] sm:$0xff] %v7352_v45  ;;  %v1289_v21 = vsub.f32 %v9387_v30, %v7350_v26  ;;  %v1288_v62 = vsub.f32 %v9388_v5, %v7352_v45  ;;  %2248 = vbcast.lane.b32.xlu0 %v7225_v18, 336  ;;  %v2024_v3 = vsel %vm1543_vm12, %v2023_v4, %v2019_v35  ;;  %v9394_v35 = vld [vmem:[#allocation67_spill] sm:$0xff] }
 0x26e   :  { %9386 = vst [vmem:[#allocation144_spill] sm:$0xff] %v7361_v61  ;;  %v1318_v51 = vrot.slane %v6873_v13, %v1317_v24  ;;  %v1000_v34 = vpop.xlane.xlu1 %999  ;;  %v997_v19 = vpop.xlane.xlu0 %996  ;;  %v7375_v59 = vmul.f32 0.020408163, %v9390_v56  ;;  %v1732_v1 = vsel %vm1466_vm1, %v1731_v31, %v1727_v6  ;;  %v1741_v0 = vrot.slane %v1229_v17, %v6625_v46  ;;  %v9396_v6 = vld [vmem:[#allocation152_spill] sm:$0xff] }
 0x26f   :  { %v2038_v30 = vrot.slane %v1289_v21, %v6762_v16  ;;  %v2033_v5 = vrot.slane %v1288_v62, %v6789_v36  ;;  %v7379_v26 = vmul.f32 0.020408163, %v1000_v34  ;;  %v2029_v12 = vsel %vm1550_vm13, %v2028_v2, %v2024_v3  ;;  %v9395_v62 = vld [vmem:[#allocation116_spill] sm:$0xff]  ;;  %v9398_v2 = vld [vmem:[#allocation117_spill] sm:$0xff] }
 0x270   :  { %9391 = vst [vmem:[#allocation49_spill] sm:$0xff] %v7375_v59  ;;  %v7384_v4 = vmul.f32 0.020408163, %v997_v19  ;;  %2252 = vbcast.lane.b32.xlu1 %v7225_v18, 344  ;;  %v1737_v24 = vsel %vm1473_vm2, %v1736_v49, %v1732_v1  ;;  %v1231_v56 = vsub.f32 %v9394_v35, %v7361_v61  ;;  %v1746_v31 = vrot.slane %v1230_v60, %v6648_v11  ;;  %v9399_v35 = vld [vmem:[#allocation71_spill] sm:$0xff]  ;;  %v9402_v60 = vld [vmem:[#allocation157_spill] sm:$0xff] }
 0x271   :  { %9392 = vst [vmem:[#allocation104_spill] sm:$0xff] %v7379_v26  ;;  %v2034_v21 = vsel %vm1557_vm14, %v2033_v5, %v2029_v12  ;;  %v1291_v34 = vsub.f32 %v9395_v62, %v7379_v26  ;;  %2256 = vbcast.lane.b32.xlu0 %v7225_v18, 352  ;;  %v7396_v17 = vmul.f32 0.020408163, %v9396_v6  ;;  %v1232_v5 = vsub.f32 %v9399_v35, %v7375_v59  ;;  %v9404_v35 = vld [vmem:[#allocation118_spill] sm:$0xff] }
 0x272   :  { %9393 = vst [vmem:[#allocation105_spill] sm:$0xff] %v7384_v4  ;;  %v2039_v19 = vsel %vm1564_vm15, %v2038_v30, %v2034_v21  ;;  %v1290_v49 = vsub.f32 %v9398_v2, %v7384_v4  ;;  %v1006_v3 = vpop.xlane.xlu1 %1005  ;;  %v1003_v1 = vpop.xlane.xlu0 %1002  ;;  %v7409_v26 = vmul.f32 0.020408163, %v9402_v60  ;;  %v1742_v2 = vsel %vm1480_vm3, %v1741_v0, %v1737_v24 }
 0x273   :  { %9397 = vst [vmem:[#allocation57_spill] sm:$0xff] %v7396_v17  ;;  %v2122_v12 = vsel %vm2119_vm0, %v2039_v19, %v1723_v58  ;;  %v7404_v62 = vmul.f32 0.020408163, %v1006_v3  ;;  %v7406_v45 = vmul.f32 0.020408163, %v1003_v1  ;;  %v2047_v30 = vrot.slane %v1291_v34, %v6589_v43  ;;  %v9405_v19 = vld [vmem:[#allocation119_spill] sm:$0xff] }
 0x274   :  { %9403 = vst [vmem:[#allocation107_spill] sm:$0xff] %v7409_v26  ;;  %v7411_v6 = vmul.f32 %v2122_v12, %v1318_v51  ;;  %v2043_v21 = vrot.slane %v1290_v49, %v6605_v25  ;;  %2260 = vbcast.lane.b32.xlu1 %v7225_v18, 360  ;;  %v1751_v1 = vrot.slane %v1231_v56, %v6656_v50  ;;  %v9406_v34 = vld [vmem:[#allocation70_spill] sm:$0xff]  ;;  %v9409_v56 = vld [vmem:[#allocation156_spill] sm:$0xff] }
 0x275   :  { %9400 = vst [vmem:[#allocation56_spill] sm:$0xff] %v7404_v62  ;;  %9401 = vst [vmem:[#allocation106_spill] sm:$0xff] %v7406_v45  ;;  %v1293_v58 = vsub.f32 %v9404_v35, %v7404_v62  ;;  %v1292_v3 = vsub.f32 %v9405_v19, %v7406_v45  ;;  %2264 = vbcast.lane.b32.xlu0 %v7225_v18, 368  ;;  %v1747_v51 = vsel %vm1487_vm4, %v1746_v31, %v1742_v2  ;;  %v9411_v31 = vld [vmem:[#allocation73_spill] sm:$0xff] }
 0x276   :  { %v1233_v12 = vsub.f32 %v9406_v34, %v7396_v17  ;;  %v7428_v49 = vrot.slane %v7411_v6, %v6927_v10  ;;  %v1012_v0 = vpop.xlane.xlu1 %1011  ;;  %v1009_v24 = vpop.xlane.xlu0 %1008  ;;  %v1756_v60 = vrot.slane %v1232_v5, %v6660_v8  ;;  %v7437_v43 = vmul.f32 0.020408163, %v9409_v56  ;;  %v9414_v45 = vld [vmem:[#allocation161_spill] sm:$0xff] }
 0x277   :  { %v2052_v35 = vrot.slane %v1292_v3, %v6616_v15  ;;  %v7432_v19 = vmul.f32 0.020408163, %v1012_v0  ;;  %v7434_v25 = vmul.f32 0.020408163, %v1009_v24  ;;  %v1234_v2 = vsub.f32 %v9411_v31, %v7409_v26  ;;  %v9412_v3 = vld [vmem:[#allocation120_spill] sm:$0xff]  ;;  %v9413_v24 = vld [vmem:[#allocation121_spill] sm:$0xff] }
 0x278   :  { %9410 = vst [vmem:[#allocation108_spill] sm:$0xff] %v7437_v43  ;;  %v2048_v34 = vsel %vm1466_vm1, %v2047_v30, %v2043_v21  ;;  %v2057_v62 = vrot.slane %v1293_v58, %v6625_v46  ;;  %2268 = vbcast.lane.b32.xlu1 %v7225_v18, 376  ;;  %v1761_v56 = vrot.slane %v1233_v12, %v6682_v39  ;;  %v7453_v30 = vmul.f32 0.020408163, %v9414_v45 }
 0x279   :  { %9407 = vst [vmem:[#allocation145_spill] sm:$0xff] %v7432_v19  ;;  %9408 = vst [vmem:[#allocation52_spill] sm:$0xff] %v7434_v25  ;;  %v2053_v5 = vsel %vm1473_vm2, %v2052_v35, %v2048_v34  ;;  %v1295_v0 = vsub.f32 %v9412_v3, %v7432_v19  ;;  %v1294_v15 = vsub.f32 %v9413_v24, %v7434_v25  ;;  %2275 = vbcast.lane.b32.xlu0 %v7428_v49, 256  ;;  %v9418_v24 = vld [vmem:[#allocation72_spill] sm:$0xff] }
 0x27a   :  { %v1752_v31 = vsel %vm1494_vm5, %v1751_v1, %v1747_v51  ;;  %9415 = vst [vmem:[#allocation60_spill] sm:$0xff] %v7453_v30  ;;  %v1018_v21 = vpop.xlane.xlu1 %1017  ;;  %v1015_v58 = vpop.xlane.xlu0 %1014  ;;  %v1235_v46 = vsub.f32 %v9418_v24, %v7437_v43  ;;  %v1766_v12 = vrot.slane %v1234_v2, %v6699_v52  ;;  %v2058_v45 = vsel %vm1480_vm3, %v2057_v62, %v2053_v5  ;;  %v9419_v51 = vld [vmem:[#allocation160_spill] sm:$0xff]  ;;  %v9423_v2 = vld [vmem:[#allocation75_spill] sm:$0xff] }
 0x27b   :  { %v1757_v18 = vsel %vm1501_vm6, %v1756_v60, %v1752_v31  ;;  %v2062_v35 = vrot.slane %v1294_v15, %v6648_v11  ;;  %v7457_v34 = vmul.f32 0.020408163, %v1018_v21  ;;  %v7459_v3 = vmul.f32 0.020408163, %v1015_v58  ;;  %v9421_v60 = vld [vmem:[#allocation122_spill] sm:$0xff]  ;;  %v9422_v21 = vld [vmem:[#allocation123_spill] sm:$0xff] }
 0x27c   :  { %v2067_v1 = vrot.slane %v1295_v0, %v6656_v50  ;;  %2279 = vbcast.lane.b32.xlu1 %v7428_v49, 264  ;;  %v7468_v19 = vmul.f32 0.020408163, %v9419_v51  ;;  %v1236_v0 = vsub.f32 %v9423_v2, %v7453_v30  ;;  %v9424_v24 = vld [vmem:[#allocation164_spill] sm:$0xff]  ;;  %v1762_v51 = vsel %vm1508_vm7, %v1761_v56, %v1757_v18 }
 0x27d   :  { %9416 = vst [vmem:[#allocation55_spill] sm:$0xff] %v7457_v34  ;;  %9417 = vst [vmem:[#allocation109_spill] sm:$0xff] %v7459_v3  ;;  %v2063_v15 = vsel %vm1487_vm4, %v2062_v35, %v2058_v45  ;;  %v1297_v31 = vsub.f32 %v9421_v60, %v7457_v34  ;;  %v1296_v58 = vsub.f32 %v9422_v21, %v7459_v3  ;;  %2283 = vbcast.lane.b32.xlu0 %v7428_v49, 272  ;;  %v9429_v18 = vld [vmem:[#allocation124_spill] sm:$0xff] }
 0x27e   :  { %9420 = vst [vmem:[#allocation146_spill] sm:$0xff] %v7468_v19  ;;  %v7479_v62 = vmul.f32 0.020408163, %v9424_v24  ;;  %v1024_v5 = vpop.xlane.xlu1 %1023  ;;  %v1021_v11 = vpop.xlane.xlu0 %1020  ;;  %v1771_v21 = vrot.slane %v1235_v46, %v6709_v57  ;;  %v1767_v50 = vsel %vm1515_vm8, %v1766_v12, %v1762_v51  ;;  %v2068_v2 = vsel %vm1494_vm5, %v2067_v1, %v2063_v15  ;;  %v9428_v24 = vld [vmem:[#allocation74_spill] sm:$0xff]  ;;  %v9431_v12 = vld [vmem:[#allocation163_spill] sm:$0xff]  ;;  %v9433_v1 = vld [vmem:[#allocation77_spill] sm:$0xff] }
 0x27f   :  { %v2072_v35 = vrot.slane %v1296_v58, %v6660_v8  ;;  %v7483_v45 = vmul.f32 0.020408163, %v1024_v5  ;;  %v7485_v60 = vmul.f32 0.020408163, %v1021_v11  ;;  %v2077_v34 = vrot.slane %v1297_v31, %v6682_v39  ;;  %v9430_v11 = vld [vmem:[#allocation125_spill] sm:$0xff]  ;;  %v9434_v39 = vld [vmem:[#allocation168_spill] sm:$0xff] }
 0x280   :  { %9425 = vst [vmem:[#allocation59_spill] sm:$0xff] %v7479_v62  ;;  %2287 = vbcast.lane.b32.xlu1 %v7428_v49, 280  ;;  %v1237_v30 = vsub.f32 %v9428_v24, %v7468_v19  ;;  %v1776_v46 = vrot.slane %v1236_v0, %v6730_v14  ;;  %v7502_v31 = vmul.f32 0.020408163, %v9431_v12  ;;  %v1238_v15 = vsub.f32 %v9433_v1, %v7479_v62 }
 0x281   :  { %9426 = vst [vmem:[#allocation147_spill] sm:$0xff] %v7483_v45  ;;  %9427 = vst [vmem:[#allocation110_spill] sm:$0xff] %v7485_v60  ;;  %v2073_v56 = vsel %vm1501_vm6, %v2072_v35, %v2068_v2  ;;  %v1299_v58 = vsub.f32 %v9429_v18, %v7483_v45  ;;  %v1298_v5 = vsub.f32 %v9430_v11, %v7485_v60  ;;  %2291 = vbcast.lane.b32.xlu0 %v7428_v49, 288 }
 0x282   :  { %9432 = vst [vmem:[#allocation111_spill] sm:$0xff] %v7502_v31  ;;  %v1030_v51 = vpop.xlane.xlu1 %1029  ;;  %v1027_v24 = vpop.xlane.xlu0 %1026  ;;  %v7507_v35 = vmul.f32 0.020408163, %v9434_v39  ;;  %v1772_v8 = vsel %vm1522_vm9, %v1771_v21, %v1767_v50  ;;  %v2078_v12 = vsel %vm1508_vm7, %v2077_v34, %v2073_v56  ;;  %v1781_v1 = vrot.slane %v1237_v30, %v6727_v38  ;;  %v9438_v39 = vld [vmem:[#allocation126_spill] sm:$0xff]  ;;  %v9440_v21 = vld [vmem:[#allocation76_spill] sm:$0xff]  ;;  %v9441_v56 = vld [vmem:[#allocation167_spill] sm:$0xff] }
 0x283   :  { %v2082_v2 = vrot.slane %v1298_v5, %v6699_v52  ;;  %v7510_v18 = vmul.f32 0.020408163, %v1030_v51  ;;  %v7512_v11 = vmul.f32 0.020408163, %v1027_v24  ;;  %v2087_v0 = vrot.slane %v1299_v58, %v6709_v57  ;;  %v9439_v5 = vld [vmem:[#allocation127_spill] sm:$0xff] }
 0x284   :  { %9435 = vst [vmem:[#allocation62_spill] sm:$0xff] %v7507_v35  ;;  %2295 = vbcast.lane.b32.xlu1 %v7428_v49, 296  ;;  %v1777_v50 = vsel %vm1529_vm10, %v1776_v46, %v1772_v8  ;;  %v1239_v58 = vsub.f32 %v9440_v21, %v7502_v31  ;;  %v1786_v34 = vrot.slane %v1238_v15, %v6748_v37  ;;  %v7530_v24 = vmul.f32 0.020408163, %v9441_v56  ;;  %v9446_v56 = vld [vmem:[#allocation128_spill] sm:$0xff] }
 0x285   :  { %9436 = vst [vmem:[#allocation63_spill] sm:$0xff] %v7510_v18  ;;  %9437 = vst [vmem:[#allocation58_spill] sm:$0xff] %v7512_v11  ;;  %v2083_v62 = vsel %vm1515_vm8, %v2082_v2, %v2078_v12  ;;  %v1301_v19 = vsub.f32 %v9438_v39, %v7510_v18  ;;  %v1300_v51 = vsub.f32 %v9439_v5, %v7512_v11  ;;  %2299 = vbcast.lane.b32.xlu0 %v7428_v49, 304  ;;  %v9443_v12 = vld [vmem:[#allocation79_spill] sm:$0xff] }
 0x286   :  { %9442 = vst [vmem:[#allocation66_spill] sm:$0xff] %v7530_v24  ;;  %v1036_v30 = vpop.xlane.xlu1 %1035  ;;  %v1033_v2 = vpop.xlane.xlu0 %1032  ;;  %v1240_v39 = vsub.f32 %v9443_v12, %v7507_v35  ;;  %v2088_v46 = vsel %vm1522_vm9, %v2087_v0, %v2083_v62  ;;  %v1782_v15 = vsel %vm1536_vm11, %v1781_v1, %v1777_v50  ;;  %v9447_v12 = vld [vmem:[#allocation129_spill] sm:$0xff]  ;;  %v9448_v62 = vld [vmem:[#allocation78_spill] sm:$0xff]  ;;  %v2541_v25 = vrot.slane %v7411_v6, %v7025_v42 }
 0x287   :  { %v2092_v52 = vrot.slane %v1300_v51, %v6730_v14  ;;  %v7535_v5 = vmul.f32 0.020408163, %v1036_v30  ;;  %v7537_v57 = vmul.f32 0.020408163, %v1033_v2  ;;  %v2097_v8 = vrot.slane %v1301_v19, %v6727_v38 }
 0x288   :  { %2303 = vbcast.lane.b32.xlu1 %v7428_v49, 312  ;;  %v1791_v30 = vrot.slane %v1239_v58, %v6735_v47  ;;  %v1787_v19 = vsel %vm1543_vm12, %v1786_v34, %v1782_v15  ;;  %v1241_v0 = vsub.f32 %v9448_v62, %v7530_v24  ;;  %v1796_v1 = vrot.slane %v1240_v39, %v6789_v36  ;;  %v9451_v15 = vld [vmem:[#allocation130_spill] sm:$0xff]  ;;  %v9452_v39 = vld [vmem:[#allocation131_spill] sm:$0xff] }
 0x289   :  { %9444 = vst [vmem:[#allocation112_spill] sm:$0xff] %v7535_v5  ;;  %9445 = vst [vmem:[#allocation148_spill] sm:$0xff] %v7537_v57  ;;  %v2093_v21 = vsel %vm1529_vm10, %v2092_v52, %v2088_v46  ;;  %v1303_v18 = vsub.f32 %v9446_v56, %v7535_v5  ;;  %v1302_v51 = vsub.f32 %v9447_v12, %v7537_v57  ;;  %2307 = vbcast.lane.b32.xlu0 %v7428_v49, 320 }
 0x28a   :  { %v1042_v2 = vpop.xlane.xlu1 %1041  ;;  %v1039_v38 = vpop.xlane.xlu0 %1038  ;;  %v2098_v12 = vsel %vm1536_vm11, %v2097_v8, %v2093_v21  ;;  %v1321_v58 = vsub.s32 3, %v6564_v53 }
 0x28b   :  { %v2102_v52 = vrot.slane %v1302_v51, %v6748_v37  ;;  %v7555_v50 = vmul.f32 0.020408163, %v1042_v2  ;;  %v7557_v46 = vmul.f32 0.020408163, %v1039_v38  ;;  %v2107_v56 = vrot.slane %v1303_v18, %v6735_v47 }
 0x28c   :  { %2311 = vbcast.lane.b32.xlu1 %v7428_v49, 328  ;;  %v1801_v38 = vrot.slane %v1241_v0, %v6762_v16  ;;  %v1792_v18 = vsel %vm1550_vm13, %v1791_v30, %v1787_v19  ;;  %v1322_v2 = vrot.slane %v6873_v13, %v1321_v58 }
 0x28d   :  { %9449 = vst [vmem:[#allocation113_spill] sm:$0xff] %v7555_v50  ;;  %9450 = vst [vmem:[#allocation65_spill] sm:$0xff] %v7557_v46  ;;  %v2103_v34 = vsel %vm1543_vm12, %v2102_v52, %v2098_v12  ;;  %v1305_v62 = vsub.f32 %v9451_v15, %v7555_v50  ;;  %v1304_v51 = vsub.f32 %v9452_v39, %v7557_v46  ;;  %2315 = vbcast.lane.b32.xlu0 %v7428_v49, 336 }
 0x28e   :  { %v1797_v8 = vsel %vm1557_vm14, %v1796_v1, %v1792_v18  ;;  %v2108_v52 = vsel %vm1550_vm13, %v2107_v56, %v2103_v34  ;;  %v2474_v50 = vrot.slane %v7208_v41, %v7025_v42 }
 0x28f   :  { %v2117_v53 = vrot.slane %v1305_v62, %v6762_v16  ;;  %v2112_v21 = vrot.slane %v1304_v51, %v6789_v36  ;;  %v1802_v0 = vsel %vm1564_vm15, %v1801_v38, %v1797_v8  ;;  %v2407_v51 = vrot.slane %v6984_v55, %v7025_v42 }
 0x290   :  { %2319 = vbcast.lane.b32.xlu1 %v7428_v49, 344  ;;  %v4977_v38 = vmov 0  }
 0x291   :  { %v2113_v12 = vsel %vm1557_vm14, %v2112_v21, %v2108_v52  ;;  %2323 = vbcast.lane.b32.xlu0 %v7428_v49, 352  ;;  %4635 = vset.pattern.permute.xlu1 %v4977_v38 }
 0x292   :  { %v2118_v30 = vsel %vm1564_vm15, %v2117_v53, %v2113_v12  ;;  %4629 = vset.pattern.permute.xlu0 %v4977_v38 }
 0x293   :  { %v2123_v19 = vsel %vm2119_vm0, %v2118_v30, %v1802_v0 }
 0x294   :  { %v7582_v1 = vmul.f32 %v2123_v19, %v1322_v2  ;;  %2327 = vbcast.lane.b32.xlu1 %v7428_v49, 360 }
 0x295   :  { %2331 = vbcast.lane.b32.xlu0 %v7428_v49, 368 }
 0x296   :  { %v2340_v13 = vrot.slane %v7582_v1, %v6927_v10 }
 0x298   :  { %2335 = vbcast.lane.b32.xlu1 %v7428_v49, 376 }
 0x299   :  { %2342 = vbcast.lane.b32.xlu0 %v2340_v13, 256 }
 0x29c   :  { %2346 = vbcast.lane.b32.xlu1 %v2340_v13, 264 }
 0x29d   :  { %2350 = vbcast.lane.b32.xlu0 %v2340_v13, 272 }
 0x2a0   :  { %2354 = vbcast.lane.b32.xlu1 %v2340_v13, 280 }
 0x2a1   :  { %2358 = vbcast.lane.b32.xlu0 %v2340_v13, 288 }
 0x2a4   :  { %2362 = vbcast.lane.b32.xlu1 %v2340_v13, 296 }
 0x2a5   :  { %2366 = vbcast.lane.b32.xlu0 %v2340_v13, 304 }
 0x2a8   :  { %2370 = vbcast.lane.b32.xlu1 %v2340_v13, 312 }
 0x2a9   :  { %2374 = vbcast.lane.b32.xlu0 %v2340_v13, 320 }
 0x2aa   :  { %v7589_v56 = vpop.permute.xlu1 %2145  ;;  %v7591_v58 = vpop.permute.xlu0 %2141 }
 0x2ac   :  { %2378 = vbcast.lane.b32.xlu1 %v2340_v13, 328 }
 0x2ad   :  { %2382 = vbcast.lane.b32.xlu0 %v2340_v13, 336 }
 0x2ae   :  { %v7593_v34 = vpop.permute.xlu1 %2149  ;;  %v7595_v10 = vpop.permute.xlu0 %2157 }
 0x2b0   :  { %2386 = vbcast.lane.b32.xlu1 %v2340_v13, 344 }
 0x2b1   :  { %2390 = vbcast.lane.b32.xlu0 %v2340_v13, 352 }
 0x2b2   :  { %v7597_v49 = vpop.permute.xlu1 %2153  ;;  %v7599_v15 = vpop.permute.xlu0 %2165 }
 0x2b4   :  { %2394 = vbcast.lane.b32.xlu1 %v2340_v13, 360 }
 0x2b5   :  { %2398 = vbcast.lane.b32.xlu0 %v2340_v13, 368 }
 0x2b6   :  { %v7601_v62 = vpop.permute.xlu1 %2161  ;;  %v7603_v39 = vpop.permute.xlu0 %2173 }
 0x2b8   :  { %2402 = vbcast.lane.b32.xlu1 %v2340_v13, 376 }
 0x2b9   :  { %2409 = vbcast.lane.b32.xlu0 %v2407_v51, 256 }
 0x2ba   :  { %v7607_v18 = vpop.permute.xlu1 %2169  ;;  %v7609_v8 = vpop.permute.xlu0 %2181 }
 0x2bc   :  { %2413 = vbcast.lane.b32.xlu1 %v2407_v51, 264 }
 0x2bd   :  { %2417 = vbcast.lane.b32.xlu0 %v2407_v51, 272 }
 0x2be   :  { %v7611_v53 = vpop.permute.xlu1 %2177  ;;  %v7613_v21 = vpop.permute.xlu0 %2189 }
 0x2c0   :  { %2421 = vbcast.lane.b32.xlu1 %v2407_v51, 280 }
 0x2c1   :  { %2425 = vbcast.lane.b32.xlu0 %v2407_v51, 288 }
 0x2c2   :  { %v7615_v2 = vpop.permute.xlu1 %2185  ;;  %v7619_v52 = vpop.permute.xlu0 %2197 }
 0x2c4   :  { %2429 = vbcast.lane.b32.xlu1 %v2407_v51, 296 }
 0x2c5   :  { %2433 = vbcast.lane.b32.xlu0 %v2407_v51, 304 }
 0x2c6   :  { %v7617_v55 = vpop.permute.xlu1 %2193 }
 0x2c8   :  { %2437 = vbcast.lane.b32.xlu1 %v2407_v51, 312 }
 0x2c9   :  { %2441 = vbcast.lane.b32.xlu0 %v2407_v51, 320 }
 0x2ca   :  { %v7621_v12 = vpop.permute.xlu1 %2201 }
 0x2cb   :  { %v7623_v0 = vpop.permute.xlu0 %2208 }
 0x2cc   :  { %2445 = vbcast.lane.b32.xlu1 %v2407_v51, 328 }
 0x2cd   :  { %2449 = vbcast.lane.b32.xlu0 %v2407_v51, 336 }
 0x2ce   :  { %v7625_v30 = vpop.permute.xlu1 %2212 }
 0x2cf   :  { %v7627_v19 = vpop.permute.xlu0 %2216 }
 0x2d0   :  { %2453 = vbcast.lane.b32.xlu1 %v2407_v51, 344 }
 0x2d1   :  { %2457 = vbcast.lane.b32.xlu0 %v2407_v51, 352 }
 0x2d2   :  { %v7629_v13 = vpop.permute.xlu1 %2220 }
 0x2d3   :  { %v7631_v38 = vpop.permute.xlu0 %2224 }
 0x2d4   :  { %2461 = vbcast.lane.b32.xlu1 %v2407_v51, 360 }
 0x2d5   :  { %2465 = vbcast.lane.b32.xlu0 %v2407_v51, 368 }
 0x2d6   :  { %v7633_v16 = vpop.permute.xlu1 %2228 }
 0x2d7   :  { %v7637_v36 = vpop.permute.xlu0 %2232 }
 0x2d8   :  { %2469 = vbcast.lane.b32.xlu1 %v2407_v51, 376 }
 0x2d9   :  { %2476 = vbcast.lane.b32.xlu0 %v2474_v50, 256 }
 0x2da   :  { %v7639_v37 = vpop.permute.xlu1 %2236 }
 0x2db   :  { %v7641_v47 = vpop.permute.xlu0 %2240 }
 0x2dc   :  { %2480 = vbcast.lane.b32.xlu1 %v2474_v50, 264 }
 0x2dd   :  { %2484 = vbcast.lane.b32.xlu0 %v2474_v50, 272 }
 0x2de   :  { %v7643_v14 = vpop.permute.xlu1 %2244 }
 0x2df   :  { %v7645_v46 = vpop.permute.xlu0 %2248 }
 0x2e0   :  { %2488 = vbcast.lane.b32.xlu1 %v2474_v50, 280 }
 0x2e1   :  { %2492 = vbcast.lane.b32.xlu0 %v2474_v50, 288 }
 0x2e2   :  { %v7647_v5 = vpop.permute.xlu1 %2252 }
 0x2e3   :  { %v7649_v57 = vpop.permute.xlu0 %2256 }
 0x2e4   :  { %2496 = vbcast.lane.b32.xlu1 %v2474_v50, 296 }
 0x2e5   :  { %2500 = vbcast.lane.b32.xlu0 %v2474_v50, 304 }
 0x2e6   :  { %v7651_v41 = vpop.permute.xlu1 %2260 }
 0x2e7   :  { %v7653_v51 = vpop.permute.xlu0 %2264 }
 0x2e8   :  { %2504 = vbcast.lane.b32.xlu1 %v2474_v50, 312 }
 0x2e9   :  { %2508 = vbcast.lane.b32.xlu0 %v2474_v50, 320 }
 0x2ea   :  { %v7655_v24 = vpop.permute.xlu1 %2268 }
 0x2eb   :  { %v7657_v35 = vpop.permute.xlu0 %2275 }
 0x2ec   :  { %9453 = vst [vmem:[#allocation61_spill] sm:$0xff] %v7657_v35  ;;  %2512 = vbcast.lane.b32.xlu1 %v2474_v50, 328  ;;  %v9490_v35 = vld [vmem:[#allocation150_spill] sm:$0xff] }
 0x2ed   :  { %2516 = vbcast.lane.b32.xlu0 %v2474_v50, 336 }
 0x2ee   :  { %v7659_v31 = vpop.permute.xlu1 %2279 }
 0x2ef   :  { %v7661_v11 = vpop.permute.xlu0 %2283 }
 0x2f0   :  { %2520 = vbcast.lane.b32.xlu1 %v2474_v50, 344 }
 0x2f1   :  { %2524 = vbcast.lane.b32.xlu0 %v2474_v50, 352 }
 0x2f2   :  { %v7663_v45 = vpop.permute.xlu1 %2287 }
 0x2f3   :  { %v7665_v60 = vpop.permute.xlu0 %2291 }
 0x2f4   :  { %9454 = vst [vmem:[#allocation114_spill] sm:$0xff] %v7665_v60  ;;  %2528 = vbcast.lane.b32.xlu1 %v2474_v50, 360 }
 0x2f5   :  { %2532 = vbcast.lane.b32.xlu0 %v2474_v50, 368 }
 0x2f6   :  { %v7667_v3 = vpop.permute.xlu1 %2295 }
 0x2f7   :  { %9455 = vst [vmem:[#allocation115_spill] sm:$0xff] %v7667_v3  ;;  %v7671_v4 = vpop.permute.xlu0 %2299  ;;  %v9489_v3 = vld [vmem:[#allocation9_spill] sm:$0xff] }
 0x2f8   :  { %9456 = vst [vmem:[#allocation68_spill] sm:$0xff] %v7671_v4  ;;  %2536 = vbcast.lane.b32.xlu1 %v2474_v50, 376  ;;  %v2807_v4 = vadd.f32 %v7607_v18, %v9489_v3  ;;  %v2811_v3 = vadd.f32 %v7615_v2, %v6723_v23  ;;  %v2815_v23 = vadd.f32 %v7621_v12, %v6814_v54 }
 0x2f9   :  { %2543 = vbcast.lane.b32.xlu0 %v2541_v25, 256  ;;  %v2819_v54 = vadd.f32 %v7629_v13, %v6817_v22  ;;  %v2823_v22 = vadd.f32 %v7639_v37, %v6884_v9  ;;  %v2827_v37 = vadd.f32 %v7647_v5, %v6949_v32 }
 0x2fa   :  { %v7673_v26 = vpop.permute.xlu1 %2303 }
 0x2fb   :  { %v7675_v43 = vpop.permute.xlu0 %2307 }
 0x2fc   :  { %9457 = vst [vmem:[#allocation153_spill] sm:$0xff] %v7675_v43  ;;  %2547 = vbcast.lane.b32.xlu1 %v2541_v25, 264 }
 0x2fd   :  { %2551 = vbcast.lane.b32.xlu0 %v2541_v25, 272 }
 0x2fe   :  { %v7677_v40 = vpop.permute.xlu1 %2311 }
 0x2ff   :  { %9458 = vst [vmem:[#allocation67_spill] sm:$0xff] %v7677_v40  ;;  %v7679_v61 = vpop.permute.xlu0 %2315 }
 0x300   :  { %9459 = vst [vmem:[#allocation116_spill] sm:$0xff] %v7679_v61  ;;  %2555 = vbcast.lane.b32.xlu1 %v2541_v25, 280 }
 0x301   :  { %2559 = vbcast.lane.b32.xlu0 %v2541_v25, 288 }
 0x302   :  { %v7681_v59 = vpop.permute.xlu1 %2319 }
 0x303   :  { %9460 = vst [vmem:[#allocation152_spill] sm:$0xff] %v7681_v59  ;;  %v7683_v17 = vpop.permute.xlu0 %2323 }
 0x304   :  { %9461 = vst [vmem:[#allocation117_spill] sm:$0xff] %v7683_v17  ;;  %2563 = vbcast.lane.b32.xlu1 %v2541_v25, 296 }
 0x305   :  { %2567 = vbcast.lane.b32.xlu0 %v2541_v25, 304 }
 0x306   :  { %v7685_v6 = vpop.permute.xlu1 %2327 }
 0x307   :  { %9462 = vst [vmem:[#allocation71_spill] sm:$0xff] %v7685_v6  ;;  %v7687_v50 = vpop.permute.xlu0 %2331 }
 0x308   :  { %9463 = vst [vmem:[#allocation157_spill] sm:$0xff] %v7687_v50  ;;  %2571 = vbcast.lane.b32.xlu1 %v2541_v25, 312  ;;  %v2608_v50 = vrot.slane %v7582_v1, %v7025_v42 }
 0x309   :  { %2575 = vbcast.lane.b32.xlu0 %v2541_v25, 320 }
 0x30a   :  { %v7689_v43 = vpop.permute.xlu1 %2335 }
 0x30b   :  { %9464 = vst [vmem:[#allocation118_spill] sm:$0xff] %v7689_v43  ;;  %v7691_v60 = vpop.permute.xlu0 %2342 }
 0x30c   :  { %9465 = vst [vmem:[#allocation119_spill] sm:$0xff] %v7691_v60  ;;  %2579 = vbcast.lane.b32.xlu1 %v2541_v25, 328 }
 0x30d   :  { %2583 = vbcast.lane.b32.xlu0 %v2541_v25, 336 }
 0x30e   :  { %v7693_v40 = vpop.permute.xlu1 %2346 }
 0x30f   :  { %9466 = vst [vmem:[#allocation70_spill] sm:$0xff] %v7693_v40  ;;  %v7695_v61 = vpop.permute.xlu0 %2350 }
 0x310   :  { %9467 = vst [vmem:[#allocation156_spill] sm:$0xff] %v7695_v61  ;;  %2587 = vbcast.lane.b32.xlu1 %v2541_v25, 344 }
 0x311   :  { %2591 = vbcast.lane.b32.xlu0 %v2541_v25, 352 }
 0x312   :  { %v7697_v17 = vpop.permute.xlu1 %2354 }
 0x313   :  { %9468 = vst [vmem:[#allocation73_spill] sm:$0xff] %v7697_v17  ;;  %v7699_v59 = vpop.permute.xlu0 %2358 }
 0x314   :  { %9469 = vst [vmem:[#allocation120_spill] sm:$0xff] %v7699_v59  ;;  %2595 = vbcast.lane.b32.xlu1 %v2541_v25, 360 }
 0x315   :  { %2599 = vbcast.lane.b32.xlu0 %v2541_v25, 368 }
 0x316   :  { %v7701_v6 = vpop.permute.xlu1 %2362 }
 0x317   :  { %9470 = vst [vmem:[#allocation121_spill] sm:$0xff] %v7701_v6  ;;  %v7705_v60 = vpop.permute.xlu0 %2366 }
 0x318   :  { %9471 = vst [vmem:[#allocation161_spill] sm:$0xff] %v7705_v60  ;;  %2603 = vbcast.lane.b32.xlu1 %v2541_v25, 376 }
 0x319   :  { %2610 = vbcast.lane.b32.xlu0 %v2608_v50, 256 }
 0x31a   :  { %v7707_v40 = vpop.permute.xlu1 %2370 }
 0x31b   :  { %9472 = vst [vmem:[#allocation72_spill] sm:$0xff] %v7707_v40  ;;  %v7709_v61 = vpop.permute.xlu0 %2374 }
 0x31c   :  { %9473 = vst [vmem:[#allocation160_spill] sm:$0xff] %v7709_v61  ;;  %2614 = vbcast.lane.b32.xlu1 %v2608_v50, 264 }
 0x31d   :  { %2618 = vbcast.lane.b32.xlu0 %v2608_v50, 272 }
 0x31e   :  { %v7711_v17 = vpop.permute.xlu1 %2378 }
 0x31f   :  { %9474 = vst [vmem:[#allocation122_spill] sm:$0xff] %v7711_v17  ;;  %v7713_v59 = vpop.permute.xlu0 %2382 }
 0x320   :  { %9475 = vst [vmem:[#allocation123_spill] sm:$0xff] %v7713_v59  ;;  %2622 = vbcast.lane.b32.xlu1 %v2608_v50, 280 }
 0x321   :  { %2626 = vbcast.lane.b32.xlu0 %v2608_v50, 288 }
 0x322   :  { %v7715_v6 = vpop.permute.xlu1 %2386 }
 0x323   :  { %9476 = vst [vmem:[#allocation75_spill] sm:$0xff] %v7715_v6  ;;  %v7717_v43 = vpop.permute.xlu0 %2390  ;;  %v9485_v6 = vld [vmem:[#allocation64_spill] sm:$0xff] }
 0x324   :  { %9477 = vst [vmem:[#allocation164_spill] sm:$0xff] %v7717_v43  ;;  %2630 = vbcast.lane.b32.xlu1 %v2608_v50, 296 }
 0x325   :  { %2634 = vbcast.lane.b32.xlu0 %v2608_v50, 304 }
 0x326   :  { %v7719_v25 = vpop.permute.xlu1 %2394 }
 0x327   :  { %9478 = vst [vmem:[#allocation74_spill] sm:$0xff] %v7719_v25  ;;  %v7721_v42 = vpop.permute.xlu0 %2398  ;;  %v2801_v25 = vadd.f32 %v7589_v56, %v9485_v6  ;;  %v2802_v56 = vadd.f32 %v7593_v34, %v9490_v35  ;;  %v9494_v34 = vld [vmem:[#allocation14_spill] sm:$0xff] }
 0x328   :  { %9479 = vst [vmem:[#allocation124_spill] sm:$0xff] %v7721_v42  ;;  %2638 = vbcast.lane.b32.xlu1 %v2608_v50, 312  ;;  %v9486_v42 = vld [vmem:[#allocation149_spill] sm:$0xff] }
 0x329   :  { %2642 = vbcast.lane.b32.xlu0 %v2608_v50, 320  ;;  %v2800_v60 = vadd.f32 %v7591_v58, %v9486_v42  ;;  %v9491_v58 = vld [vmem:[#allocation10_spill] sm:$0xff] }
 0x32a   :  { %v7723_v1 = vpop.permute.xlu1 %2402  ;;  %v2806_v6 = vadd.f32 %v7599_v15, %v9491_v58  ;;  %v2810_v15 = vadd.f32 %v7609_v8, %v9494_v34  ;;  %v2814_v8 = vadd.f32 %v7619_v52, %v6834_v27  ;;  %v2818_v27 = vadd.f32 %v7627_v19, %v6792_v33  ;;  %v9502_v34 = vld [vmem:[#allocation137_spill] sm:$0xff] }
 0x32b   :  { %9480 = vst [vmem:[#allocation125_spill] sm:$0xff] %v7723_v1  ;;  %v7725_v61 = vpop.permute.xlu0 %2409  ;;  %v9488_v1 = vld [vmem:[#allocation6_spill] sm:$0xff]  ;;  %v2822_v33 = vadd.f32 %v7637_v36, %v6861_v29 }
 0x32c   :  { %9481 = vst [vmem:[#allocation163_spill] sm:$0xff] %v7725_v61  ;;  %2646 = vbcast.lane.b32.xlu1 %v2608_v50, 328  ;;  %v2803_v61 = vadd.f32 %v7597_v49, %v9488_v1 }
 0x32d   :  { %2650 = vbcast.lane.b32.xlu0 %v2608_v50, 336  ;;  %v4686_v19 = vpack.i.bf16 %v2823_v22, %v2822_v33  ;;  %v9512_v22 = vld [vmem:[#allocation90_spill] sm:$0xff] }
 0x32e   :  { %v7727_v59 = vpop.permute.xlu1 %2413  ;;  %v4636_v42 = vpack.i.bf16 %v2803_v61, %v2802_v56 }
 0x32f   :  { %9482 = vst [vmem:[#allocation77_spill] sm:$0xff] %v7727_v59  ;;  %v7729_v17 = vpop.permute.xlu0 %2417 }
 0x330   :  { %9483 = vst [vmem:[#allocation168_spill] sm:$0xff] %v7729_v17  ;;  %2654 = vbcast.lane.b32.xlu1 %v2608_v50, 344  ;;  %v4630_v17 = vpack.i.bf16 %v2801_v25, %v2800_v60  ;;  %v4646_v60 = vpack.i.bf16 %v2807_v4, %v2806_v6  ;;  %v9493_v25 = vld [vmem:[#allocation5_spill] sm:$0xff]  ;;  %v4656_v4 = vpack.i.bf16 %v2811_v3, %v2810_v15 }
 0x331   :  { %2658 = vbcast.lane.b32.xlu0 %v2608_v50, 352  ;;  %v2804_v35 = vadd.f32 %v7595_v10, %v9493_v25  ;;  %v4666_v6 = vpack.i.bf16 %v2815_v23, %v2814_v8  ;;  %v9500_v25 = vld [vmem:[#allocation136_spill] sm:$0xff] }
 0x332   :  { %v7731_v43 = vpop.permute.xlu1 %2421  ;;  %v2831_v32 = vadd.f32 %v7655_v24, %v9500_v25 }
 0x333   :  { %9484 = vst [vmem:[#allocation126_spill] sm:$0xff] %v7731_v43  ;;  %v7737_v40 = vpop.permute.xlu0 %2425 }
 0x334   :  { %9487 = vst [vmem:[#allocation127_spill] sm:$0xff] %v7737_v40  ;;  %2662 = vbcast.lane.b32.xlu1 %v2608_v50, 360  ;;  %v9492_v40 = vld [vmem:[#allocation69_spill] sm:$0xff] }
 0x335   :  { %2666 = vbcast.lane.b32.xlu0 %v2608_v50, 368  ;;  %v2805_v49 = vadd.f32 %v7601_v62, %v9492_v40 }
 0x336   :  { %v7741_v59 = vpop.permute.xlu1 %2429 }
 0x337   :  { %v7745_v43 = vpop.permute.xlu0 %2433  ;;  %v4641_v61 = vpack.i.bf16 %v2805_v49, %v2804_v35  ;;  %v9497_v49 = vld [vmem:[#allocation175_spill] sm:$0xff]  ;;  %v9501_v35 = vld [vmem:[#allocation81_spill] sm:$0xff] }
 0x338   :  { %2670 = vbcast.lane.b32.xlu1 %v2608_v50, 376  ;;  %v9496_v50 = vld [vmem:[#allocation12_spill] sm:$0xff] }
 0x339   :  { %4631 = vperm.xlu0 %4629, %v4630_v17   ;;  %v9495_v17 = vld [vmem:[#allocation11_spill] sm:$0xff]  ;;  %v2808_v10 = vadd.f32 %v7603_v39, %v9496_v50  ;;  %v2812_v39 = vadd.f32 %v7613_v21, %v6759_v28  ;;  %v2816_v28 = vadd.f32 %v7623_v0, %v6775_v20  ;;  %v2820_v20 = vadd.f32 %v7631_v38, %v9497_v49  ;;  %v9498_v0 = vld [vmem:[#allocation82_spill] sm:$0xff]  ;;  %v9505_v50 = vld [vmem:[#allocation85_spill] sm:$0xff] }
 0x33a   :  { %v7753_v1 = vpop.permute.xlu1 %2437  ;;  %v2809_v40 = vadd.f32 %v7611_v53, %v9495_v17  ;;  %v2813_v53 = vadd.f32 %v7617_v55, %v6752_v7  ;;  %v2817_v7 = vadd.f32 %v7625_v30, %v6767_v48  ;;  %v2821_v48 = vadd.f32 %v7633_v16, %v6848_v44  ;;  %v9517_v49 = vld [vmem:[#allocation114_spill] sm:$0xff] }
 0x33b   :  { %v7757_v18 = vpop.permute.xlu0 %2441  ;;  %v2826_v36 = vadd.f32 %v7645_v46, %v9498_v0  ;;  %v2824_v38 = vadd.f32 %v7641_v47, %v9501_v35  ;;  %v2830_v46 = vadd.f32 %v7653_v51, %v9502_v34  ;;  %v2828_v47 = vadd.f32 %v7649_v57, %v9505_v50  ;;  %v9518_v0 = vld [vmem:[#allocation36_spill] sm:$0xff]  ;;  %v9523_v34 = vld [vmem:[#allocation118_spill] sm:$0xff] }
 0x33c   :  { %4637 = vperm.xlu1 %4635, %v4636_v42   ;;  %v4651_v56 = vpack.i.bf16 %v2809_v40, %v2808_v10  ;;  %v4661_v52 = vpack.i.bf16 %v2813_v53, %v2812_v39  ;;  %v4676_v42 = vpack.i.bf16 %v2819_v54, %v2818_v27  ;;  %v4671_v21 = vpack.i.bf16 %v2817_v7, %v2816_v28  ;;  %v9506_v10 = vld [vmem:[#allocation33_spill] sm:$0xff]  ;;  %v9508_v39 = vld [vmem:[#allocation87_spill] sm:$0xff]  ;;  %v9511_v7 = vld [vmem:[#allocation68_spill] sm:$0xff] }
 0x33d   :  { %4647 = vperm.xlu0 %4629, %v4646_v60   ;;  %v4681_v29 = vpack.i.bf16 %v2821_v48, %v2820_v20  ;;  %v9499_v60 = vld [vmem:[#allocation28_spill] sm:$0xff]  ;;  %v4696_v3 = vpack.i.bf16 %v2827_v37, %v2826_v36  ;;  %v4706_v40 = vpack.i.bf16 %v2831_v32, %v2830_v46  ;;  %v2834_v51 = vadd.f32 %v7661_v11, %v9506_v10  ;;  %v9509_v27 = vld [vmem:[#allocation61_spill] sm:$0xff]  ;;  %v9513_v28 = vld [vmem:[#allocation115_spill] sm:$0xff] }
 0x33e   :  { %v7765_v62 = vpop.permute.xlu1 %2445  ;;  %v2825_v16 = vadd.f32 %v7643_v14, %v9499_v60  ;;  %v2832_v57 = vadd.f32 %v9509_v27, %v9508_v39  ;;  %v9514_v48 = vld [vmem:[#allocation45_spill] sm:$0xff]  ;;  %v9516_v37 = vld [vmem:[#allocation38_spill] sm:$0xff]  ;;  %v9519_v36 = vld [vmem:[#allocation116_spill] sm:$0xff] }
 0x33f   :  { %v7769_v2 = vpop.permute.xlu0 %2449  ;;  %v2836_v20 = vadd.f32 %v9517_v49, %v9516_v37  ;;  %v9528_v10 = vld [vmem:[#allocation40_spill] sm:$0xff]  ;;  %v9538_v37 = vld [vmem:[#allocation57_spill] sm:$0xff] }
 0x340   :  { %4642 = vperm.xlu1 %4635, %v4641_v61   ;;  %v4691_v15 = vpack.i.bf16 %v2825_v16, %v2824_v38  ;;  %v9503_v61 = vld [vmem:[#allocation32_spill] sm:$0xff]  ;;  %v9520_v16 = vld [vmem:[#allocation93_spill] sm:$0xff]  ;;  %v9522_v38 = vld [vmem:[#allocation98_spill] sm:$0xff] }
 0x341   :  { %4657 = vperm.xlu0 %4629, %v4656_v4   ;;  %v2829_v14 = vadd.f32 %v7651_v41, %v9503_v61  ;;  %v9504_v4 = vld [vmem:[#allocation89_spill] sm:$0xff]  ;;  %v2847_v46 = vadd.f32 %v9523_v34, %v9522_v38  ;;  %v9524_v61 = vld [vmem:[#allocation35_spill] sm:$0xff]  ;;  %v9539_v49 = vld [vmem:[#allocation72_spill] sm:$0xff] }
 0x342   :  { %v7777_v58 = vpop.permute.xlu1 %2453  ;;  %v2835_v24 = vadd.f32 %v7663_v45, %v9504_v4  ;;  %v2839_v45 = vadd.f32 %v7673_v26, %v7124_v63  ;;  %v9526_v4 = vld [vmem:[#allocation142_spill] sm:$0xff]  ;;  %v9544_v38 = vld [vmem:[#allocation144_spill] sm:$0xff]  ;;  %v9545_v34 = vld [vmem:[#allocation121_spill] sm:$0xff] }
 0x343   :  { %v7781_v12 = vpop.permute.xlu0 %2457  ;;  %v4701_v8 = vpack.i.bf16 %v2829_v14, %v2828_v47  ;;  %v9525_v14 = vld [vmem:[#allocation153_spill] sm:$0xff] }
 0x344   :  { %4652 = vperm.xlu1 %4635, %v4651_v56   ;;  %v9507_v56 = vld [vmem:[#allocation86_spill] sm:$0xff] }
 0x345   :  { %4667 = vperm.xlu0 %4629, %v4666_v6   ;;  %v2833_v41 = vadd.f32 %v7659_v31, %v9507_v56  ;;  %v4716_v6 = vpack.i.bf16 %v2835_v24, %v2834_v51  ;;  %v2837_v31 = vadd.f32 %v9513_v28, %v9512_v22  ;;  %v9527_v24 = vld [vmem:[#allocation157_spill] sm:$0xff]  ;;  %v9529_v51 = vld [vmem:[#allocation71_spill] sm:$0xff] }
 0x346   :  { %v7789_v55 = vpop.permute.xlu1 %2461  ;;  %v2846_v50 = vadd.f32 %v9527_v24, %v9526_v4 }
 0x347   :  { %v7793_v13 = vpop.permute.xlu0 %2465  ;;  %v4721_v60 = vpack.i.bf16 %v2837_v31, %v2836_v20  ;;  %v9536_v31 = vld [vmem:[#allocation51_spill] sm:$0xff]  ;;  %v2855_v20 = vadd.f32 %v9539_v49, %v9538_v37  ;;  %v9558_v37 = vld [vmem:[#allocation77_spill] sm:$0xff] }
 0x348   :  { %4662 = vperm.xlu1 %4635, %v4661_v52   ;;  %v9510_v52 = vld [vmem:[#allocation138_spill] sm:$0xff] }
 0x349   :  { %4677 = vperm.xlu0 %4629, %v4676_v42   ;;  %v2838_v11 = vadd.f32 %v9511_v7, %v9510_v52  ;;  %v4711_v42 = vpack.i.bf16 %v2833_v41, %v2832_v57  ;;  %v4746_v41 = vpack.i.bf16 %v2847_v46, %v2846_v50  ;;  %v9532_v57 = vld [vmem:[#allocation95_spill] sm:$0xff]  ;;  %v9533_v52 = vld [vmem:[#allocation117_spill] sm:$0xff]  ;;  %v2853_v46 = vadd.f32 %v9545_v34, %v9544_v38  ;;  %v9547_v50 = vld [vmem:[#allocation102_spill] sm:$0xff] }
 0x34a   :  { %v7801_v30 = vpop.permute.xlu1 %2469  ;;  %v2844_v7 = vadd.f32 %v9533_v52, %v9532_v57  ;;  %v2989_v38 = vld [vmem:[%s8570_s2 + $0x1e8] sm:$0xff]  ;;  %v2988_v34 = vld [vmem:[%s8570_s2 + $0x1e0] sm:$0xff] }
 0x34b   :  { %v7805_v9 = vpop.permute.xlu0 %2476  ;;  %4151 = vmatprep.subr.mxu0 %v2989_v38 }
 0x34c   :  { %4672 = vperm.xlu1 %4635, %v4671_v21   ;;  %v4726_v21 = vpack.i.bf16 %v2839_v45, %v2838_v11  ;;  %v9531_v45 = vld [vmem:[#allocation73_spill] sm:$0xff]  ;;  %4152 = vmatpush1.xpose.msra.mxu0 %v2988_v34 }
 0x34d   :  { %4687 = vperm.xlu0 %4629, %v4686_v19   ;;  %v9515_v19 = vld [vmem:[#allocation152_spill] sm:$0xff]  ;;  %v9534_v11 = vld [vmem:[#allocation101_spill] sm:$0xff] }
 0x34e   :  { %v7813_v44 = vpop.permute.xlu1 %2480  ;;  %v2843_v63 = vadd.f32 %v9515_v19, %v9514_v48 }
 0x34f   :  { %v7817_v5 = vpop.permute.xlu0 %2484 }
 0x350   :  { %4682 = vperm.xlu1 %4635, %v4681_v29   ;;  %v2842_v29 = vadd.f32 %v9519_v36, %v9518_v0  ;;  %v9540_v36 = vld [vmem:[#allocation99_spill] sm:$0xff] }
 0x351   :  { %4697 = vperm.xlu0 %4629, %v4696_v3   ;;  %v9521_v3 = vld [vmem:[#allocation67_spill] sm:$0xff] }
 0x352   :  { %v7825_v17 = vpop.permute.xlu1 %2488  ;;  %v2841_v25 = vadd.f32 %v9521_v3, %v9520_v16  ;;  %v4736_v35 = vpack.i.bf16 %v2843_v63, %v2842_v29  ;;  %v9541_v29 = vld [vmem:[#allocation119_spill] sm:$0xff]  ;;  %v9542_v16 = vld [vmem:[#allocation49_spill] sm:$0xff] }
 0x353   :  { %v7829_v23 = vpop.permute.xlu0 %2492  ;;  %v9543_v3 = vld [vmem:[#allocation161_spill] sm:$0xff] }
 0x354   :  { %4692 = vperm.xlu1 %4635, %v4691_v15  }
 0x355   :  { %4707 = vperm.xlu0 %4629, %v4706_v40   ;;  %v2840_v40 = vadd.f32 %v9525_v14, %v9524_v61 }
 0x356   :  { %v7837_v53 = vpop.permute.xlu1 %2496 }
 0x357   :  { %v7841_v54 = vpop.permute.xlu0 %2500  ;;  %v4731_v47 = vpack.i.bf16 %v2841_v25, %v2840_v40  ;;  %v2854_v25 = vadd.f32 %v9543_v3, %v9542_v16  ;;  %v9546_v40 = vld [vmem:[#allocation30_spill] sm:$0xff] }
 0x358   :  { %4702 = vperm.xlu1 %4635, %v4701_v8   ;;  %v2845_v8 = vadd.f32 %v9529_v51, %v9528_v10  ;;  %v2881_v4 = vadd.f32 %v7813_v44, %v9546_v40  ;;  %v9549_v51 = vld [vmem:[#allocation84_spill] sm:$0xff]  ;;  %v9553_v44 = vld [vmem:[#allocation107_spill] sm:$0xff] }
 0x359   :  { %4717 = vperm.xlu0 %4629, %v4716_v6   ;;  %v9530_v6 = vld [vmem:[#allocation46_spill] sm:$0xff]  ;;  %v4766_v14 = vpack.i.bf16 %v2855_v20, %v2854_v25 }
 0x35a   :  { %v7849_v33 = vpop.permute.xlu1 %2504  ;;  %v2851_v39 = vadd.f32 %v9531_v45, %v9530_v6  ;;  %v4741_v28 = vpack.i.bf16 %v2845_v8, %v2844_v7  ;;  %v2880_v8 = vadd.f32 %v7805_v9, %v9549_v51  ;;  %v9550_v6 = vld [vmem:[#allocation108_spill] sm:$0xff]  ;;  %v9551_v45 = vld [vmem:[#allocation122_spill] sm:$0xff]  ;;  %v9552_v7 = vld [vmem:[#allocation31_spill] sm:$0xff] }
 0x35b   :  { %v7853_v26 = vpop.permute.xlu0 %2508 }
 0x35c   :  { %4712 = vperm.xlu1 %4635, %v4711_v42   ;;  %v9535_v42 = vld [vmem:[#allocation156_spill] sm:$0xff]  ;;  %v4776_v52 = vpack.i.bf16 %v2881_v4, %v2880_v8 }
 0x35d   :  { %4727 = vperm.xlu0 %4629, %v4726_v21   ;;  %v2850_v22 = vadd.f32 %v9535_v42, %v9534_v11  ;;  %v9537_v21 = vld [vmem:[#allocation70_spill] sm:$0xff]  ;;  %v2882_v11 = vadd.f32 %v7817_v5, %v9552_v7  ;;  %v9559_v5 = vld [vmem:[#allocation171_spill] sm:$0xff] }
 0x35e   :  { %v7861_v32 = vpop.permute.xlu1 %2512  ;;  %v2849_v48 = vadd.f32 %v9537_v21, %v9536_v31  ;;  %v9555_v31 = vld [vmem:[#allocation174_spill] sm:$0xff]  ;;  %v9556_v21 = vld [vmem:[#allocation168_spill] sm:$0xff] }
 0x35f   :  { %v7865_v15 = vpop.permute.xlu0 %2516  ;;  %v4756_v63 = vpack.i.bf16 %v2851_v39, %v2850_v22  ;;  %v2857_v39 = vadd.f32 %v9551_v45, %v9550_v6  ;;  %v9554_v22 = vld [vmem:[#allocation160_spill] sm:$0xff]  ;;  %v9561_v6 = vld [vmem:[#allocation29_spill] sm:$0xff] }
 0x360   :  { %4722 = vperm.xlu1 %4635, %v4721_v60   ;;  %v2848_v60 = vadd.f32 %v9541_v29, %v9540_v36  ;;  %v2883_v45 = vadd.f32 %v7825_v17, %v9561_v6  ;;  %v2985_v7 = vld [vmem:[%s8570_s2 + $0x1c8] sm:$0xff]  ;;  %v2980_v6 = vld [vmem:[%s8570_s2 + $0x1a0] sm:$0xff] }
 0x361   :  { %4737 = vperm.xlu0 %4629, %v4736_v35   ;;  %4153 = vmatprep.subr.mxu0 %v2985_v7  ;;  %v9571_v7 = vld [vmem:[#allocation21_spill] sm:$0xff] }
 0x362   :  { %v7873_v56 = vpop.permute.xlu1 %2520  ;;  %v4751_v35 = vpack.i.bf16 %v2849_v48, %v2848_v60  ;;  %v2866_v48 = vadd.f32 %v9556_v21, %v9555_v31  ;;  %v9560_v60 = vld [vmem:[#allocation163_spill] sm:$0xff]  ;;  %v2984_v31 = vld [vmem:[%s8570_s2 + $0x1c0] sm:$0xff] }
 0x363   :  { %v7877_v27 = vpop.permute.xlu0 %2524  ;;  %v2864_v16 = vadd.f32 %v9560_v60, %v9559_v5  ;;  %v9564_v21 = vld [vmem:[#allocation173_spill] sm:$0xff]  ;;  %4154 = vmatpush1.xpose.msra.mxu0 %v2984_v31 }
 0x364   :  { %4732 = vperm.xlu1 %4635, %v4731_v47   ;;  %v9548_v47 = vld [vmem:[#allocation120_spill] sm:$0xff]  ;;  %v4786_v36 = vpack.i.bf16 %v2866_v48, %v2882_v11  ;;  %v9563_v11 = vld [vmem:[#allocation37_spill] sm:$0xff]  ;;  %v9565_v48 = vld [vmem:[#allocation126_spill] sm:$0xff] }
 0x365   :  { %4747 = vperm.xlu0 %4629, %v4746_v41   ;;  %v2852_v10 = vadd.f32 %v9548_v47, %v9547_v50 }
 0x366   :  { %v7885_v19 = vpop.permute.xlu1 %2528 }
 0x367   :  { %v7889_v0 = vpop.permute.xlu0 %2532  ;;  %v4761_v41 = vpack.i.bf16 %v2853_v46, %v2852_v10 }
 0x368   :  { %4742 = vperm.xlu1 %4635, %v4741_v28   ;;  %v2856_v28 = vadd.f32 %v9554_v22, %v9553_v44 }
 0x369   :  { %4757 = vperm.xlu0 %4629, %v4756_v63   ;;  %v9557_v63 = vld [vmem:[#allocation170_spill] sm:$0xff] }
 0x36a   :  { %v7897_v61 = vpop.permute.xlu1 %2536  ;;  %v4771_v9 = vpack.i.bf16 %v2857_v39, %v2856_v28  ;;  %v2865_v49 = vadd.f32 %v9558_v37, %v9557_v63  ;;  %v9562_v39 = vld [vmem:[#allocation105_spill] sm:$0xff]  ;;  %v9566_v63 = vld [vmem:[#allocation104_spill] sm:$0xff] }
 0x36b   :  { %v2544_v24 = vpop.permute.xlu0 %2543 }
 0x36c   :  { %4752 = vperm.xlu1 %4635, %v4751_v35   ;;  %v4781_v3 = vpack.i.bf16 %v2865_v49, %v2864_v16  ;;  %v2896_v44 = vadd.f32 %v2544_v24, %v9563_v11  ;;  %v9567_v49 = vld [vmem:[#allocation133_spill] sm:$0xff]  ;;  %v9568_v24 = vld [vmem:[#allocation106_spill] sm:$0xff]  ;;  %v9572_v11 = vld [vmem:[#allocation127_spill] sm:$0xff] }
 0x36d   :  { %4767 = vperm.xlu0 %4629, %v4766_v14   ;;  %v2981_v16 = vld [vmem:[%s8570_s2 + $0x1a8] sm:$0xff] }
 0x36e   :  { %v2548_v57 = vpop.permute.xlu1 %2547  ;;  %4155 = vmatprep.subr.mxu0 %v2981_v16 }
 0x36f   :  { %v7909_v42 = vpop.permute.xlu0 %2551  ;;  %4156 = vmatpush1.xpose.msra.mxu0 %v2980_v6 }
 0x370   :  { %4762 = vperm.xlu1 %4635, %v4761_v41  }
 0x371   :  { %4777 = vperm.xlu0 %4629, %v4776_v52  }
 0x372   :  { %v7917_v20 = vpop.permute.xlu1 %2555 }
 0x373   :  { %v7919_v29 = vpop.permute.xlu0 %2559 }
 0x374   :  { %4772 = vperm.xlu1 %4635, %v4771_v9   ;;  %v2867_v9 = vadd.f32 %v9565_v48, %v9564_v21  ;;  %v9574_v48 = vld [vmem:[#allocation88_spill] sm:$0xff] }
 0x375   :  { %4787 = vperm.xlu0 %4629, %v4786_v36   ;;  %v2884_v36 = vadd.f32 %v7829_v23, %v9567_v49  ;;  %v2991_v23 = vld [vmem:[%s8570_s2 + $0x1f8] sm:$0xff]  ;;  %v9575_v49 = vld [vmem:[#allocation94_spill] sm:$0xff] }
 0x376   :  { %v7923_v25 = vpop.permute.xlu1 %2563  ;;  %4221 = vmatprep.subr.mxu1 %v2991_v23  ;;  %v2983_v23 = vld [vmem:[%s8570_s2 + $0x1b8] sm:$0xff] }
 0x377   :  { %v7925_v35 = vpop.permute.xlu0 %2567  ;;  %v4801_v34 = vpack.i.bf16 %v2896_v44, %v2884_v36  ;;  %v2868_v44 = vadd.f32 %v9572_v11, %v9571_v7  ;;  %v2898_v36 = vadd.f32 %v7909_v42, %v9575_v49  ;;  %v2973_v42 = vld [vmem:[%s8570_s2 + $0x168] sm:$0xff] }
 0x378   :  { %4782 = vperm.xlu1 %4635, %v4781_v3   ;;  %v9569_v3 = vld [vmem:[#allocation132_spill] sm:$0xff] }
 0x379   :  { %v2885_v38 = vadd.f32 %v7837_v53, %v9569_v3  ;;  %v2990_v53 = vld [vmem:[%s8570_s2 + $0x1f0] sm:$0xff]  ;;  %v9577_v3 = vld [vmem:[#allocation52_spill] sm:$0xff] }
 0x37a   :  { %v7933_v46 = vpop.permute.xlu1 %2571  ;;  %4222 = vmatpush1.xpose.msra.mxu1 %v2990_v53  ;;  %v2982_v53 = vld [vmem:[%s8570_s2 + $0x1b0] sm:$0xff] }
 0x37b   :  { %v7935_v14 = vpop.permute.xlu0 %2575  ;;  %v4811_v21 = vpack.i.bf16 %v2885_v38, %v2868_v44  ;;  %v9581_v44 = vld [vmem:[#allocation145_spill] sm:$0xff] }
 0x37e   :  { %v7937_v40 = vpop.permute.xlu1 %2579 }
 0x37f   :  { %v7939_v4 = vpop.permute.xlu0 %2583 }
 0x382   :  { %v7941_v50 = vpop.permute.xlu1 %2587 }
 0x383   :  { %v7943_v47 = vpop.permute.xlu0 %2591 }
 0x386   :  { %v7945_v10 = vpop.permute.xlu1 %2595 }
 0x387   :  { %v7947_v51 = vpop.permute.xlu0 %2599 }
 0x38a   :  { %v7949_v8 = vpop.permute.xlu1 %2603 }
 0x38b   :  { %v2611_v41 = vpop.permute.xlu0 %2610 }
 0x38c   :  { %v2912_v52 = vadd.f32 %v2611_v41, %v9562_v39 }
 0x38e   :  { %v4791_v22 = vpack.i.bf16 %v2912_v52, %v2883_v45  ;;  %v2615_v28 = vpop.permute.xlu1 %2614  ;;  %v9570_v45 = vld [vmem:[#allocation41_spill] sm:$0xff] }
 0x38f   :  { %v2913_v17 = vadd.f32 %v2615_v28, %v9566_v63  ;;  %v2619_v37 = vpop.permute.xlu0 %2618  ;;  %v2897_v39 = vadd.f32 %v2548_v57, %v9570_v45  ;;  %v9573_v28 = vld [vmem:[#allocation56_spill] sm:$0xff]  ;;  %v2977_v57 = vld [vmem:[%s8570_s2 + $0x188] sm:$0xff] }
 0x390   :  { %4792 = vperm.xlu1 %4635, %v4791_v22   ;;  %v2914_v60 = vadd.f32 %v2619_v37, %v9568_v24  ;;  %4157 = vmatprep.subr.mxu0 %v2977_v57  ;;  %v2987_v37 = vld [vmem:[%s8570_s2 + $0x1d8] sm:$0xff]  ;;  %v9579_v45 = vld [vmem:[#allocation141_spill] sm:$0xff] }
 0x391   :  { %v4796_v5 = vpack.i.bf16 %v2867_v9, %v2913_v17  ;;  %v2886_v9 = vadd.f32 %v7841_v54, %v9574_v48  ;;  %v2976_v17 = vld [vmem:[%s8570_s2 + $0x180] sm:$0xff]  ;;  %v9576_v54 = vld [vmem:[#allocation18_spill] sm:$0xff]  ;;  %4223 = vmatprep.subr.mxu1 %v2987_v37  ;;  %v2979_v48 = vld [vmem:[%s8570_s2 + $0x198] sm:$0xff] }
 0x392   :  { %v2623_v41 = vpop.permute.xlu1 %2622  ;;  %v4806_v22 = vpack.i.bf16 %v2914_v60, %v2897_v39  ;;  %4158 = vmatpush1.xpose.msra.mxu0 %v2976_v17  ;;  %v2869_v24 = vadd.f32 %v7741_v59, %v9576_v54  ;;  %v2972_v59 = vld [vmem:[%s8570_s2 + $0x160] sm:$0xff]  ;;  %v2899_v39 = vadd.f32 %v7917_v20, %v9579_v45  ;;  %v2969_v20 = vld [vmem:[%s8570_s2 + $0x148] sm:$0xff]  ;;  %v2978_v17 = vld [vmem:[%s8570_s2 + $0x190] sm:$0xff] }
 0x393   :  { %v2627_v52 = vpop.permute.xlu0 %2626  ;;  %4797 = vperm.xlu0 %4629, %v4796_v5   ;;  %v2915_v31 = vadd.f32 %v2623_v41, %v9573_v28  ;;  %v2986_v5 = vld [vmem:[%s8570_s2 + $0x1d0] sm:$0xff]  ;;  %4159 = vmatprep.subr.mxu0 %v2973_v42 }
 0x394   :  { %4802 = vperm.xlu1 %4635, %v4801_v34   ;;  %v2916_v38 = vadd.f32 %v2627_v52, %v9577_v3  ;;  %4224 = vmatpush1.xpose.msra.mxu1 %v2986_v5  ;;  %v4821_v34 = vpack.i.bf16 %v2886_v9, %v2869_v24  ;;  %v9578_v41 = vld [vmem:[#allocation34_spill] sm:$0xff]  ;;  %v9583_v9 = vld [vmem:[#allocation48_spill] sm:$0xff] }
 0x395   :  { %v4816_v16 = vpack.i.bf16 %v2915_v31, %v2898_v36  ;;  %v2887_v6 = vadd.f32 %v7849_v33, %v9578_v41  ;;  %v9580_v33 = vld [vmem:[#allocation24_spill] sm:$0xff]  ;;  %4225 = vmatprep.subr.mxu1 %v2983_v23  ;;  %v9582_v31 = vld [vmem:[#allocation134_spill] sm:$0xff]  ;;  %v9585_v36 = vld [vmem:[#allocation109_spill] sm:$0xff] }
 0x396   :  { %v2631_v63 = vpop.permute.xlu1 %2630  ;;  %4160 = vmatpush1.xpose.msra.mxu0 %v2972_v59  ;;  %v2870_v7 = vadd.f32 %v7745_v43, %v9580_v33  ;;  %v4826_v11 = vpack.i.bf16 %v2916_v38, %v2899_v39  ;;  %v2888_v57 = vadd.f32 %v7853_v26, %v9582_v31  ;;  %v2968_v43 = vld [vmem:[%s8570_s2 + $0x140] sm:$0xff]  ;;  %v9584_v26 = vld [vmem:[#allocation22_spill] sm:$0xff]  ;;  %v2975_v38 = vld [vmem:[%s8570_s2 + $0x178] sm:$0xff] }
 0x397   :  { %4807 = vperm.xlu0 %4629, %v4806_v22   ;;  %v2635_v60 = vpop.permute.xlu0 %2634  ;;  %v2917_v22 = vadd.f32 %v2631_v63, %v9581_v44  ;;  %4161 = vmatprep.subr.mxu0 %v2969_v20  ;;  %v2900_v63 = vadd.f32 %v7919_v29, %v9583_v9  ;;  %v2871_v37 = vadd.f32 %v7753_v1, %v9584_v26  ;;  %v2965_v29 = vld [vmem:[%s8570_s2 + $0x128] sm:$0xff]  ;;  %v2964_v1 = vld [vmem:[%s8570_s2 + $0x120] sm:$0xff]  ;;  %v9588_v41 = vld [vmem:[#allocation19_spill] sm:$0xff] }
 0x398   :  { %4812 = vperm.xlu1 %4635, %v4811_v21   ;;  %4226 = vmatpush1.xpose.msra.mxu1 %v2982_v53  ;;  %v4831_v28 = vpack.i.bf16 %v2887_v6, %v2870_v7  ;;  %v2918_v5 = vadd.f32 %v2635_v60, %v9585_v36  ;;  %v9587_v60 = vld [vmem:[#allocation44_spill] sm:$0xff]  ;;  %v9589_v23 = vld [vmem:[#allocation55_spill] sm:$0xff]  ;;  %v9593_v31 = vld [vmem:[#allocation110_spill] sm:$0xff] }
 0x399   :  { %4227 = vmatprep.subr.mxu1 %v2979_v48  ;;  %v4836_v49 = vpack.i.bf16 %v2917_v22, %v2900_v63  ;;  %v4841_v24 = vpack.i.bf16 %v2888_v57, %v2871_v37  ;;  %v2901_v42 = vadd.f32 %v7923_v25, %v9587_v60  ;;  %v2961_v25 = vld [vmem:[%s8570_s2 + $0x108] sm:$0xff]  ;;  %v9590_v53 = vld [vmem:[#allocation91_spill] sm:$0xff]  ;;  %v9592_v22 = vld [vmem:[#allocation80_spill] sm:$0xff] }
 0x39a   :  { %v2639_v52 = vpop.permute.xlu1 %2638  ;;  %4162 = vmatpush1.xpose.msra.mxu0 %v2968_v43  ;;  %v2890_v33 = vadd.f32 %v7865_v15, %v9590_v53  ;;  %v2971_v7 = vld [vmem:[%s8570_s2 + $0x158] sm:$0xff]  ;;  %v2970_v15 = vld [vmem:[%s8570_s2 + $0x150] sm:$0xff]  ;;  %v2873_v20 = vadd.f32 %v7765_v62, %v9592_v22  ;;  %v2956_v62 = vld [vmem:[%s8570_s2 + $0xe0] sm:$0xff] }
 0x39b   :  { %4817 = vperm.xlu0 %4629, %v4816_v16   ;;  %v2643_v21 = vpop.permute.xlu0 %2642  ;;  %v9586_v16 = vld [vmem:[#allocation139_spill] sm:$0xff]  ;;  %4163 = vmatprep.subr.mxu0 %v2965_v29  ;;  %v4846_v59 = vpack.i.bf16 %v2918_v5, %v2901_v42  ;;  %v2919_v45 = vadd.f32 %v2639_v52, %v9589_v23  ;;  %v9596_v37 = vld [vmem:[#allocation26_spill] sm:$0xff] }
 0x39c   :  { %4822 = vperm.xlu1 %4635, %v4821_v34   ;;  %4228 = vmatpush1.xpose.msra.mxu1 %v2978_v17  ;;  %v2889_v3 = vadd.f32 %v7861_v32, %v9586_v16  ;;  %v2974_v34 = vld [vmem:[%s8570_s2 + $0x170] sm:$0xff]  ;;  %v2872_v32 = vadd.f32 %v7757_v18, %v9588_v41  ;;  %v2960_v18 = vld [vmem:[%s8570_s2 + $0x100] sm:$0xff]  ;;  %v2920_v57 = vadd.f32 %v2643_v21, %v9593_v31  ;;  %v2967_v21 = vld [vmem:[%s8570_s2 + $0x138] sm:$0xff] }
 0x39d   :  { %4229 = vmatprep.subr.mxu1 %v2975_v38  ;;  %v4861_v43 = vpack.i.bf16 %v2890_v33, %v2873_v20  ;;  %v9594_v48 = vld [vmem:[#allocation39_spill] sm:$0xff]  ;;  %v9595_v17 = vld [vmem:[#allocation96_spill] sm:$0xff] }
 0x39e   :  { %v2647_v54 = vpop.permute.xlu1 %2646  ;;  %4164 = vmatpush1.xpose.msra.mxu0 %v2964_v1  ;;  %v4851_v39 = vpack.i.bf16 %v2889_v3, %v2872_v32  ;;  %v2891_v9 = vadd.f32 %v7873_v56, %v9594_v48  ;;  %v2903_v26 = vadd.f32 %v7933_v46, %v9595_v17  ;;  %v2966_v56 = vld [vmem:[%s8570_s2 + $0x130] sm:$0xff]  ;;  %v2953_v46 = vld [vmem:[%s8570_s2 + $0xc8] sm:$0xff]  ;;  %v2948_v33 = vld [vmem:[%s8570_s2 + $0xa0] sm:$0xff] }
 0x39f   :  { %4827 = vperm.xlu0 %4629, %v4826_v11   ;;  %v2651_v6 = vpop.permute.xlu0 %2650  ;;  %4165 = vmatprep.subr.mxu0 %v2961_v25  ;;  %v9591_v11 = vld [vmem:[#allocation97_spill] sm:$0xff]  ;;  %v9597_v5 = vld [vmem:[#allocation147_spill] sm:$0xff]  ;;  %v9611_v17 = vld [vmem:[#allocation74_spill] sm:$0xff] }
 0x3a0   :  { %4832 = vperm.xlu1 %4635, %v4831_v28   ;;  %4230 = vmatpush1.xpose.msra.mxu1 %v2974_v34  ;;  %v2902_v52 = vadd.f32 %v7925_v35, %v9591_v11  ;;  %v2957_v35 = vld [vmem:[%s8570_s2 + $0xe8] sm:$0xff]  ;;  %v4866_v36 = vpack.i.bf16 %v2920_v57, %v2903_v26  ;;  %v2921_v29 = vadd.f32 %v2647_v54, %v9597_v5  ;;  %v9598_v16 = vld [vmem:[#allocation23_spill] sm:$0xff] }
 0x3a1   :  { %4231 = vmatprep.subr.mxu1 %v2971_v7  ;;  %v2875_v3 = vadd.f32 %v7777_v58, %v9598_v16  ;;  %v2963_v54 = vld [vmem:[%s8570_s2 + $0x118] sm:$0xff]  ;;  %v2962_v42 = vld [vmem:[%s8570_s2 + $0x110] sm:$0xff]  ;;  %v9615_v16 = vld [vmem:[#allocation25_spill] sm:$0xff] }
 0x3a2   :  { %v8074_v44 = vpop.permute.xlu1 %2654  ;;  %4166 = vmatpush1.xpose.msra.mxu0 %v2960_v18  ;;  %v4856_v28 = vpack.i.bf16 %v2919_v45, %v2902_v52  ;;  %v9599_v38 = vld [vmem:[#allocation43_spill] sm:$0xff]  ;;  %v9600_v58 = vld [vmem:[#allocation60_spill] sm:$0xff]  ;;  %v9604_v7 = vld [vmem:[#allocation42_spill] sm:$0xff] }
 0x3a3   :  { %4837 = vperm.xlu0 %4629, %v4836_v49   ;;  %v8087_v63 = vpop.permute.xlu0 %2658  ;;  %4167 = vmatprep.subr.mxu0 %v2957_v35  ;;  %v2874_v49 = vadd.f32 %v7769_v2, %v9596_v37  ;;  %v2952_v2 = vld [vmem:[%s8570_s2 + $0xc0] sm:$0xff]  ;;  %v2904_v60 = vadd.f32 %v7935_v14, %v9599_v38  ;;  %v9601_v34 = vld [vmem:[#allocation123_spill] sm:$0xff]  ;;  %v2949_v14 = vld [vmem:[%s8570_s2 + $0xa8] sm:$0xff] }
 0x3a4   :  { %4842 = vperm.xlu1 %4635, %v4841_v24   ;;  %4232 = vmatpush1.xpose.msra.mxu1 %v2970_v15  ;;  %v2858_v41 = vadd.f32 %v9601_v34, %v9600_v58  ;;  %v2959_v18 = vld [vmem:[%s8570_s2 + $0xf8] sm:$0xff]  ;;  %v9605_v52 = vld [vmem:[#allocation146_spill] sm:$0xff]  ;;  %v9619_v58 = vld [vmem:[#allocation125_spill] sm:$0xff] }
 0x3a5   :  { %4233 = vmatprep.subr.mxu1 %v2967_v21  ;;  %v4871_v1 = vpack.i.bf16 %v2891_v9, %v2874_v49  ;;  %v4876_v45 = vpack.i.bf16 %v2921_v29, %v2904_v60  ;;  %v9606_v15 = vld [vmem:[#allocation75_spill] sm:$0xff]  ;;  %v9613_v37 = vld [vmem:[#allocation124_spill] sm:$0xff] }
 0x3a6   :  { %4168 = vmatpush1.xpose.msra.mxu0 %v2956_v62  ;;  %v8103_v24 = vpop.permute.xlu1 %2662  ;;  %v4881_v25 = vpack.i.bf16 %v2875_v3, %v2858_v41  ;;  %v2859_v22 = vadd.f32 %v9606_v15, %v9605_v52  ;;  %v9607_v20 = vld [vmem:[#allocation59_spill] sm:$0xff]  ;;  %v2945_v62 = vld [vmem:[%s8570_s2 + $0x88] sm:$0xff]  ;;  %v2944_v29 = vld [vmem:[%s8570_s2 + $0x80] sm:$0xff]  ;;  %v2876_v3 = vadd.f32 %v7781_v12, %v9615_v16 }
 0x3a7   :  { %4847 = vperm.xlu0 %4629, %v4846_v59   ;;  %4169 = vmatprep.subr.mxu0 %v2953_v46  ;;  %v8123_v32 = vpop.permute.xlu0 %2666  ;;  %v9602_v59 = vld [vmem:[#allocation47_spill] sm:$0xff]  ;;  %v9620_v41 = vld [vmem:[#allocation100_spill] sm:$0xff]  ;;  %v9630_v16 = vld [vmem:[#allocation158_spill] sm:$0xff] }
 0x3a8   :  { %4852 = vperm.xlu1 %4635, %v4851_v39   ;;  %4234 = vmatpush1.xpose.msra.mxu1 %v2966_v56  ;;  %v2905_v23 = vadd.f32 %v7937_v40, %v9602_v59  ;;  %v9603_v39 = vld [vmem:[#allocation58_spill] sm:$0xff]  ;;  %v2892_v40 = vadd.f32 %v7877_v27, %v9604_v7  ;;  %v9609_v35 = vld [vmem:[#allocation135_spill] sm:$0xff]  ;;  %v2906_v59 = vadd.f32 %v7939_v4, %v9620_v41 }
 0x3a9   :  { %4235 = vmatprep.subr.mxu1 %v2963_v54  ;;  %v2922_v53 = vadd.f32 %v2651_v6, %v9603_v39  ;;  %v2958_v6 = vld [vmem:[%s8570_s2 + $0xf0] sm:$0xff]  ;;  %v2893_v27 = vadd.f32 %v7885_v19, %v9609_v35  ;;  %v2955_v46 = vld [vmem:[%s8570_s2 + $0xd8] sm:$0xff]  ;;  %v2941_v4 = vld [vmem:[%s8570_s2 + $0x68] sm:$0xff] }
 0x3aa   :  { %4170 = vmatpush1.xpose.msra.mxu0 %v2952_v2  ;;  %v8139_v11 = vpop.permute.xlu1 %2670  ;;  %v9610_v21 = vld [vmem:[#allocation111_spill] sm:$0xff]  ;;  %v9612_v56 = vld [vmem:[#allocation62_spill] sm:$0xff]  ;;  %v9617_v54 = vld [vmem:[#allocation8_spill] sm:$0xff] }
 0x3ab   :  { %4857 = vperm.xlu0 %4629, %v4856_v28   ;;  %4171 = vmatprep.subr.mxu0 %v2949_v14  ;;  %v9608_v28 = vld [vmem:[#allocation164_spill] sm:$0xff]  ;;  %v8157_v26 = vadd.f32 %v9611_v17, %v9610_v21  ;;  %v8161_v49 = vadd.f32 %v9613_v37, %v9612_v56  ;;  %v9614_v5 = vld [vmem:[#allocation63_spill] sm:$0xff] }
 0x3ac   :  { %4862 = vperm.xlu1 %4635, %v4861_v43   ;;  %4236 = vmatpush1.xpose.msra.mxu1 %v2962_v42  ;;  %v8148_v31 = vadd.f32 %v9608_v28, %v9607_v20  ;;  %v4886_v43 = vpack.i.bf16 %v2905_v23, %v2892_v40  ;;  %v2923_v19 = vadd.f32 %v8074_v44, %v9614_v5  ;;  %v2954_v44 = vld [vmem:[%s8570_s2 + $0xd0] sm:$0xff]  ;;  %v9621_v14 = vld [vmem:[#allocation20_spill] sm:$0xff] }
 0x3ad   :  { %4237 = vmatprep.subr.mxu1 %v2959_v18  ;;  %v9618_v42 = vld [vmem:[#allocation66_spill] sm:$0xff]  ;;  %v9622_v39 = vld [vmem:[#allocation27_spill] sm:$0xff]  ;;  %v9623_v18 = vld [vmem:[#allocation92_spill] sm:$0xff] }
 0x3ae   :  { %4172 = vmatpush1.xpose.msra.mxu0 %v2948_v33  ;;  %v8180_v34 = vadd.f32 %v9619_v58, %v9618_v42  ;;  %v4896_v33 = vpack.i.bf16 %v2893_v27, %v2876_v3  ;;  %v2894_v7 = vadd.f32 %v7889_v0, %v9623_v18  ;;  %v9624_v40 = vld [vmem:[#allocation143_spill] sm:$0xff]  ;;  %v4901_v52 = vpack.i.bf16 %v2923_v19, %v2906_v59  ;;  %v9627_v28 = vld [vmem:[#allocation140_spill] sm:$0xff]  ;;  %v2937_v19 = vld [vmem:[%s8570_s2 + $0x48] sm:$0xff] }
 0x3af   :  { %4867 = vperm.xlu0 %4629, %v4866_v36   ;;  %v4891_v36 = vpack.i.bf16 %v2859_v22, %v2922_v53  ;;  %4173 = vmatprep.subr.mxu0 %v2945_v62  ;;  %v8188_v53 = vadd.f32 %v7801_v30, %v9622_v39  ;;  %v9625_v15 = vld [vmem:[#allocation155_spill] sm:$0xff]  ;;  %v2940_v30 = vld [vmem:[%s8570_s2 + $0x60] sm:$0xff]  ;;  %v9635_v18 = vld [vmem:[#allocation162_spill] sm:$0xff] }
 0x3b0   :  { %4872 = vperm.xlu1 %4635, %v4871_v1   ;;  %4238 = vmatpush1.xpose.msra.mxu1 %v2958_v6  ;;  %v9616_v1 = vld [vmem:[#allocation151_spill] sm:$0xff]  ;;  %v2907_v6 = vadd.f32 %v7941_v50, %v9624_v40  ;;  %v9628_v35 = vld [vmem:[#allocation148_spill] sm:$0xff] }
 0x3b1   :  { %4239 = vmatprep.subr.mxu1 %v2955_v46  ;;  %v2951_v0 = vld [vmem:[%s8570_s2 + $0xb8] sm:$0xff]  ;;  %v2924_v50 = vadd.f32 %v8087_v63, %v9628_v35 }
 0x3b2   :  { %4174 = vmatpush1.xpose.msra.mxu0 %v2944_v29  ;;  %v9629_v63 = vld [vmem:[#allocation83_spill] sm:$0xff]  ;;  %v4931_v29 = vpack.i.bf16 %v8188_v53, %v8161_v49  ;;  %v4911_v46 = vpack.i.bf16 %v2907_v6, %v2894_v7  ;;  %v2933_v6 = vld [vmem:[%s8570_s2 + $0x28] sm:$0xff] }
 0x3b3   :  { %4877 = vperm.xlu0 %4629, %v4876_v45   ;;  %4175 = vmatprep.subr.mxu0 %v2941_v4  ;;  %v2878_v37 = vadd.f32 %v7793_v13, %v9629_v63  ;;  %v2936_v13 = vld [vmem:[%s8570_s2 + $0x40] sm:$0xff]  ;;  %v4916_v58 = vpack.i.bf16 %v8157_v26, %v2924_v50  ;;  %v2943_v35 = vld [vmem:[%s8570_s2 + $0x78] sm:$0xff] }
 0x3b4   :  { %4882 = vperm.xlu1 %4635, %v4881_v25   ;;  %v4632_v57 = vpop.permute.xlu0 %4631  ;;  %v2877_v25 = vadd.f32 %v7789_v55, %v9621_v14  ;;  %4240 = vmatpush1.xpose.msra.mxu1 %v2954_v44  ;;  %v9626_v55 = vld [vmem:[#allocation154_spill] sm:$0xff]  ;;  %v9639_v50 = vld [vmem:[#allocation65_spill] sm:$0xff]  ;;  %v2935_v53 = vld [vmem:[%s8570_s2 + $0x38] sm:$0xff] }
 0x3b5   :  { %v4634_v48 = vunpack.i.h.bf16 %v4632_v57  ;;  %v4633_v9 = vunpack.i.l.bf16 %v4632_v57  ;;  %v8207_v57 = vadd.f32 %v7897_v61, %v9627_v28  ;;  %4241 = vmatprep.subr.mxu1 %v2951_v0  ;;  %v9632_v44 = vld [vmem:[#allocation54_spill] sm:$0xff]  ;;  %v9638_v28 = vld [vmem:[#allocation165_spill] sm:$0xff] }
 0x3b6   :  { %4176 = vmatpush1.xpose.msra.mxu0 %v2940_v30  ;;  %v4906_v56 = vpack.i.bf16 %v2877_v25, %v8148_v31  ;;  %v2947_v31 = vld [vmem:[%s8570_s2 + $0x98] sm:$0xff]  ;;  %v2908_v42 = vadd.f32 %v7943_v47, %v9632_v44  ;;  %v9637_v30 = vld [vmem:[#allocation166_spill] sm:$0xff] }
 0x3b7   :  { %v3518_v2 = vrot.slane %v4634_v48, %v9616_v1  ;;  %v3514_v38 = vrot.slane %v4633_v9, %v9617_v54  ;;  %v4638_v60 = vpop.permute.xlu1 %4637  ;;  %4887 = vperm.xlu0 %4629, %v4886_v43   ;;  %v2950_v48 = vld [vmem:[%s8570_s2 + $0xb0] sm:$0xff]  ;;  %4177 = vmatprep.subr.mxu0 %v2937_v19  ;;  %v9634_v47 = vld [vmem:[#allocation112_spill] sm:$0xff] }
 0x3b8   :  { %v4640_v23 = vunpack.i.h.bf16 %v4638_v60  ;;  %v4639_v12 = vunpack.i.l.bf16 %v4638_v60  ;;  %4892 = vperm.xlu1 %4635, %v4891_v36   ;;  %v4648_v45 = vpop.permute.xlu0 %4647  ;;  %4242 = vmatpush1.xpose.msra.mxu1 %v2950_v48  ;;  %v4921_v60 = vpack.i.bf16 %v8207_v57, %v2878_v37  ;;  %v2925_v26 = vadd.f32 %v8103_v24, %v9634_v47  ;;  %v2932_v57 = vld [vmem:[%s8570_s2 + $0x20] sm:$0xff]  ;;  %v9644_v44 = vld [vmem:[#allocation15_spill] sm:$0xff] }
 0x3b9   :  { %v3519_v27 = vsel %vm1466_vm1, %v3518_v2, %v3514_v38  ;;  %v4649_v62 = vunpack.i.l.bf16 %v4648_v45  ;;  %v4650_v5 = vunpack.i.h.bf16 %v4648_v45  ;;  %v9631_v2 = vld [vmem:[#allocation7_spill] sm:$0xff]  ;;  %4243 = vmatprep.subr.mxu1 %v2947_v31  ;;  %v9641_v37 = vld [vmem:[#allocation13_spill] sm:$0xff]  ;;  %v9643_v31 = vld [vmem:[#allocation16_spill] sm:$0xff] }
 0x3ba   :  { %v3528_v22 = vrot.slane %v4640_v23, %v9625_v15  ;;  %v3523_v20 = vrot.slane %v4639_v12, %v9626_v55  ;;  %4178 = vmatpush1.xpose.msra.mxu0 %v2936_v13  ;;  %v2946_v23 = vld [vmem:[%s8570_s2 + $0x90] sm:$0xff] }
 0x3bb   :  { %v4643_v43 = vpop.permute.xlu1 %4642  ;;  %4897 = vperm.xlu0 %4629, %v4896_v33   ;;  %v9633_v12 = vld [vmem:[#allocation159_spill] sm:$0xff]  ;;  %v3548_v7 = vrot.slane %v4650_v5, %v9635_v18  ;;  %4179 = vmatprep.subr.mxu0 %v2933_v6 }
 0x3bc   :  { %v3524_v9 = vsel %vm1473_vm2, %v3523_v20, %v3519_v27  ;;  %v4645_v21 = vunpack.i.h.bf16 %v4643_v43  ;;  %v4644_v17 = vunpack.i.l.bf16 %v4643_v43  ;;  %4902 = vperm.xlu1 %4635, %v4901_v52   ;;  %v4658_v61 = vpop.permute.xlu0 %4657  ;;  %v3543_v45 = vrot.slane %v4649_v62, %v9633_v12  ;;  %4244 = vmatpush1.xpose.msra.mxu1 %v2946_v23  ;;  %v9636_v52 = vld [vmem:[#allocation53_spill] sm:$0xff]  ;;  %v2942_v62 = vld [vmem:[%s8570_s2 + $0x70] sm:$0xff] }
 0x3bd   :  { %v3529_v36 = vsel %vm1480_vm3, %v3528_v22, %v3524_v9  ;;  %v4659_v41 = vunpack.i.l.bf16 %v4658_v61  ;;  %v4660_v40 = vunpack.i.h.bf16 %v4658_v61  ;;  %v8251_v22 = vadd.f32 %v7947_v51, %v9636_v52  ;;  %v9640_v51 = vld [vmem:[#allocation169_spill] sm:$0xff]  ;;  %4245 = vmatprep.subr.mxu1 %v2943_v35  ;;  %v9647_v52 = vld [vmem:[#allocation172_spill] sm:$0xff] }
 0x3be   :  { %v3538_v3 = vrot.slane %v4645_v21, %v9630_v16  ;;  %v3533_v38 = vrot.slane %v4644_v17, %v9631_v2  ;;  %v2926_v27 = vadd.f32 %v8123_v32, %v9639_v50  ;;  %4180 = vmatpush1.xpose.msra.mxu0 %v2932_v57  ;;  %v4926_v32 = vpack.i.bf16 %v2925_v26, %v2908_v42  ;;  %v2928_v42 = vld [vmem:[%s8570_s2] sm:$0xff] }
 0x3bf   :  { %v4653_v59 = vpop.permute.xlu1 %4652  ;;  %4907 = vperm.xlu0 %4629, %v4906_v56   ;;  %v3563_v43 = vrot.slane %v4659_v41, %v9640_v51  ;;  %v2939_v41 = vld [vmem:[%s8570_s2 + $0x58] sm:$0xff] }
 0x3c0   :  { %v3534_v14 = vsel %vm1487_vm4, %v3533_v38, %v3529_v36  ;;  %v4655_v25 = vunpack.i.h.bf16 %v4653_v59  ;;  %v4654_v39 = vunpack.i.l.bf16 %v4653_v59  ;;  %4912 = vperm.xlu1 %4635, %v4911_v46   ;;  %v4668_v33 = vpop.permute.xlu0 %4667  ;;  %v3568_v36 = vrot.slane %v4660_v40, %v9641_v37  ;;  %4246 = vmatpush1.xpose.msra.mxu1 %v2942_v62  ;;  %v2929_v46 = vld [vmem:[%s8570_s2 + $0x8] sm:$0xff] }
 0x3c1   :  { %v3539_v4 = vsel %vm1494_vm5, %v3538_v3, %v3534_v14  ;;  %v4669_v17 = vunpack.i.l.bf16 %v4668_v33  ;;  %v4670_v19 = vunpack.i.h.bf16 %v4668_v33  ;;  %v9642_v3 = vld [vmem:[#allocation50_spill] sm:$0xff]  ;;  %4181 = vmatprep.subr.mxu0 %v2929_v46  ;;  %v4941_v59 = vpack.i.bf16 %v8251_v22, %v8180_v34  ;;  %4247 = vmatprep.subr.mxu1 %v2939_v41  ;;  %v9646_v40 = vld [vmem:[#allocation113_spill] sm:$0xff] }
 0x3c2   :  { %v3544_v20 = vsel %vm1501_vm6, %v3543_v45, %v3539_v4  ;;  %v3558_v0 = vrot.slane %v4655_v25, %v9637_v30  ;;  %v3553_v24 = vrot.slane %v4654_v39, %v9638_v28  ;;  %v2909_v38 = vadd.f32 %v7945_v10, %v9642_v3  ;;  %4182 = vmatpush1.xpose.msra.mxu0 %v2928_v42  ;;  %v2938_v25 = vld [vmem:[%s8570_s2 + $0x50] sm:$0xff]  ;;  %v9645_v39 = vld [vmem:[#allocation17_spill] sm:$0xff] }
 0x3c3   :  { %v3549_v48 = vsel %vm1508_vm7, %v3548_v7, %v3544_v20  ;;  %v4663_v9 = vpop.permute.xlu1 %4662  ;;  %4917 = vperm.xlu0 %4629, %v4916_v58   ;;  %v3583_v33 = vrot.slane %v4669_v17, %v9645_v39  ;;  %v2927_v6 = vadd.f32 %v8139_v11, %v9646_v40  ;;  %v3588_v22 = vrot.slane %v4670_v19, %v9647_v52  ;;  %v2930_v19 = vld [vmem:[%s8570_s2 + $0x10] sm:$0xff] }
 0x3c4   :  { %v3554_v21 = vsel %vm1515_vm8, %v3553_v24, %v3549_v48  ;;  %v4665_v61 = vunpack.i.h.bf16 %v4663_v9  ;;  %v4664_v56 = vunpack.i.l.bf16 %v4663_v9  ;;  %4922 = vperm.xlu1 %4635, %v4921_v60   ;;  %v4678_v63 = vpop.permute.xlu0 %4677  ;;  %v4936_v4 = vpack.i.bf16 %v2926_v27, %v2909_v38  ;;  %4248 = vmatpush1.xpose.msra.mxu1 %v2938_v25 }
 0x3c5   :  { %v3559_v5 = vsel %vm1522_vm9, %v3558_v0, %v3554_v21  ;;  %v4680_v23 = vunpack.i.h.bf16 %v4678_v63  ;;  %v4679_v45 = vunpack.i.l.bf16 %v4678_v63  ;;  %v9648_v0 = vld [vmem:[#allocation103_spill] sm:$0xff]  ;;  %4249 = vmatprep.subr.mxu1 %v2935_v53 }
 0x3c6   :  { %v3564_v13 = vsel %vm1529_vm10, %v3563_v43, %v3559_v5  ;;  %v3578_v60 = vrot.slane %v4665_v61, %v9643_v31  ;;  %v3573_v58 = vrot.slane %v4664_v56, %v9644_v44  ;;  %v2911_v24 = vadd.f32 %v7949_v8, %v9648_v0  ;;  %v2934_v8 = vld [vmem:[%s8570_s2 + $0x30] sm:$0xff]  ;;  %v2931_v63 = vld [vmem:[%s8570_s2 + $0x18] sm:$0xff] }
 0x3c7   :  { %v3569_v10 = vsel %vm1536_vm11, %v3568_v36, %v3564_v13  ;;  %v4673_v14 = vpop.permute.xlu1 %4672  ;;  %4927 = vperm.xlu0 %4629, %v4926_v32   ;;  %v3607_v11 = vrot.slane %v4680_v23, %v9625_v15 }
 0x3c8   :  { %v3574_v47 = vsel %vm1543_vm12, %v3573_v58, %v3569_v10  ;;  %v4675_v26 = vunpack.i.h.bf16 %v4673_v14  ;;  %v4674_v7 = vunpack.i.l.bf16 %v4673_v14  ;;  %4932 = vperm.xlu1 %4635, %v4931_v29   ;;  %v4688_v34 = vpop.permute.xlu0 %4687  ;;  %v3602_v29 = vrot.slane %v4679_v45, %v9626_v55  ;;  %4250 = vmatpush1.xpose.msra.mxu1 %v2934_v8 }
 0x3c9   :  { %v3579_v20 = vsel %vm1550_vm13, %v3578_v60, %v3574_v47  ;;  %v4689_v48 = vunpack.i.l.bf16 %v4688_v34  ;;  %v4946_v17 = vpack.i.bf16 %v2911_v24, %v2927_v6  ;;  %v4690_v56 = vunpack.i.h.bf16 %v4688_v34  ;;  %4251 = vmatprep.subr.mxu1 %v2931_v63 }
 0x3ca   :  { %v3597_v57 = vrot.slane %v4675_v26, %v9616_v1  ;;  %v3593_v35 = vrot.slane %v4674_v7, %v9617_v54  ;;  %v3584_v49 = vsel %vm1557_vm14, %v3583_v33, %v3579_v20 }
 0x3cb   :  { %v4683_v50 = vpop.permute.xlu1 %4682  ;;  %4937 = vperm.xlu0 %4629, %v4936_v4   ;;  %v8312_v27 = vsel %vm1564_vm15, %v3588_v22, %v3584_v49  ;;  %v3622_v38 = vrot.slane %v4689_v48, %v9633_v12  ;;  %v3627_v41 = vrot.slane %v4690_v56, %v9635_v18 }
 0x3cc   :  { %v3598_v43 = vsel %vm1466_vm1, %v3597_v57, %v3593_v35  ;;  %v4685_v9 = vunpack.i.h.bf16 %v4683_v50  ;;  %v4684_v62 = vunpack.i.l.bf16 %v4683_v50  ;;  %4942 = vperm.xlu1 %4635, %v4941_v59   ;;  %v4698_v21 = vpop.permute.xlu0 %4697  ;;  %4252 = vmatpush1.xpose.msra.mxu1 %v2930_v19 }
 0x3cd   :  { %v3603_v61 = vsel %vm1473_vm2, %v3602_v29, %v3598_v43  ;;  %v4699_v46 = vunpack.i.l.bf16 %v4698_v21  ;;  %v4700_v10 = vunpack.i.h.bf16 %v4698_v21 }
 0x3ce   :  { %v3617_v32 = vrot.slane %v4685_v9, %v9630_v16  ;;  %v3608_v36 = vsel %vm1480_vm3, %v3607_v11, %v3603_v61  ;;  %v3612_v5 = vrot.slane %v4684_v62, %v9631_v2 }
 0x3cf   :  { %v4693_v3 = vpop.permute.xlu1 %4692  ;;  %4947 = vperm.xlu0 %4629, %v4946_v17   ;;  %v3642_v25 = vrot.slane %v4699_v46, %v9640_v51  ;;  %v3647_v6 = vrot.slane %v4700_v10, %v9641_v37 }
 0x3d0   :  { %v3613_v13 = vsel %vm1487_vm4, %v3612_v5, %v3608_v36  ;;  %v4695_v60 = vunpack.i.h.bf16 %v4693_v3  ;;  %v4694_v58 = vunpack.i.l.bf16 %v4693_v3  ;;  %v4708_v42 = vpop.permute.xlu0 %4707 }
 0x3d1   :  { %v3618_v59 = vsel %vm1494_vm5, %v3617_v32, %v3613_v13  ;;  %v4709_v7 = vunpack.i.l.bf16 %v4708_v42  ;;  %v4710_v20 = vunpack.i.h.bf16 %v4708_v42 }
 0x3d2   :  { %v3623_v23 = vsel %vm1501_vm6, %v3622_v38, %v3618_v59  ;;  %v3637_v45 = vrot.slane %v4695_v60, %v9637_v30  ;;  %v3632_v14 = vrot.slane %v4694_v58, %v9638_v28 }
 0x3d3   :  { %v3628_v33 = vsel %vm1508_vm7, %v3627_v41, %v3623_v23  ;;  %v4703_v47 = vpop.permute.xlu1 %4702  ;;  %v3662_v29 = vrot.slane %v4709_v7, %v9645_v39  ;;  %v3667_v9 = vrot.slane %v4710_v20, %v9647_v52 }
 0x3d4   :  { %v3633_v26 = vsel %vm1515_vm8, %v3632_v14, %v3628_v33  ;;  %v4705_v34 = vunpack.i.h.bf16 %v4703_v47  ;;  %v4704_v4 = vunpack.i.l.bf16 %v4703_v47  ;;  %v4718_v40 = vpop.permute.xlu0 %4717 }
 0x3d5   :  { %v3638_v22 = vsel %vm1522_vm9, %v3637_v45, %v3633_v26  ;;  %v4720_v49 = vunpack.i.h.bf16 %v4718_v40  ;;  %v4719_v53 = vunpack.i.l.bf16 %v4718_v40 }
 0x3d6   :  { %v3643_v0 = vsel %vm1529_vm10, %v3642_v25, %v3638_v22  ;;  %v3657_v24 = vrot.slane %v4705_v34, %v9643_v31  ;;  %v3652_v57 = vrot.slane %v4704_v4, %v9644_v44 }
 0x3d7   :  { %v3648_v35 = vsel %vm1536_vm11, %v3647_v6, %v3643_v0  ;;  %v4713_v11 = vpop.permute.xlu1 %4712  ;;  %v3686_v56 = vrot.slane %v4720_v49, %v9625_v15  ;;  %v3681_v63 = vrot.slane %v4719_v53, %v9626_v55 }
 0x3d8   :  { %v3653_v50 = vsel %vm1543_vm12, %v3652_v57, %v3648_v35  ;;  %v4715_v8 = vunpack.i.h.bf16 %v4713_v11  ;;  %v4714_v43 = vunpack.i.l.bf16 %v4713_v11  ;;  %v4728_v48 = vpop.permute.xlu0 %4727 }
 0x3d9   :  { %v3658_v62 = vsel %vm1550_vm13, %v3657_v24, %v3653_v50  ;;  %v4729_v19 = vunpack.i.l.bf16 %v4728_v48  ;;  %v4730_v60 = vunpack.i.h.bf16 %v4728_v48 }
 0x3da   :  { %v3676_v21 = vrot.slane %v4715_v8, %v9616_v1  ;;  %v3672_v17 = vrot.slane %v4714_v43, %v9617_v54  ;;  %v3663_v61 = vsel %vm1557_vm14, %v3662_v29, %v3658_v62 }
 0x3db   :  { %v4723_v32 = vpop.permute.xlu1 %4722  ;;  %v8354_v36 = vsel %vm1564_vm15, %v3667_v9, %v3663_v61  ;;  %v3701_v23 = vrot.slane %v4729_v19, %v9633_v12  ;;  %v3706_v47 = vrot.slane %v4730_v60, %v9635_v18 }
 0x3dc   :  { %v3677_v5 = vsel %vm1466_vm1, %v3676_v21, %v3672_v17  ;;  %v4725_v46 = vunpack.i.h.bf16 %v4723_v32  ;;  %v4724_v3 = vunpack.i.l.bf16 %v4723_v32  ;;  %v4738_v38 = vpop.permute.xlu0 %4737 }
 0x3dd   :  { %v3682_v13 = vsel %vm1473_vm2, %v3681_v63, %v3677_v5  ;;  %v4739_v59 = vunpack.i.l.bf16 %v4738_v38  ;;  %v4740_v7 = vunpack.i.h.bf16 %v4738_v38 }
 0x3de   :  { %v3696_v58 = vrot.slane %v4725_v46, %v9630_v16  ;;  %v3687_v42 = vsel %vm1480_vm3, %v3686_v56, %v3682_v13  ;;  %v3691_v41 = vrot.slane %v4724_v3, %v9631_v2 }
 0x3df   :  { %v4733_v10 = vpop.permute.xlu1 %4732  ;;  %v3721_v6 = vrot.slane %v4739_v59, %v9640_v51  ;;  %v3726_v53 = vrot.slane %v4740_v7, %v9641_v37 }
 0x3e0   :  { %v3692_v45 = vsel %vm1487_vm4, %v3691_v41, %v3687_v42  ;;  %v4735_v14 = vunpack.i.h.bf16 %v4733_v10  ;;  %v4734_v25 = vunpack.i.l.bf16 %v4733_v10  ;;  %v4748_v33 = vpop.permute.xlu0 %4747 }
 0x3e1   :  { %v3697_v26 = vsel %vm1494_vm5, %v3696_v58, %v3692_v45  ;;  %v4749_v24 = vunpack.i.l.bf16 %v4748_v33  ;;  %v4750_v29 = vunpack.i.h.bf16 %v4748_v33 }
 0x3e2   :  { %v3702_v34 = vsel %vm1501_vm6, %v3701_v23, %v3697_v26  ;;  %v3716_v4 = vrot.slane %v4735_v14, %v9637_v30  ;;  %v3711_v40 = vrot.slane %v4734_v25, %v9638_v28 }
 0x3e3   :  { %v3707_v22 = vsel %vm1508_vm7, %v3706_v47, %v3702_v34  ;;  %v4743_v20 = vpop.permute.xlu1 %4742  ;;  %v3741_v17 = vrot.slane %v4749_v24, %v9645_v39  ;;  %v3746_v32 = vrot.slane %v4750_v29, %v9647_v52 }
 0x3e4   :  { %v3712_v0 = vsel %vm1515_vm8, %v3711_v40, %v3707_v22  ;;  %v4745_v57 = vunpack.i.h.bf16 %v4743_v20  ;;  %v4744_v35 = vunpack.i.l.bf16 %v4743_v20  ;;  %v4758_v49 = vpop.permute.xlu0 %4757 }
 0x3e5   :  { %v3717_v11 = vsel %vm1522_vm9, %v3716_v4, %v3712_v0  ;;  %v4760_v9 = vunpack.i.h.bf16 %v4758_v49  ;;  %v4759_v62 = vunpack.i.l.bf16 %v4758_v49 }
 0x3e6   :  { %v3722_v50 = vsel %vm1529_vm10, %v3721_v6, %v3717_v11  ;;  %v3736_v8 = vrot.slane %v4745_v57, %v9643_v31  ;;  %v3731_v43 = vrot.slane %v4744_v35, %v9644_v44 }
 0x3e7   :  { %v3727_v48 = vsel %vm1536_vm11, %v3726_v53, %v3722_v50  ;;  %v4753_v21 = vpop.permute.xlu1 %4752  ;;  %v3765_v13 = vrot.slane %v4760_v9, %v9625_v15  ;;  %v3760_v60 = vrot.slane %v4759_v62, %v9626_v55 }
 0x3e8   :  { %v3732_v61 = vsel %vm1543_vm12, %v3731_v43, %v3727_v48  ;;  %v4755_v56 = vunpack.i.h.bf16 %v4753_v21  ;;  %v4754_v63 = vunpack.i.l.bf16 %v4753_v21  ;;  %v4768_v19 = vpop.permute.xlu0 %4767 }
 0x3e9   :  { %v3737_v5 = vsel %vm1550_vm13, %v3736_v8, %v3732_v61  ;;  %v4769_v59 = vunpack.i.l.bf16 %v4768_v19  ;;  %v4770_v14 = vunpack.i.h.bf16 %v4768_v19 }
 0x3ea   :  { %v3755_v46 = vrot.slane %v4755_v56, %v9616_v1  ;;  %v3751_v3 = vrot.slane %v4754_v63, %v9617_v54  ;;  %v3742_v38 = vsel %vm1557_vm14, %v3741_v17, %v3737_v5 }
 0x3eb   :  { %v4763_v58 = vpop.permute.xlu1 %4762  ;;  %v8387_v42 = vsel %vm1564_vm15, %v3746_v32, %v3742_v38  ;;  %v3780_v7 = vrot.slane %v4769_v59, %v9633_v12  ;;  %v3785_v6 = vrot.slane %v4770_v14, %v9635_v18 }
 0x3ec   :  { %v3756_v41 = vsel %vm1466_vm1, %v3755_v46, %v3751_v3  ;;  %v4765_v10 = vunpack.i.h.bf16 %v4763_v58  ;;  %v4764_v23 = vunpack.i.l.bf16 %v4763_v58  ;;  %v4778_v53 = vpop.permute.xlu0 %4777 }
 0x3ed   :  { %v3761_v45 = vsel %vm1473_vm2, %v3760_v60, %v3756_v41  ;;  %v4780_v62 = vunpack.i.h.bf16 %v4778_v53  ;;  %v4779_v21 = vunpack.i.l.bf16 %v4778_v53 }
 0x3ee   :  { %v3775_v25 = vrot.slane %v4765_v10, %v9630_v16  ;;  %v3766_v33 = vsel %vm1480_vm3, %v3765_v13, %v3761_v45  ;;  %v3770_v47 = vrot.slane %v4764_v23, %v9631_v2 }
 0x3ef   :  { %v4773_v26 = vpop.permute.xlu1 %4772  ;;  %v3913_v5 = vrot.slane %v4780_v62, %v9616_v1  ;;  %v3909_v19 = vrot.slane %v4779_v21, %v9617_v54 }
 0x3f0   :  { %v3771_v34 = vsel %vm1487_vm4, %v3770_v47, %v3766_v33  ;;  %v4775_v4 = vunpack.i.h.bf16 %v4773_v26  ;;  %v4774_v40 = vunpack.i.l.bf16 %v4773_v26  ;;  %v4788_v29 = vpop.permute.xlu0 %4787 }
 0x3f1   :  { %v3776_v22 = vsel %vm1494_vm5, %v3775_v25, %v3771_v34  ;;  %v4789_v32 = vunpack.i.l.bf16 %v4788_v29  ;;  %v4790_v58 = vunpack.i.h.bf16 %v4788_v29  ;;  %v3914_v10 = vsel %vm1466_vm1, %v3913_v5, %v3909_v19 }
 0x3f2   :  { %v3781_v20 = vsel %vm1501_vm6, %v3780_v7, %v3776_v22  ;;  %v3795_v0 = vrot.slane %v4775_v4, %v9637_v30  ;;  %v3790_v24 = vrot.slane %v4774_v40, %v9638_v28 }
 0x3f3   :  { %v3786_v57 = vsel %vm1508_vm7, %v3785_v6, %v3781_v20  ;;  %v4783_v11 = vpop.permute.xlu1 %4782  ;;  %v3918_v41 = vrot.slane %v4789_v32, %v9626_v55  ;;  %v3839_v34 = vrot.slane %v4790_v58, %v9626_v55 }
 0x3f4   :  { %v3791_v35 = vsel %vm1515_vm8, %v3790_v24, %v3786_v57  ;;  %v4785_v17 = vunpack.i.h.bf16 %v4783_v11  ;;  %v4784_v61 = vunpack.i.l.bf16 %v4783_v11 }
 0x3f5   :  { %v8404_v49 = vsel %vm1522_vm9, %v3795_v0, %v3791_v35  ;;  %v3919_v4 = vsel %vm1473_vm2, %v3918_v41, %v3914_v10 }
 0x3f6   :  { %v3834_v46 = vrot.slane %v4785_v17, %v9616_v1  ;;  %v3830_v3 = vrot.slane %v4784_v61, %v9617_v54 }
 0x3f8   :  { %v3835_v23 = vsel %vm1466_vm1, %v3834_v46, %v3830_v3 }
 0x3f9   :  { %v3840_v57 = vsel %vm1473_vm2, %v3839_v34, %v3835_v23 }
 0x40b   :  { %v4793_v50 = vpop.permute.xlu1 %4792 }
 0x40c   :  { %v4794_v13 = vunpack.i.l.bf16 %v4793_v50  ;;  %v4795_v25 = vunpack.i.h.bf16 %v4793_v50 }
 0x40e   :  { %v4798_v8 = vpop.permute.xlu0 %4797  ;;  %v3923_v33 = vrot.slane %v4794_v13, %v9625_v15  ;;  %v4067_v50 = vrot.slane %v4795_v25, %v9617_v54 }
 0x40f   :  { %v4803_v43 = vpop.permute.xlu1 %4802  ;;  %v4800_v59 = vunpack.i.h.bf16 %v4798_v8  ;;  %v4799_v45 = vunpack.i.l.bf16 %v4798_v8 }
 0x410   :  { %v4804_v47 = vunpack.i.l.bf16 %v4803_v43  ;;  %v4805_v40 = vunpack.i.h.bf16 %v4803_v43  ;;  %v3924_v8 = vsel %vm1480_vm3, %v3923_v33, %v3919_v4 }
 0x411   :  { %v3844_v22 = vrot.slane %v4800_v59, %v9625_v15  ;;  %v4071_v35 = vrot.slane %v4799_v45, %v9616_v1 }
 0x412   :  { %v4808_v48 = vpop.permute.xlu0 %4807  ;;  %v3928_v62 = vrot.slane %v4804_v47, %v9631_v2  ;;  %v3988_v21 = vrot.slane %v4805_v40, %v9617_v54 }
 0x413   :  { %v4813_v9 = vpop.permute.xlu1 %4812  ;;  %v4809_v26 = vunpack.i.l.bf16 %v4808_v48  ;;  %v4810_v6 = vunpack.i.h.bf16 %v4808_v48  ;;  %v3845_v32 = vsel %vm1480_vm3, %v3844_v22, %v3840_v57  ;;  %v4072_v46 = vsel %vm1466_vm1, %v4071_v35, %v4067_v50 }
 0x414   :  { %v4815_v20 = vunpack.i.h.bf16 %v4813_v9  ;;  %v4814_v0 = vunpack.i.l.bf16 %v4813_v9  ;;  %v3929_v58 = vsel %vm1487_vm4, %v3928_v62, %v3924_v8 }
 0x415   :  { %v3992_v43 = vrot.slane %v4809_v26, %v9616_v1  ;;  %v4076_v9 = vrot.slane %v4810_v6, %v9626_v55 }
 0x416   :  { %v4818_v56 = vpop.permute.xlu0 %4817  ;;  %v3849_v5 = vrot.slane %v4814_v0, %v9631_v2 }
 0x417   :  { %v4823_v63 = vpop.permute.xlu1 %4822  ;;  %v4819_v24 = vunpack.i.l.bf16 %v4818_v56  ;;  %v4820_v11 = vunpack.i.h.bf16 %v4818_v56  ;;  %v3933_v56 = vrot.slane %v4815_v20, %v9630_v16  ;;  %v4077_v23 = vsel %vm1473_vm2, %v4076_v9, %v4072_v46 }
 0x418   :  { %v4824_v53 = vunpack.i.l.bf16 %v4823_v63  ;;  %v4825_v17 = vunpack.i.h.bf16 %v4823_v63  ;;  %v3993_v63 = vsel %vm1466_vm1, %v3992_v43, %v3988_v21 }
 0x419   :  { %v3997_v19 = vrot.slane %v4819_v24, %v9626_v55  ;;  %v4081_v1 = vrot.slane %v4820_v11, %v9625_v15  ;;  %v3934_v33 = vsel %vm1494_vm5, %v3933_v56, %v3929_v58 }
 0x41a   :  { %v4828_v38 = vpop.permute.xlu0 %4827  ;;  %v3854_v3 = vrot.slane %v4824_v53, %v9630_v16  ;;  %v3938_v55 = vrot.slane %v4825_v17, %v9633_v12 }
 0x41b   :  { %v8410_v60 = vpop.permute.xlu1 %4832  ;;  %v4829_v61 = vunpack.i.l.bf16 %v4828_v38  ;;  %v4830_v13 = vunpack.i.h.bf16 %v4828_v38  ;;  %v3850_v38 = vsel %vm1487_vm4, %v3849_v5, %v3845_v32  ;;  %v3998_v47 = vsel %vm1473_vm2, %v3997_v19, %v3993_v63 }
 0x41c   :  { %v4835_v41 = vunpack.i.h.bf16 %v8410_v60  ;;  %v4834_v59 = vunpack.i.l.bf16 %v8410_v60  ;;  %v3855_v34 = vsel %vm1494_vm5, %v3854_v3, %v3850_v38  ;;  %v4082_v60 = vsel %vm1480_vm3, %v4081_v1, %v4077_v23 }
 0x41d   :  { %v4002_v45 = vrot.slane %v4829_v61, %v9625_v15  ;;  %v4086_v4 = vrot.slane %v4830_v13, %v9631_v2  ;;  %v3939_v57 = vsel %vm1501_vm6, %v3938_v55, %v3934_v33 }
 0x41e   :  { %v8415_v14 = vpop.permute.xlu0 %4837  ;;  %v3943_v15 = vrot.slane %v4835_v41, %v9635_v18  ;;  %v3859_v22 = vrot.slane %v4834_v59, %v9633_v12 }
 0x41f   :  { %v8418_v7 = vpop.permute.xlu1 %4842  ;;  %v4839_v25 = vunpack.i.l.bf16 %v8415_v14  ;;  %v4840_v26 = vunpack.i.h.bf16 %v8415_v14  ;;  %v4003_v14 = vsel %vm1480_vm3, %v4002_v45, %v3998_v47  ;;  %v4087_v43 = vsel %vm1487_vm4, %v4086_v4, %v4082_v60 }
 0x420   :  { %v4844_v40 = vunpack.i.l.bf16 %v8418_v7  ;;  %v4845_v20 = vunpack.i.h.bf16 %v8418_v7  ;;  %v3860_v61 = vsel %vm1501_vm6, %v3859_v22, %v3855_v34  ;;  %v3944_v32 = vsel %vm1508_vm7, %v3943_v15, %v3939_v57 }
 0x421   :  { %v4007_v35 = vrot.slane %v4839_v25, %v9631_v2  ;;  %v4091_v11 = vrot.slane %v4840_v26, %v9630_v16 }
 0x422   :  { %v4848_v29 = vpop.permute.xlu0 %4847  ;;  %v3864_v21 = vrot.slane %v4844_v40, %v9635_v18  ;;  %v3948_v56 = vrot.slane %v4845_v20, %v9638_v28 }
 0x423   :  { %v4853_v48 = vpop.permute.xlu1 %4852  ;;  %v4849_v0 = vunpack.i.l.bf16 %v4848_v29  ;;  %v4850_v53 = vunpack.i.h.bf16 %v4848_v29  ;;  %v4008_v5 = vsel %vm1487_vm4, %v4007_v35, %v4003_v14  ;;  %v4092_v3 = vsel %vm1494_vm5, %v4091_v11, %v4087_v43 }
 0x424   :  { %v4855_v50 = vunpack.i.h.bf16 %v4853_v48  ;;  %v4854_v8 = vunpack.i.l.bf16 %v4853_v48  ;;  %v3865_v58 = vsel %vm1508_vm7, %v3864_v21, %v3860_v61  ;;  %v3949_v23 = vsel %vm1515_vm8, %v3948_v56, %v3944_v32 }
 0x425   :  { %v4012_v2 = vrot.slane %v4849_v0, %v9630_v16  ;;  %v4096_v48 = vrot.slane %v4850_v53, %v9633_v12 }
 0x426   :  { %v4858_v54 = vpop.permute.xlu0 %4857  ;;  %v3953_v1 = vrot.slane %v4855_v50, %v9637_v30  ;;  %v3869_v13 = vrot.slane %v4854_v8, %v9638_v28 }
 0x427   :  { %v4863_v10 = vpop.permute.xlu1 %4862  ;;  %v4859_v62 = vunpack.i.l.bf16 %v4858_v54  ;;  %v4860_v7 = vunpack.i.h.bf16 %v4858_v54  ;;  %v4097_v38 = vsel %vm1501_vm6, %v4096_v48, %v4092_v3 }
 0x428   :  { %v4864_v9 = vunpack.i.l.bf16 %v4863_v10  ;;  %v4865_v19 = vunpack.i.h.bf16 %v4863_v10  ;;  %v4013_v10 = vsel %vm1494_vm5, %v4012_v2, %v4008_v5  ;;  %v3870_v26 = vsel %vm1515_vm8, %v3869_v13, %v3865_v58 }
 0x429   :  { %v4017_v54 = vrot.slane %v4859_v62, %v9633_v12  ;;  %v4101_v16 = vrot.slane %v4860_v7, %v9635_v18  ;;  %v3954_v34 = vsel %vm1522_vm9, %v3953_v1, %v3949_v23 }
 0x42a   :  { %v4868_v6 = vpop.permute.xlu0 %4867  ;;  %v3874_v63 = vrot.slane %v4864_v9, %v9637_v30  ;;  %v3958_v33 = vrot.slane %v4865_v19, %v9640_v51 }
 0x42b   :  { %v4873_v24 = vpop.permute.xlu1 %4872  ;;  %v4869_v46 = vunpack.i.l.bf16 %v4868_v6  ;;  %v4870_v41 = vunpack.i.h.bf16 %v4868_v6  ;;  %v4018_v60 = vsel %vm1501_vm6, %v4017_v54, %v4013_v10  ;;  %v4102_v6 = vsel %vm1508_vm7, %v4101_v16, %v4097_v38 }
 0x42c   :  { %v4875_v55 = vunpack.i.h.bf16 %v4873_v24  ;;  %v4874_v45 = vunpack.i.l.bf16 %v4873_v24  ;;  %v3875_v40 = vsel %vm1522_vm9, %v3874_v63, %v3870_v26  ;;  %v3959_v35 = vsel %vm1529_vm10, %v3958_v33, %v3954_v34 }
 0x42d   :  { %v4022_v12 = vrot.slane %v4869_v46, %v9635_v18  ;;  %v4106_v15 = vrot.slane %v4870_v41, %v9638_v28 }
 0x42e   :  { %v4878_v17 = vpop.permute.xlu0 %4877  ;;  %v3963_v0 = vrot.slane %v4875_v55, %v9641_v37  ;;  %v3879_v18 = vrot.slane %v4874_v45, %v9640_v51 }
 0x42f   :  { %v4883_v29 = vpop.permute.xlu1 %4882  ;;  %v4879_v47 = vunpack.i.l.bf16 %v4878_v17  ;;  %v4880_v4 = vunpack.i.h.bf16 %v4878_v17  ;;  %v4023_v53 = vsel %vm1508_vm7, %v4022_v12, %v4018_v60  ;;  %v4107_v9 = vsel %vm1515_vm8, %v4106_v15, %v4102_v6 }
 0x430   :  { %v4884_v22 = vunpack.i.l.bf16 %v4883_v29  ;;  %v4885_v24 = vunpack.i.h.bf16 %v4883_v29  ;;  %v3880_v56 = vsel %vm1529_vm10, %v3879_v18, %v3875_v40  ;;  %v3964_v2 = vsel %vm1536_vm11, %v3963_v0, %v3959_v35 }
 0x431   :  { %v4027_v11 = vrot.slane %v4879_v47, %v9638_v28  ;;  %v4111_v8 = vrot.slane %v4880_v4, %v9637_v30 }
 0x432   :  { %v4888_v59 = vpop.permute.xlu0 %4887  ;;  %v3800_v7 = vrot.slane %v4884_v22, %v9640_v51  ;;  %v3884_v29 = vrot.slane %v4885_v24, %v9641_v37 }
 0x433   :  { %v4893_v25 = vpop.permute.xlu1 %4892  ;;  %v4889_v57 = vunpack.i.l.bf16 %v4888_v59  ;;  %v4890_v50 = vunpack.i.h.bf16 %v4888_v59  ;;  %v4028_v48 = vsel %vm1515_vm8, %v4027_v11, %v4023_v53  ;;  %v4112_v1 = vsel %vm1522_vm9, %v4111_v8, %v4107_v9 }
 0x434   :  { %v4895_v62 = vunpack.i.h.bf16 %v4893_v25  ;;  %v4894_v43 = vunpack.i.l.bf16 %v4893_v25  ;;  %v3801_v63 = vsel %vm1529_vm10, %v3800_v7, %v8404_v49 }
 0x435   :  { %v3968_v28 = vrot.slane %v4889_v57, %v9644_v44  ;;  %v4032_v19 = vrot.slane %v4890_v50, %v9637_v30  ;;  %v3885_v30 = vsel %vm1536_vm11, %v3884_v29, %v3880_v56 }
 0x436   :  { %v4898_v20 = vpop.permute.xlu0 %4897  ;;  %v3805_v13 = vrot.slane %v4895_v62, %v9641_v37  ;;  %v4116_v54 = vrot.slane %v4894_v43, %v9640_v51 }
 0x437   :  { %v4903_v14 = vpop.permute.xlu1 %4902  ;;  %v4899_v21 = vunpack.i.l.bf16 %v4898_v20  ;;  %v4900_v61 = vunpack.i.h.bf16 %v4898_v20  ;;  %v3969_v10 = vsel %vm1543_vm12, %v3968_v28, %v3964_v2  ;;  %v4033_v38 = vsel %vm1522_vm9, %v4032_v19, %v4028_v48 }
 0x438   :  { %v4904_v17 = vunpack.i.l.bf16 %v4903_v14  ;;  %v4905_v46 = vunpack.i.h.bf16 %v4903_v14  ;;  %v4117_v47 = vsel %vm1529_vm10, %v4116_v54, %v4112_v1 }
 0x439   :  { %v3889_v58 = vrot.slane %v4899_v21, %v9644_v44  ;;  %v3973_v41 = vrot.slane %v4900_v61, %v9643_v31 }
 0x43a   :  { %v4908_v32 = vpop.permute.xlu0 %4907  ;;  %v4037_v16 = vrot.slane %v4904_v17, %v9640_v51  ;;  %v4121_v33 = vrot.slane %v4905_v46, %v9641_v37  ;;  %v3806_v51 = vsel %vm1536_vm11, %v3805_v13, %v3801_v63 }
 0x43b   :  { %v4913_v5 = vpop.permute.xlu1 %4912  ;;  %v4910_v59 = vunpack.i.h.bf16 %v4908_v32  ;;  %v3890_v26 = vsel %vm1543_vm12, %v3889_v58, %v3885_v30  ;;  %v4909_v34 = vunpack.i.l.bf16 %v4908_v32  ;;  %v3974_v15 = vsel %vm1550_vm13, %v3973_v41, %v3969_v10 }
 0x43c   :  { %v4914_v3 = vunpack.i.l.bf16 %v4913_v5  ;;  %v4915_v55 = vunpack.i.h.bf16 %v4913_v5  ;;  %v4038_v60 = vsel %vm1529_vm10, %v4037_v16, %v4033_v38  ;;  %v4122_v57 = vsel %vm1536_vm11, %v4121_v33, %v4117_v47 }
 0x43d   :  { %v3894_v4 = vrot.slane %v4910_v59, %v9643_v31  ;;  %v3810_v11 = vrot.slane %v4909_v34, %v9644_v44 }
 0x43e   :  { %v4918_v23 = vpop.permute.xlu0 %4917  ;;  %v3978_v45 = vrot.slane %v4914_v3, %v9645_v39  ;;  %v4042_v22 = vrot.slane %v4915_v55, %v9641_v37 }
 0x43f   :  { %v4923_v25 = vpop.permute.xlu1 %4922  ;;  %v4919_v14 = vunpack.i.l.bf16 %v4918_v23  ;;  %v4920_v50 = vunpack.i.h.bf16 %v4918_v23  ;;  %v3895_v37 = vsel %vm1550_vm13, %v3894_v4, %v3890_v26  ;;  %v4307_v26 = vld [vmem:[%s8571_s3] ss:$0 sm:$0xff] }
 0x440   :  { %v4925_v12 = vunpack.i.h.bf16 %v4923_v25  ;;  %v4924_v49 = vunpack.i.l.bf16 %v4923_v25  ;;  %v3979_v24 = vsel %vm1557_vm14, %v3978_v45, %v3974_v15  ;;  %v4043_v17 = vsel %vm1536_vm11, %v4042_v22, %v4038_v60 }
 0x441   :  { %v4126_v29 = vrot.slane %v4919_v14, %v9644_v44  ;;  %v3815_v48 = vrot.slane %v4920_v50, %v9643_v31 }
 0x442   :  { %v3983_v40 = vrot.slane %v4925_v12, %v9647_v52  ;;  %v4928_v6 = vpop.permute.xlu0 %4927  ;;  %v3899_v20 = vrot.slane %v4924_v49, %v9645_v39 }
 0x443   :  { %v4933_v0 = vpop.permute.xlu1 %4932  ;;  %v4929_v18 = vunpack.i.l.bf16 %v4928_v6  ;;  %v4930_v8 = vunpack.i.h.bf16 %v4928_v6 }
 0x444   :  { %v4935_v35 = vunpack.i.h.bf16 %v4933_v0  ;;  %v3984_v53 = vsel %vm1564_vm15, %v3983_v40, %v3979_v24  ;;  %v4934_v21 = vunpack.i.l.bf16 %v4933_v0  ;;  %v3900_v2 = vsel %vm1557_vm14, %v3899_v20, %v3895_v37 }
 0x445   :  { %v4144_v62 = vsel %vm2119_vm0, %v3984_v53, %v8354_v36  ;;  %v4047_v9 = vrot.slane %v4929_v18, %v9644_v44  ;;  %v4131_v19 = vrot.slane %v4930_v8, %v9643_v31 }
 0x446   :  { %v3904_v43 = vrot.slane %v4935_v35, %v9647_v52  ;;  %4215 = vmatprep.mubr.f32.mxu0 %v4144_v62  ;;  %v4938_v7 = vpop.permute.xlu0 %4937  ;;  %v3820_v1 = vrot.slane %v4934_v21, %v9645_v39 }
 0x447   :  { %v4943_v61 = vpop.permute.xlu1 %4942  ;;  %v4940_v32 = vunpack.i.h.bf16 %v4938_v7  ;;  %v4939_v56 = vunpack.i.l.bf16 %v4938_v7  ;;  %v4048_v13 = vsel %vm1543_vm12, %v4047_v9, %v4043_v17 }
 0x448   :  { %v4945_v28 = vunpack.i.h.bf16 %v4943_v61  ;;  %v4944_v36 = vunpack.i.l.bf16 %v4943_v61  ;;  %v3905_v5 = vsel %vm1564_vm15, %v3904_v43, %v3900_v2 }
 0x449   :  { %v4052_v46 = vrot.slane %v4939_v56, %v9643_v31  ;;  %v4143_v3 = vsel %vm2119_vm0, %v3905_v5, %v8312_v27  ;;  %v4136_v44 = vrot.slane %v4940_v32, %v9645_v39  ;;  %v3811_v31 = vsel %vm1543_vm12, %v3810_v11, %v3806_v51 }
 0x44a   :  { %v4057_v54 = vrot.slane %v4945_v28, %v9645_v39  ;;  %4216 = vmatmul.mubr.f32.vlgmr.msra.gmra.mxu0 %v4143_v3  ;;  %v4948_v58 = vpop.permute.xlu0 %4947  ;;  %v3825_v63 = vrot.slane %v4944_v36, %v9647_v52  ;;  %v4127_v27 = vsel %vm1543_vm12, %v4126_v29, %v4122_v57  ;;  %v3816_v10 = vsel %vm1550_vm13, %v3815_v48, %v3811_v31 }
 0x44b   :  { %v4053_v16 = vsel %vm1550_vm13, %v4052_v46, %v4048_v13  ;;  %v4950_v41 = vunpack.i.h.bf16 %v4948_v58  ;;  %v4949_v59 = vunpack.i.l.bf16 %v4948_v58  ;;  %v4132_v39 = vsel %vm1550_vm13, %v4131_v19, %v4127_v27 }
 0x44c   :  { %v3821_v55 = vsel %vm1557_vm14, %v3820_v1, %v3816_v10  ;;  %v4137_v45 = vsel %vm1557_vm14, %v4136_v44, %v4132_v39  ;;  %v4058_v25 = vsel %vm1557_vm14, %v4057_v54, %v4053_v16 }
 0x44d   :  { %v4062_v23 = vrot.slane %v4950_v41, %v9647_v52  ;;  %v4141_v30 = vrot.slane %v4949_v59, %v9647_v52  ;;  %v3826_v38 = vsel %vm1564_vm15, %v3825_v63, %v3821_v55 }
 0x44f   :  { %v4142_v33 = vsel %vm1564_vm15, %v4141_v30, %v4137_v45  ;;  %v4063_v12 = vsel %vm1564_vm15, %v4062_v23, %v4058_v25 }
 0x450   :  { %v4146_v49 = vsel %vm2119_vm0, %v4142_v33, %v3826_v38  ;;  %v4145_v52 = vsel %vm2119_vm0, %v4063_v12, %v8387_v42 }
 0x451   :  { %4285 = vmatprep.mubr.f32.mxu1 %v4146_v49 }
 0x452   :  { %4286 = vmatmul.mubr.f32.vlgmr.msra.gmra.mxu1 %v4145_v52 }
 0x50a   :  { %v4217_v51 = vpop.f32.mrf.mxu0 }
 0x50b   :  { %v4218_v34 = vadd.f32 %v4307_v26, %v4217_v51 }
 0x50c   :  { %v4219_v47 = vpop.f32.mrf.mxu0 }
 0x512   :  { %v4287_v60 = vpop.f32.mrf.mxu1 }
 0x513   :  { %v4288_v4 = vadd.f32 %v4287_v60, %v4218_v34 }
 0x514   :  { %v4289_v40 = vpop.f32.mrf.mxu1 }
 0x515   :  { %4291 = vst [vmem:[#allocation2] sm:$0x3] %v4288_v4 }
 0x516   :  { %4966 = shalt.err (!%p4963_p4)
}
 0x517   :  { %4301 = dma.vmem_to_hbm [thread:$0]  %s4299_s5, 32, %s8572_s4, [#allocation3]  }
 0x518   :  { %4975 = dma.done.wait [#allocation3], 32  }
 0x519   :  { %4976 = vsyncadd [#allocation3], 4294967264 }
 0x51a   :  { %4305 = vsyncpa [#allocation3], 1 }

</bundles_post_ra>
